<compile_context>
chip_gen: v7x
topology: tpu7x:2x2x1
jax: 0.10.0
libtpu: 0.0.40
codegen_flags: <defaults>
</compile_context>

<pallas_src>
import functools

import jax
import jax.numpy as jnp
from jax.experimental import pallas as pl
from jax.experimental.pallas import tpu as pltpu


# ----------------------------------------------------------------------------
# Fused Pallas kernel: D GRU layers x L timesteps, wavefront-scheduled.
# ----------------------------------------------------------------------------
def fused_gru_kernel(x_ref, wih_ref, whh_ref, bi_ref, bhn_ref, h0_ref, o_ref,
                     *, B, L, E, D, G):
    # x_ref   : (L*B, E)   time-major flattened input tokens
    # wih_ref : (D, E, G)  input weights, gates packed [r|z|n|pad] along lanes
    # whh_ref : (D, E, G)  hidden weights, same packing
    # bi_ref  : (D, 1, G)  biases: [b_ir+b_hr | b_iz+b_hz | b_in | 0]
    # bhn_ref : (D, 1, E)  hidden bias of the n gate (kept separate: r * (h@W_hn + b_hn))
    # h0_ref  : (D, B, E)  initial hidden state per layer
    # o_ref   : (L, B, E)  time-major output (last layer hidden states)
    f32 = jnp.float32

    # ---- hoisted, time-parallel layer-0 input projection: one matmul -------------
    gi0 = jnp.dot(x_ref[...].astype(f32), wih_ref[0],
                  preferred_element_type=f32) + bi_ref[0]          # (L*B, G)

    # ---- hoisted bias broadcasts (JAX does not CSE broadcast_in_dim) -------------
    bi_b = [jnp.broadcast_to(bi_ref[d], (B, G)) for d in range(1, D)]   # layers 1..D-1
    bhn_b = [jnp.broadcast_to(bhn_ref[d], (B, E)) for d in range(D)]

    # ---- per-layer hidden states (tiny (B, E) values, kept in vregs) -------------
    h = [h0_ref[d].astype(f32) for d in range(D)]

    def cell(d, gi, hprev):
        # Weights read from VMEM inside the cell to bound live ranges (4 vregs each).
        gh = jnp.dot(hprev, whh_ref[d], preferred_element_type=f32)     # (B, G)
        s = jax.nn.sigmoid(gi + gh)            # one EUP pass: r in lanes [0,E), z in [E,2E)
        r = s[:, 0:E]
        z = s[:, E:2 * E]
        n = jnp.tanh(gi[:, 2 * E:3 * E] + r * (gh[:, 2 * E:3 * E] + bhn_b[d]))
        return n + z * (hprev - n)             # == (1 - z) * n + z * h_prev

    # ---- wavefront over (layer, time): layer d handles t = wave - d ---------------
    # Reverse-d order inside a wave guarantees h[d-1] still holds h_{d-1}[t] when
    # layer d reads it (layer d-1 only advances to t+1 later in the same wave).
    # Fully unrolled straight-line code: the D in-flight cells of a wave are data
    # independent, so the LLO scheduler can interleave their MXU/EUP/VPU work.
    for wave in range(L + D - 1):
        for d in range(D - 1, -1, -1):
            t = wave - d
            if 0 <= t < L:
                if d == 0:
                    gi = gi0[t * B:(t + 1) * B, :]                       # static row slice
                else:
                    gi = jnp.dot(h[d - 1], wih_ref[d],
                                 preferred_element_type=f32) + bi_b[d - 1]
                h[d] = cell(d, gi, h[d])
                if d == D - 1:
                    o_ref[t] = h[d].astype(o_ref.dtype)                  # time-major store


# ----------------------------------------------------------------------------
# Parameter packing: logical (E, 3E) gate-column weights -> compact lane layout.
# ----------------------------------------------------------------------------
def pack_gru_params(params, E):
    """Pack per-layer GRU params into the compact layout the kernel expects.

    Logical per-layer layout: w_ih, w_hh: (E, 3E) with gate columns [r|z|n];
    b_ih, b_hh: (1, 3E).  Packed: all three gates share one lane group of width
    G = ceil(3E / 128) * 128; padded columns are zero (they can never leak into
    valid lanes, and nothing reads them).
    """
    D = len(params["w_ih"])
    G = ((3 * E + 127) // 128) * 128
    wih = jnp.zeros((D, E, G), jnp.float32)
    whh = jnp.zeros((D, E, G), jnp.float32)
    b_i = jnp.zeros((D, 1, G), jnp.float32)
    b_hn = jnp.zeros((D, 1, E), jnp.float32)
    for d in range(D):
        w_ih_d, w_hh_d = params["w_ih"][d], params["w_hh"][d]
        bi, bh = params["b_ih"][d][0], params["b_hh"][d][0]
        wih = wih.at[d, :, 0:3 * E].set(w_ih_d)
        whh = whh.at[d, :, 0:3 * E].set(w_hh_d)
        b_i = b_i.at[d, 0, 0:E].set(bi[0:E] + bh[0:E])                  # r (folded)
        b_i = b_i.at[d, 0, E:2 * E].set(bi[E:2 * E] + bh[E:2 * E])      # z (folded)
        b_i = b_i.at[d, 0, 2 * E:3 * E].set(bi[2 * E:3 * E])            # n (input bias)
        b_hn = b_hn.at[d, 0, :].set(bh[2 * E:3 * E])                    # n (hidden bias)
    return {"w_ih": wih, "w_hh": whh, "b_i": b_i, "b_hn": b_hn}


# ----------------------------------------------------------------------------
# PCAGaussian.forward equivalent
# ----------------------------------------------------------------------------
def pca_gaussian_forward(tok_emb, packed, h0=None):
    """tok_emb: (B, L, E) batch-first, like the PyTorch module. Returns (B, L, E)."""
    B, L, E = tok_emb.shape
    D, E_, G = packed["w_ih"].shape
    assert E_ == E and G >= 3 * E

    # forward() builds h0 = 0 when not supplied.
    if h0 is None:
        h0p = jnp.zeros((D, B, E), jnp.float32)
    else:
        h0p = h0.astype(jnp.float32)

    # Cheap XLA transpose/reshape: time-major flat input for the one-shot projection.
    x_flat = jnp.transpose(tok_emb, (1, 0, 2)).reshape(L * B, E)

    kernel = functools.partial(fused_gru_kernel, B=B, L=L, E=E, D=D, G=G)
    out_tm = pl.pallas_call(
        kernel,
        out_shape=jax.ShapeDtypeStruct((L, B, E), tok_emb.dtype),
        grid_spec=pltpu.PrefetchScalarGridSpec(
            num_scalar_prefetch=0,
            grid=(1,),                                          # single fused invocation
            in_specs=[
                pl.BlockSpec((L * B, E), lambda i: (0, 0)),     # time-major tokens
                pl.BlockSpec((D, E, G), lambda i: (0, 0, 0)),   # W_ih (all layers)
                pl.BlockSpec((D, E, G), lambda i: (0, 0, 0)),   # W_hh (all layers)
                pl.BlockSpec((D, 1, G), lambda i: (0, 0, 0)),   # folded biases
                pl.BlockSpec((D, 1, E), lambda i: (0, 0, 0)),   # n-gate hidden bias
                pl.BlockSpec((D, B, E), lambda i: (0, 0, 0)),   # h0
            ],
            out_specs=pl.BlockSpec((L, B, E), lambda i: (0, 0, 0)),
        ),
        compiler_params=pltpu.CompilerParams(
            dimension_semantics=("arbitrary",)),
    )(x_flat, packed["w_ih"], packed["w_hh"], packed["b_i"], packed["b_hn"], h0p)

    return jnp.transpose(out_tm, (1, 0, 2))                     # back to batch-first


def init_gru_params(key, E, D):
    """Deterministic init matching nn.GRU parameter shapes (stored transposed, (E, 3E))."""
    std = 1.0 / float(E) ** 0.5
    p = {"w_ih": [], "w_hh": [], "b_ih": [], "b_hh": []}
    for _ in range(D):
        key, k1, k2, k3, k4 = jax.random.split(key, 5)
        p["w_ih"].append(jax.random.uniform(k1, (E, 3 * E), jnp.float32, -std, std))
        p["w_hh"].append(jax.random.uniform(k2, (E, 3 * E), jnp.float32, -std, std))
        p["b_ih"].append(jax.random.uniform(k3, (1, 3 * E), jnp.float32, -std, std))
        p["b_hh"].append(jax.random.uniform(k4, (1, 3 * E), jnp.float32, -std, std))
    return p


# ----------------------------------------------------------------------------
# Pure-JAX reference (PyTorch nn.GRU semantics, lax.scan) for correctness check.
# ----------------------------------------------------------------------------
def gru_ref(tok_emb, params):
    B, L, E = tok_emb.shape
    D = len(params["w_ih"])
    x = jnp.transpose(tok_emb, (1, 0, 2))
    for d in range(D):
        w_ih, w_hh = params["w_ih"][d], params["w_hh"][d]
        b_ih, b_hh = params["b_ih"][d], params["b_hh"][d]

        def step(h, xt):
            gi = xt @ w_ih + b_ih
            gh = h @ w_hh + b_hh
            r = jax.nn.sigmoid(gi[:, 0:E] + gh[:, 0:E])
            z = jax.nn.sigmoid(gi[:, E:2 * E] + gh[:, E:2 * E])
            n = jnp.tanh(gi[:, 2 * E:] + r * gh[:, 2 * E:])
            h_new = (1.0 - z) * n + z * h
            return h_new, h_new

        _, x = jax.lax.scan(step, jnp.zeros((B, E), jnp.float32), x)
    return jnp.transpose(x, (1, 0, 2))


if __name__ == "__main__":
    B, L, E, D = 2, 8, 32, 3   # params.E = 32, params.D = 3 (set in __init__)

    key = jax.random.PRNGKey(0)
    key, k_x = jax.random.split(key)
    tok_emb = jax.random.normal(k_x, (B, L, E), jnp.float32)

    params = init_gru_params(key, E, D)
    packed = pack_gru_params(params, E)

    out = jax.block_until_ready(pca_gaussian_forward(tok_emb, packed))
    ref = jax.block_until_ready(gru_ref(tok_emb, params))

    assert out.shape == (B, L, E)
    assert jnp.allclose(out, ref, atol=1e-4, rtol=1e-4), "mismatch vs reference"

    print("KERNEL_OK")
</pallas_src>

<mosaic_0001>
module attributes {stable_mosaic.version = 11 : i64} {
  func.func @fused_gru_kernel(%arg0: i32, %arg1: memref<16x32xf32, #tpu.memory_space<vmem>>, %arg2: memref<3x32x128xf32, #tpu.memory_space<vmem>>, %arg3: memref<3x32x128xf32, #tpu.memory_space<vmem>>, %arg4: memref<3x1x128xf32, #tpu.memory_space<vmem>>, %arg5: memref<3x1x32xf32, #tpu.memory_space<vmem>>, %arg6: memref<3x2x32xf32, #tpu.memory_space<vmem>>, %arg7: memref<8x2x32xf32, #tpu.memory_space<vmem>>) attributes {dimension_semantics = [#tpu.dimension_semantics<arbitrary>], iteration_bounds = array<i64: 1>, scalar_prefetch = 0 : i64, scratch_operands = 0 : i64, tpu.core_type = #tpu.core_type<tc>, window_params = [{pipeline_mode = #tpu.pipeline_mode<synchronous>, transform_indices = @transform_0, window_bounds = array<i64: 16, 32>}, {pipeline_mode = #tpu.pipeline_mode<synchronous>, transform_indices = @transform_1, window_bounds = array<i64: 3, 32, 128>}, {pipeline_mode = #tpu.pipeline_mode<synchronous>, transform_indices = @transform_2, window_bounds = array<i64: 3, 32, 128>}, {pipeline_mode = #tpu.pipeline_mode<synchronous>, transform_indices = @transform_3, window_bounds = array<i64: 3, 1, 128>}, {pipeline_mode = #tpu.pipeline_mode<synchronous>, transform_indices = @transform_4, window_bounds = array<i64: 3, 1, 32>}, {pipeline_mode = #tpu.pipeline_mode<synchronous>, transform_indices = @transform_5, window_bounds = array<i64: 3, 2, 32>}, {pipeline_mode = #tpu.pipeline_mode<synchronous>, transform_indices = @transform_6, window_bounds = array<i64: 8, 2, 32>}]} {
    %c0 = arith.constant 0 : index
    %c0_0 = arith.constant 0 : index
    %0 = vector.load %arg1[%c0, %c0_0] : memref<16x32xf32, #tpu.memory_space<vmem>>, vector<16x32xf32>
    %c0_1 = arith.constant 0 : index
    %c0_2 = arith.constant 0 : index
    %c0_3 = arith.constant 0 : index
    %1 = vector.load %arg2[%c0_1, %c0_2, %c0_3] : memref<3x32x128xf32, #tpu.memory_space<vmem>>, vector<1x32x128xf32>
    %2 = vector.shape_cast %1 : vector<1x32x128xf32> to vector<32x128xf32>
    %cst = arith.constant dense<0.000000e+00> : vector<16x128xf32>
    %3 = tpu.matmul %0, %2, %cst {dimension_numbers = #tpu.dot_dimension_numbers<[1], [0], [0], [1], [0, 0, 1, 1], [], []>} : vector<16x32xf32>, vector<32x128xf32>, vector<16x128xf32> -> vector<16x128xf32>
    %c0_4 = arith.constant 0 : index
    %c0_5 = arith.constant 0 : index
    %c0_6 = arith.constant 0 : index
    %4 = vector.load %arg4[%c0_4, %c0_5, %c0_6] : memref<3x1x128xf32, #tpu.memory_space<vmem>>, vector<1x1x128xf32>
    %5 = vector.shape_cast %4 : vector<1x1x128xf32> to vector<1x128xf32>
    %6 = vector.broadcast %5 : vector<1x128xf32> to vector<16x128xf32>
    %7 = arith.addf %3, %6 : vector<16x128xf32>
    %c1 = arith.constant 1 : index
    %c0_7 = arith.constant 0 : index
    %c0_8 = arith.constant 0 : index
    %8 = vector.load %arg4[%c1, %c0_7, %c0_8] : memref<3x1x128xf32, #tpu.memory_space<vmem>>, vector<1x1x128xf32>
    %9 = vector.shape_cast %8 : vector<1x1x128xf32> to vector<1x128xf32>
    %10 = vector.shape_cast %9 : vector<1x128xf32> to vector<1x128xf32>
    %11 = vector.broadcast %10 : vector<1x128xf32> to vector<2x128xf32>
    %c2 = arith.constant 2 : index
    %c0_9 = arith.constant 0 : index
    %c0_10 = arith.constant 0 : index
    %12 = vector.load %arg4[%c2, %c0_9, %c0_10] : memref<3x1x128xf32, #tpu.memory_space<vmem>>, vector<1x1x128xf32>
    %13 = vector.shape_cast %12 : vector<1x1x128xf32> to vector<1x128xf32>
    %14 = vector.shape_cast %13 : vector<1x128xf32> to vector<1x128xf32>
    %15 = vector.broadcast %14 : vector<1x128xf32> to vector<2x128xf32>
    %c0_11 = arith.constant 0 : index
    %c0_12 = arith.constant 0 : index
    %c0_13 = arith.constant 0 : index
    %16 = vector.load %arg5[%c0_11, %c0_12, %c0_13] : memref<3x1x32xf32, #tpu.memory_space<vmem>>, vector<1x1x32xf32>
    %17 = vector.shape_cast %16 : vector<1x1x32xf32> to vector<1x32xf32>
    %18 = vector.shape_cast %17 : vector<1x32xf32> to vector<1x32xf32>
    %19 = vector.broadcast %18 : vector<1x32xf32> to vector<2x32xf32>
    %c1_14 = arith.constant 1 : index
    %c0_15 = arith.constant 0 : index
    %c0_16 = arith.constant 0 : index
    %20 = vector.load %arg5[%c1_14, %c0_15, %c0_16] : memref<3x1x32xf32, #tpu.memory_space<vmem>>, vector<1x1x32xf32>
    %21 = vector.shape_cast %20 : vector<1x1x32xf32> to vector<1x32xf32>
    %22 = vector.shape_cast %21 : vector<1x32xf32> to vector<1x32xf32>
    %23 = vector.broadcast %22 : vector<1x32xf32> to vector<2x32xf32>
    %c2_17 = arith.constant 2 : index
    %c0_18 = arith.constant 0 : index
    %c0_19 = arith.constant 0 : index
    %24 = vector.load %arg5[%c2_17, %c0_18, %c0_19] : memref<3x1x32xf32, #tpu.memory_space<vmem>>, vector<1x1x32xf32>
    %25 = vector.shape_cast %24 : vector<1x1x32xf32> to vector<1x32xf32>
    %26 = vector.shape_cast %25 : vector<1x32xf32> to vector<1x32xf32>
    %27 = vector.broadcast %26 : vector<1x32xf32> to vector<2x32xf32>
    %c0_20 = arith.constant 0 : index
    %c0_21 = arith.constant 0 : index
    %c0_22 = arith.constant 0 : index
    %28 = vector.load %arg6[%c0_20, %c0_21, %c0_22] : memref<3x2x32xf32, #tpu.memory_space<vmem>>, vector<1x2x32xf32>
    %29 = vector.shape_cast %28 : vector<1x2x32xf32> to vector<2x32xf32>
    %c1_23 = arith.constant 1 : index
    %c0_24 = arith.constant 0 : index
    %c0_25 = arith.constant 0 : index
    %30 = vector.load %arg6[%c1_23, %c0_24, %c0_25] : memref<3x2x32xf32, #tpu.memory_space<vmem>>, vector<1x2x32xf32>
    %31 = vector.shape_cast %30 : vector<1x2x32xf32> to vector<2x32xf32>
    %c2_26 = arith.constant 2 : index
    %c0_27 = arith.constant 0 : index
    %c0_28 = arith.constant 0 : index
    %32 = vector.load %arg6[%c2_26, %c0_27, %c0_28] : memref<3x2x32xf32, #tpu.memory_space<vmem>>, vector<1x2x32xf32>
    %33 = vector.shape_cast %32 : vector<1x2x32xf32> to vector<2x32xf32>
    %34 = vector.extract_strided_slice %7 {offsets = [0, 0], sizes = [2, 128], strides = [1, 1]} : vector<16x128xf32> to vector<2x128xf32>
    %c0_29 = arith.constant 0 : index
    %c0_30 = arith.constant 0 : index
    %c0_31 = arith.constant 0 : index
    %35 = vector.load %arg3[%c0_29, %c0_30, %c0_31] : memref<3x32x128xf32, #tpu.memory_space<vmem>>, vector<1x32x128xf32>
    %36 = vector.shape_cast %35 : vector<1x32x128xf32> to vector<32x128xf32>
    %cst_32 = arith.constant dense<0.000000e+00> : vector<2x128xf32>
    %37 = tpu.matmul %29, %36, %cst_32 {dimension_numbers = #tpu.dot_dimension_numbers<[1], [0], [0], [1], [0, 0, 1, 1], [], []>} : vector<2x32xf32>, vector<32x128xf32>, vector<2x128xf32> -> vector<2x128xf32>
    %38 = arith.addf %34, %37 : vector<2x128xf32>
    %39 = arith.negf %38 : vector<2x128xf32>
    %40 = math.exp %39 : vector<2x128xf32>
    %cst_33 = arith.constant 1.000000e+00 : f32
    %41 = vector.broadcast %cst_33 : f32 to vector<2x128xf32>
    %42 = arith.addf %41, %40 : vector<2x128xf32>
    %43 = arith.divf %41, %42 : vector<2x128xf32>
    %44 = vector.extract_strided_slice %43 {offsets = [0, 0], sizes = [2, 32], strides = [1, 1]} : vector<2x128xf32> to vector<2x32xf32>
    %45 = vector.extract_strided_slice %43 {offsets = [0, 32], sizes = [2, 32], strides = [1, 1]} : vector<2x128xf32> to vector<2x32xf32>
    %46 = vector.extract_strided_slice %34 {offsets = [0, 64], sizes = [2, 32], strides = [1, 1]} : vector<2x128xf32> to vector<2x32xf32>
    %47 = vector.extract_strided_slice %37 {offsets = [0, 64], sizes = [2, 32], strides = [1, 1]} : vector<2x128xf32> to vector<2x32xf32>
    %48 = arith.addf %47, %19 : vector<2x32xf32>
    %49 = arith.mulf %44, %48 : vector<2x32xf32>
    %50 = arith.addf %46, %49 : vector<2x32xf32>
    %51 = math.tanh %50 : vector<2x32xf32>
    %52 = arith.subf %29, %51 : vector<2x32xf32>
    %53 = arith.mulf %45, %52 : vector<2x32xf32>
    %54 = arith.addf %51, %53 : vector<2x32xf32>
    %c1_34 = arith.constant 1 : index
    %c0_35 = arith.constant 0 : index
    %c0_36 = arith.constant 0 : index
    %55 = vector.load %arg2[%c1_34, %c0_35, %c0_36] : memref<3x32x128xf32, #tpu.memory_space<vmem>>, vector<1x32x128xf32>
    %56 = vector.shape_cast %55 : vector<1x32x128xf32> to vector<32x128xf32>
    %cst_37 = arith.constant dense<0.000000e+00> : vector<2x128xf32>
    %57 = tpu.matmul %54, %56, %cst_37 {dimension_numbers = #tpu.dot_dimension_numbers<[1], [0], [0], [1], [0, 0, 1, 1], [], []>} : vector<2x32xf32>, vector<32x128xf32>, vector<2x128xf32> -> vector<2x128xf32>
    %58 = arith.addf %57, %11 : vector<2x128xf32>
    %c1_38 = arith.constant 1 : index
    %c0_39 = arith.constant 0 : index
    %c0_40 = arith.constant 0 : index
    %59 = vector.load %arg3[%c1_38, %c0_39, %c0_40] : memref<3x32x128xf32, #tpu.memory_space<vmem>>, vector<1x32x128xf32>
    %60 = vector.shape_cast %59 : vector<1x32x128xf32> to vector<32x128xf32>
    %cst_41 = arith.constant dense<0.000000e+00> : vector<2x128xf32>
    %61 = tpu.matmul %31, %60, %cst_41 {dimension_numbers = #tpu.dot_dimension_numbers<[1], [0], [0], [1], [0, 0, 1, 1], [], []>} : vector<2x32xf32>, vector<32x128xf32>, vector<2x128xf32> -> vector<2x128xf32>
    %62 = arith.addf %58, %61 : vector<2x128xf32>
    %63 = arith.negf %62 : vector<2x128xf32>
    %64 = math.exp %63 : vector<2x128xf32>
    %cst_42 = arith.constant 1.000000e+00 : f32
    %65 = vector.broadcast %cst_42 : f32 to vector<2x128xf32>
    %66 = arith.addf %65, %64 : vector<2x128xf32>
    %67 = arith.divf %65, %66 : vector<2x128xf32>
    %68 = vector.extract_strided_slice %67 {offsets = [0, 0], sizes = [2, 32], strides = [1, 1]} : vector<2x128xf32> to vector<2x32xf32>
    %69 = vector.extract_strided_slice %67 {offsets = [0, 32], sizes = [2, 32], strides = [1, 1]} : vector<2x128xf32> to vector<2x32xf32>
    %70 = vector.extract_strided_slice %58 {offsets = [0, 64], sizes = [2, 32], strides = [1, 1]} : vector<2x128xf32> to vector<2x32xf32>
    %71 = vector.extract_strided_slice %61 {offsets = [0, 64], sizes = [2, 32], strides = [1, 1]} : vector<2x128xf32> to vector<2x32xf32>
    %72 = arith.addf %71, %23 : vector<2x32xf32>
    %73 = arith.mulf %68, %72 : vector<2x32xf32>
    %74 = arith.addf %70, %73 : vector<2x32xf32>
    %75 = math.tanh %74 : vector<2x32xf32>
    %76 = arith.subf %31, %75 : vector<2x32xf32>
    %77 = arith.mulf %69, %76 : vector<2x32xf32>
    %78 = arith.addf %75, %77 : vector<2x32xf32>
    %79 = vector.extract_strided_slice %7 {offsets = [2, 0], sizes = [2, 128], strides = [1, 1]} : vector<16x128xf32> to vector<2x128xf32>
    %c0_43 = arith.constant 0 : index
    %c0_44 = arith.constant 0 : index
    %c0_45 = arith.constant 0 : index
    %80 = vector.load %arg3[%c0_43, %c0_44, %c0_45] : memref<3x32x128xf32, #tpu.memory_space<vmem>>, vector<1x32x128xf32>
    %81 = vector.shape_cast %80 : vector<1x32x128xf32> to vector<32x128xf32>
    %cst_46 = arith.constant dense<0.000000e+00> : vector<2x128xf32>
    %82 = tpu.matmul %54, %81, %cst_46 {dimension_numbers = #tpu.dot_dimension_numbers<[1], [0], [0], [1], [0, 0, 1, 1], [], []>} : vector<2x32xf32>, vector<32x128xf32>, vector<2x128xf32> -> vector<2x128xf32>
    %83 = arith.addf %79, %82 : vector<2x128xf32>
    %84 = arith.negf %83 : vector<2x128xf32>
    %85 = math.exp %84 : vector<2x128xf32>
    %cst_47 = arith.constant 1.000000e+00 : f32
    %86 = vector.broadcast %cst_47 : f32 to vector<2x128xf32>
    %87 = arith.addf %86, %85 : vector<2x128xf32>
    %88 = arith.divf %86, %87 : vector<2x128xf32>
    %89 = vector.extract_strided_slice %88 {offsets = [0, 0], sizes = [2, 32], strides = [1, 1]} : vector<2x128xf32> to vector<2x32xf32>
    %90 = vector.extract_strided_slice %88 {offsets = [0, 32], sizes = [2, 32], strides = [1, 1]} : vector<2x128xf32> to vector<2x32xf32>
    %91 = vector.extract_strided_slice %79 {offsets = [0, 64], sizes = [2, 32], strides = [1, 1]} : vector<2x128xf32> to vector<2x32xf32>
    %92 = vector.extract_strided_slice %82 {offsets = [0, 64], sizes = [2, 32], strides = [1, 1]} : vector<2x128xf32> to vector<2x32xf32>
    %93 = arith.addf %92, %19 : vector<2x32xf32>
    %94 = arith.mulf %89, %93 : vector<2x32xf32>
    %95 = arith.addf %91, %94 : vector<2x32xf32>
    %96 = math.tanh %95 : vector<2x32xf32>
    %97 = arith.subf %54, %96 : vector<2x32xf32>
    %98 = arith.mulf %90, %97 : vector<2x32xf32>
    %99 = arith.addf %96, %98 : vector<2x32xf32>
    %c2_48 = arith.constant 2 : index
    %c0_49 = arith.constant 0 : index
    %c0_50 = arith.constant 0 : index
    %100 = vector.load %arg2[%c2_48, %c0_49, %c0_50] : memref<3x32x128xf32, #tpu.memory_space<vmem>>, vector<1x32x128xf32>
    %101 = vector.shape_cast %100 : vector<1x32x128xf32> to vector<32x128xf32>
    %cst_51 = arith.constant dense<0.000000e+00> : vector<2x128xf32>
    %102 = tpu.matmul %78, %101, %cst_51 {dimension_numbers = #tpu.dot_dimension_numbers<[1], [0], [0], [1], [0, 0, 1, 1], [], []>} : vector<2x32xf32>, vector<32x128xf32>, vector<2x128xf32> -> vector<2x128xf32>
    %103 = arith.addf %102, %15 : vector<2x128xf32>
    %c2_52 = arith.constant 2 : index
    %c0_53 = arith.constant 0 : index
    %c0_54 = arith.constant 0 : index
    %104 = vector.load %arg3[%c2_52, %c0_53, %c0_54] : memref<3x32x128xf32, #tpu.memory_space<vmem>>, vector<1x32x128xf32>
    %105 = vector.shape_cast %104 : vector<1x32x128xf32> to vector<32x128xf32>
    %cst_55 = arith.constant dense<0.000000e+00> : vector<2x128xf32>
    %106 = tpu.matmul %33, %105, %cst_55 {dimension_numbers = #tpu.dot_dimension_numbers<[1], [0], [0], [1], [0, 0, 1, 1], [], []>} : vector<2x32xf32>, vector<32x128xf32>, vector<2x128xf32> -> vector<2x128xf32>
    %107 = arith.addf %103, %106 : vector<2x128xf32>
    %108 = arith.negf %107 : vector<2x128xf32>
    %109 = math.exp %108 : vector<2x128xf32>
    %cst_56 = arith.constant 1.000000e+00 : f32
    %110 = vector.broadcast %cst_56 : f32 to vector<2x128xf32>
    %111 = arith.addf %110, %109 : vector<2x128xf32>
    %112 = arith.divf %110, %111 : vector<2x128xf32>
    %113 = vector.extract_strided_slice %112 {offsets = [0, 0], sizes = [2, 32], strides = [1, 1]} : vector<2x128xf32> to vector<2x32xf32>
    %114 = vector.extract_strided_slice %112 {offsets = [0, 32], sizes = [2, 32], strides = [1, 1]} : vector<2x128xf32> to vector<2x32xf32>
    %115 = vector.extract_strided_slice %103 {offsets = [0, 64], sizes = [2, 32], strides = [1, 1]} : vector<2x128xf32> to vector<2x32xf32>
    %116 = vector.extract_strided_slice %106 {offsets = [0, 64], sizes = [2, 32], strides = [1, 1]} : vector<2x128xf32> to vector<2x32xf32>
    %117 = arith.addf %116, %27 : vector<2x32xf32>
    %118 = arith.mulf %113, %117 : vector<2x32xf32>
    %119 = arith.addf %115, %118 : vector<2x32xf32>
    %120 = math.tanh %119 : vector<2x32xf32>
    %121 = arith.subf %33, %120 : vector<2x32xf32>
    %122 = arith.mulf %114, %121 : vector<2x32xf32>
    %123 = arith.addf %120, %122 : vector<2x32xf32>
    %c0_57 = arith.constant 0 : index
    %c0_58 = arith.constant 0 : index
    %c0_59 = arith.constant 0 : index
    %124 = vector.load %arg7[%c0_57, %c0_58, %c0_59] : memref<8x2x32xf32, #tpu.memory_space<vmem>>, vector<1x2x32xf32>
    %125 = vector.shape_cast %124 : vector<1x2x32xf32> to vector<2x32xf32>
    %126 = vector.shape_cast %123 : vector<2x32xf32> to vector<1x2x32xf32>
    tpu.vector_store %arg7[%c0_57, %c0_58, %c0_59], %126 {strides = array<i32>} : memref<8x2x32xf32, #tpu.memory_space<vmem>>, vector<1x2x32xf32>,
    %c1_60 = arith.constant 1 : index
    %c0_61 = arith.constant 0 : index
    %c0_62 = arith.constant 0 : index
    %127 = vector.load %arg2[%c1_60, %c0_61, %c0_62] : memref<3x32x128xf32, #tpu.memory_space<vmem>>, vector<1x32x128xf32>
    %128 = vector.shape_cast %127 : vector<1x32x128xf32> to vector<32x128xf32>
    %cst_63 = arith.constant dense<0.000000e+00> : vector<2x128xf32>
    %129 = tpu.matmul %99, %128, %cst_63 {dimension_numbers = #tpu.dot_dimension_numbers<[1], [0], [0], [1], [0, 0, 1, 1], [], []>} : vector<2x32xf32>, vector<32x128xf32>, vector<2x128xf32> -> vector<2x128xf32>
    %130 = arith.addf %129, %11 : vector<2x128xf32>
    %c1_64 = arith.constant 1 : index
    %c0_65 = arith.constant 0 : index
    %c0_66 = arith.constant 0 : index
    %131 = vector.load %arg3[%c1_64, %c0_65, %c0_66] : memref<3x32x128xf32, #tpu.memory_space<vmem>>, vector<1x32x128xf32>
    %132 = vector.shape_cast %131 : vector<1x32x128xf32> to vector<32x128xf32>
    %cst_67 = arith.constant dense<0.000000e+00> : vector<2x128xf32>
    %133 = tpu.matmul %78, %132, %cst_67 {dimension_numbers = #tpu.dot_dimension_numbers<[1], [0], [0], [1], [0, 0, 1, 1], [], []>} : vector<2x32xf32>, vector<32x128xf32>, vector<2x128xf32> -> vector<2x128xf32>
    %134 = arith.addf %130, %133 : vector<2x128xf32>
    %135 = arith.negf %134 : vector<2x128xf32>
    %136 = math.exp %135 : vector<2x128xf32>
    %cst_68 = arith.constant 1.000000e+00 : f32
    %137 = vector.broadcast %cst_68 : f32 to vector<2x128xf32>
    %138 = arith.addf %137, %136 : vector<2x128xf32>
    %139 = arith.divf %137, %138 : vector<2x128xf32>
    %140 = vector.extract_strided_slice %139 {offsets = [0, 0], sizes = [2, 32], strides = [1, 1]} : vector<2x128xf32> to vector<2x32xf32>
    %141 = vector.extract_strided_slice %139 {offsets = [0, 32], sizes = [2, 32], strides = [1, 1]} : vector<2x128xf32> to vector<2x32xf32>
    %142 = vector.extract_strided_slice %130 {offsets = [0, 64], sizes = [2, 32], strides = [1, 1]} : vector<2x128xf32> to vector<2x32xf32>
    %143 = vector.extract_strided_slice %133 {offsets = [0, 64], sizes = [2, 32], strides = [1, 1]} : vector<2x128xf32> to vector<2x32xf32>
    %144 = arith.addf %143, %23 : vector<2x32xf32>
    %145 = arith.mulf %140, %144 : vector<2x32xf32>
    %146 = arith.addf %142, %145 : vector<2x32xf32>
    %147 = math.tanh %146 : vector<2x32xf32>
    %148 = arith.subf %78, %147 : vector<2x32xf32>
    %149 = arith.mulf %141, %148 : vector<2x32xf32>
    %150 = arith.addf %147, %149 : vector<2x32xf32>
    %151 = vector.extract_strided_slice %7 {offsets = [4, 0], sizes = [2, 128], strides = [1, 1]} : vector<16x128xf32> to vector<2x128xf32>
    %c0_69 = arith.constant 0 : index
    %c0_70 = arith.constant 0 : index
    %c0_71 = arith.constant 0 : index
    %152 = vector.load %arg3[%c0_69, %c0_70, %c0_71] : memref<3x32x128xf32, #tpu.memory_space<vmem>>, vector<1x32x128xf32>
    %153 = vector.shape_cast %152 : vector<1x32x128xf32> to vector<32x128xf32>
    %cst_72 = arith.constant dense<0.000000e+00> : vector<2x128xf32>
    %154 = tpu.matmul %99, %153, %cst_72 {dimension_numbers = #tpu.dot_dimension_numbers<[1], [0], [0], [1], [0, 0, 1, 1], [], []>} : vector<2x32xf32>, vector<32x128xf32>, vector<2x128xf32> -> vector<2x128xf32>
    %155 = arith.addf %151, %154 : vector<2x128xf32>
    %156 = arith.negf %155 : vector<2x128xf32>
    %157 = math.exp %156 : vector<2x128xf32>
    %cst_73 = arith.constant 1.000000e+00 : f32
    %158 = vector.broadcast %cst_73 : f32 to vector<2x128xf32>
    %159 = arith.addf %158, %157 : vector<2x128xf32>
    %160 = arith.divf %158, %159 : vector<2x128xf32>
    %161 = vector.extract_strided_slice %160 {offsets = [0, 0], sizes = [2, 32], strides = [1, 1]} : vector<2x128xf32> to vector<2x32xf32>
    %162 = vector.extract_strided_slice %160 {offsets = [0, 32], sizes = [2, 32], strides = [1, 1]} : vector<2x128xf32> to vector<2x32xf32>
    %163 = vector.extract_strided_slice %151 {offsets = [0, 64], sizes = [2, 32], strides = [1, 1]} : vector<2x128xf32> to vector<2x32xf32>
    %164 = vector.extract_strided_slice %154 {offsets = [0, 64], sizes = [2, 32], strides = [1, 1]} : vector<2x128xf32> to vector<2x32xf32>
    %165 = arith.addf %164, %19 : vector<2x32xf32>
    %166 = arith.mulf %161, %165 : vector<2x32xf32>
    %167 = arith.addf %163, %166 : vector<2x32xf32>
    %168 = math.tanh %167 : vector<2x32xf32>
    %169 = arith.subf %99, %168 : vector<2x32xf32>
    %170 = arith.mulf %162, %169 : vector<2x32xf32>
    %171 = arith.addf %168, %170 : vector<2x32xf32>
    %c2_74 = arith.constant 2 : index
    %c0_75 = arith.constant 0 : index
    %c0_76 = arith.constant 0 : index
    %172 = vector.load %arg2[%c2_74, %c0_75, %c0_76] : memref<3x32x128xf32, #tpu.memory_space<vmem>>, vector<1x32x128xf32>
    %173 = vector.shape_cast %172 : vector<1x32x128xf32> to vector<32x128xf32>
    %cst_77 = arith.constant dense<0.000000e+00> : vector<2x128xf32>
    %174 = tpu.matmul %150, %173, %cst_77 {dimension_numbers = #tpu.dot_dimension_numbers<[1], [0], [0], [1], [0, 0, 1, 1], [], []>} : vector<2x32xf32>, vector<32x128xf32>, vector<2x128xf32> -> vector<2x128xf32>
    %175 = arith.addf %174, %15 : vector<2x128xf32>
    %c2_78 = arith.constant 2 : index
    %c0_79 = arith.constant 0 : index
    %c0_80 = arith.constant 0 : index
    %176 = vector.load %arg3[%c2_78, %c0_79, %c0_80] : memref<3x32x128xf32, #tpu.memory_space<vmem>>, vector<1x32x128xf32>
    %177 = vector.shape_cast %176 : vector<1x32x128xf32> to vector<32x128xf32>
    %cst_81 = arith.constant dense<0.000000e+00> : vector<2x128xf32>
    %178 = tpu.matmul %123, %177, %cst_81 {dimension_numbers = #tpu.dot_dimension_numbers<[1], [0], [0], [1], [0, 0, 1, 1], [], []>} : vector<2x32xf32>, vector<32x128xf32>, vector<2x128xf32> -> vector<2x128xf32>
    %179 = arith.addf %175, %178 : vector<2x128xf32>
    %180 = arith.negf %179 : vector<2x128xf32>
    %181 = math.exp %180 : vector<2x128xf32>
    %cst_82 = arith.constant 1.000000e+00 : f32
    %182 = vector.broadcast %cst_82 : f32 to vector<2x128xf32>
    %183 = arith.addf %182, %181 : vector<2x128xf32>
    %184 = arith.divf %182, %183 : vector<2x128xf32>
    %185 = vector.extract_strided_slice %184 {offsets = [0, 0], sizes = [2, 32], strides = [1, 1]} : vector<2x128xf32> to vector<2x32xf32>
    %186 = vector.extract_strided_slice %184 {offsets = [0, 32], sizes = [2, 32], strides = [1, 1]} : vector<2x128xf32> to vector<2x32xf32>
    %187 = vector.extract_strided_slice %175 {offsets = [0, 64], sizes = [2, 32], strides = [1, 1]} : vector<2x128xf32> to vector<2x32xf32>
    %188 = vector.extract_strided_slice %178 {offsets = [0, 64], sizes = [2, 32], strides = [1, 1]} : vector<2x128xf32> to vector<2x32xf32>
    %189 = arith.addf %188, %27 : vector<2x32xf32>
    %190 = arith.mulf %185, %189 : vector<2x32xf32>
    %191 = arith.addf %187, %190 : vector<2x32xf32>
    %192 = math.tanh %191 : vector<2x32xf32>
    %193 = arith.subf %123, %192 : vector<2x32xf32>
    %194 = arith.mulf %186, %193 : vector<2x32xf32>
    %195 = arith.addf %192, %194 : vector<2x32xf32>
    %c1_83 = arith.constant 1 : index
    %c0_84 = arith.constant 0 : index
    %c0_85 = arith.constant 0 : index
    %196 = vector.load %arg7[%c1_83, %c0_84, %c0_85] : memref<8x2x32xf32, #tpu.memory_space<vmem>>, vector<1x2x32xf32>
    %197 = vector.shape_cast %196 : vector<1x2x32xf32> to vector<2x32xf32>
    %198 = vector.shape_cast %195 : vector<2x32xf32> to vector<1x2x32xf32>
    tpu.vector_store %arg7[%c1_83, %c0_84, %c0_85], %198 {strides = array<i32>} : memref<8x2x32xf32, #tpu.memory_space<vmem>>, vector<1x2x32xf32>,
    %c1_86 = arith.constant 1 : index
    %c0_87 = arith.constant 0 : index
    %c0_88 = arith.constant 0 : index
    %199 = vector.load %arg2[%c1_86, %c0_87, %c0_88] : memref<3x32x128xf32, #tpu.memory_space<vmem>>, vector<1x32x128xf32>
    %200 = vector.shape_cast %199 : vector<1x32x128xf32> to vector<32x128xf32>
    %cst_89 = arith.constant dense<0.000000e+00> : vector<2x128xf32>
    %201 = tpu.matmul %171, %200, %cst_89 {dimension_numbers = #tpu.dot_dimension_numbers<[1], [0], [0], [1], [0, 0, 1, 1], [], []>} : vector<2x32xf32>, vector<32x128xf32>, vector<2x128xf32> -> vector<2x128xf32>
    %202 = arith.addf %201, %11 : vector<2x128xf32>
    %c1_90 = arith.constant 1 : index
    %c0_91 = arith.constant 0 : index
    %c0_92 = arith.constant 0 : index
    %203 = vector.load %arg3[%c1_90, %c0_91, %c0_92] : memref<3x32x128xf32, #tpu.memory_space<vmem>>, vector<1x32x128xf32>
    %204 = vector.shape_cast %203 : vector<1x32x128xf32> to vector<32x128xf32>
    %cst_93 = arith.constant dense<0.000000e+00> : vector<2x128xf32>
    %205 = tpu.matmul %150, %204, %cst_93 {dimension_numbers = #tpu.dot_dimension_numbers<[1], [0], [0], [1], [0, 0, 1, 1], [], []>} : vector<2x32xf32>, vector<32x128xf32>, vector<2x128xf32> -> vector<2x128xf32>
    %206 = arith.addf %202, %205 : vector<2x128xf32>
    %207 = arith.negf %206 : vector<2x128xf32>
    %208 = math.exp %207 : vector<2x128xf32>
    %cst_94 = arith.constant 1.000000e+00 : f32
    %209 = vector.broadcast %cst_94 : f32 to vector<2x128xf32>
    %210 = arith.addf %209, %208 : vector<2x128xf32>
    %211 = arith.divf %209, %210 : vector<2x128xf32>
    %212 = vector.extract_strided_slice %211 {offsets = [0, 0], sizes = [2, 32], strides = [1, 1]} : vector<2x128xf32> to vector<2x32xf32>
    %213 = vector.extract_strided_slice %211 {offsets = [0, 32], sizes = [2, 32], strides = [1, 1]} : vector<2x128xf32> to vector<2x32xf32>
    %214 = vector.extract_strided_slice %202 {offsets = [0, 64], sizes = [2, 32], strides = [1, 1]} : vector<2x128xf32> to vector<2x32xf32>
    %215 = vector.extract_strided_slice %205 {offsets = [0, 64], sizes = [2, 32], strides = [1, 1]} : vector<2x128xf32> to vector<2x32xf32>
    %216 = arith.addf %215, %23 : vector<2x32xf32>
    %217 = arith.mulf %212, %216 : vector<2x32xf32>
    %218 = arith.addf %214, %217 : vector<2x32xf32>
    %219 = math.tanh %218 : vector<2x32xf32>
    %220 = arith.subf %150, %219 : vector<2x32xf32>
    %221 = arith.mulf %213, %220 : vector<2x32xf32>
    %222 = arith.addf %219, %221 : vector<2x32xf32>
    %223 = vector.extract_strided_slice %7 {offsets = [6, 0], sizes = [2, 128], strides = [1, 1]} : vector<16x128xf32> to vector<2x128xf32>
    %c0_95 = arith.constant 0 : index
    %c0_96 = arith.constant 0 : index
    %c0_97 = arith.constant 0 : index
    %224 = vector.load %arg3[%c0_95, %c0_96, %c0_97] : memref<3x32x128xf32, #tpu.memory_space<vmem>>, vector<1x32x128xf32>
    %225 = vector.shape_cast %224 : vector<1x32x128xf32> to vector<32x128xf32>
    %cst_98 = arith.constant dense<0.000000e+00> : vector<2x128xf32>
    %226 = tpu.matmul %171, %225, %cst_98 {dimension_numbers = #tpu.dot_dimension_numbers<[1], [0], [0], [1], [0, 0, 1, 1], [], []>} : vector<2x32xf32>, vector<32x128xf32>, vector<2x128xf32> -> vector<2x128xf32>
    %227 = arith.addf %223, %226 : vector<2x128xf32>
    %228 = arith.negf %227 : vector<2x128xf32>
    %229 = math.exp %228 : vector<2x128xf32>
    %cst_99 = arith.constant 1.000000e+00 : f32
    %230 = vector.broadcast %cst_99 : f32 to vector<2x128xf32>
    %231 = arith.addf %230, %229 : vector<2x128xf32>
    %232 = arith.divf %230, %231 : vector<2x128xf32>
    %233 = vector.extract_strided_slice %232 {offsets = [0, 0], sizes = [2, 32], strides = [1, 1]} : vector<2x128xf32> to vector<2x32xf32>
    %234 = vector.extract_strided_slice %232 {offsets = [0, 32], sizes = [2, 32], strides = [1, 1]} : vector<2x128xf32> to vector<2x32xf32>
    %235 = vector.extract_strided_slice %223 {offsets = [0, 64], sizes = [2, 32], strides = [1, 1]} : vector<2x128xf32> to vector<2x32xf32>
    %236 = vector.extract_strided_slice %226 {offsets = [0, 64], sizes = [2, 32], strides = [1, 1]} : vector<2x128xf32> to vector<2x32xf32>
    %237 = arith.addf %236, %19 : vector<2x32xf32>
    %238 = arith.mulf %233, %237 : vector<2x32xf32>
    %239 = arith.addf %235, %238 : vector<2x32xf32>
    %240 = math.tanh %239 : vector<2x32xf32>
    %241 = arith.subf %171, %240 : vector<2x32xf32>
    %242 = arith.mulf %234, %241 : vector<2x32xf32>
    %243 = arith.addf %240, %242 : vector<2x32xf32>
    %c2_100 = arith.constant 2 : index
    %c0_101 = arith.constant 0 : index
    %c0_102 = arith.constant 0 : index
    %244 = vector.load %arg2[%c2_100, %c0_101, %c0_102] : memref<3x32x128xf32, #tpu.memory_space<vmem>>, vector<1x32x128xf32>
    %245 = vector.shape_cast %244 : vector<1x32x128xf32> to vector<32x128xf32>
    %cst_103 = arith.constant dense<0.000000e+00> : vector<2x128xf32>
    %246 = tpu.matmul %222, %245, %cst_103 {dimension_numbers = #tpu.dot_dimension_numbers<[1], [0], [0], [1], [0, 0, 1, 1], [], []>} : vector<2x32xf32>, vector<32x128xf32>, vector<2x128xf32> -> vector<2x128xf32>
    %247 = arith.addf %246, %15 : vector<2x128xf32>
    %c2_104 = arith.constant 2 : index
    %c0_105 = arith.constant 0 : index
    %c0_106 = arith.constant 0 : index
    %248 = vector.load %arg3[%c2_104, %c0_105, %c0_106] : memref<3x32x128xf32, #tpu.memory_space<vmem>>, vector<1x32x128xf32>
    %249 = vector.shape_cast %248 : vector<1x32x128xf32> to vector<32x128xf32>
    %cst_107 = arith.constant dense<0.000000e+00> : vector<2x128xf32>
    %250 = tpu.matmul %195, %249, %cst_107 {dimension_numbers = #tpu.dot_dimension_numbers<[1], [0], [0], [1], [0, 0, 1, 1], [], []>} : vector<2x32xf32>, vector<32x128xf32>, vector<2x128xf32> -> vector<2x128xf32>
    %251 = arith.addf %247, %250 : vector<2x128xf32>
    %252 = arith.negf %251 : vector<2x128xf32>
    %253 = math.exp %252 : vector<2x128xf32>
    %cst_108 = arith.constant 1.000000e+00 : f32
    %254 = vector.broadcast %cst_108 : f32 to vector<2x128xf32>
    %255 = arith.addf %254, %253 : vector<2x128xf32>
    %256 = arith.divf %254, %255 : vector<2x128xf32>
    %257 = vector.extract_strided_slice %256 {offsets = [0, 0], sizes = [2, 32], strides = [1, 1]} : vector<2x128xf32> to vector<2x32xf32>
    %258 = vector.extract_strided_slice %256 {offsets = [0, 32], sizes = [2, 32], strides = [1, 1]} : vector<2x128xf32> to vector<2x32xf32>
    %259 = vector.extract_strided_slice %247 {offsets = [0, 64], sizes = [2, 32], strides = [1, 1]} : vector<2x128xf32> to vector<2x32xf32>
    %260 = vector.extract_strided_slice %250 {offsets = [0, 64], sizes = [2, 32], strides = [1, 1]} : vector<2x128xf32> to vector<2x32xf32>
    %261 = arith.addf %260, %27 : vector<2x32xf32>
    %262 = arith.mulf %257, %261 : vector<2x32xf32>
    %263 = arith.addf %259, %262 : vector<2x32xf32>
    %264 = math.tanh %263 : vector<2x32xf32>
    %265 = arith.subf %195, %264 : vector<2x32xf32>
    %266 = arith.mulf %258, %265 : vector<2x32xf32>
    %267 = arith.addf %264, %266 : vector<2x32xf32>
    %c2_109 = arith.constant 2 : index
    %c0_110 = arith.constant 0 : index
    %c0_111 = arith.constant 0 : index
    %268 = vector.load %arg7[%c2_109, %c0_110, %c0_111] : memref<8x2x32xf32, #tpu.memory_space<vmem>>, vector<1x2x32xf32>
    %269 = vector.shape_cast %268 : vector<1x2x32xf32> to vector<2x32xf32>
    %270 = vector.shape_cast %267 : vector<2x32xf32> to vector<1x2x32xf32>
    tpu.vector_store %arg7[%c2_109, %c0_110, %c0_111], %270 {strides = array<i32>} : memref<8x2x32xf32, #tpu.memory_space<vmem>>, vector<1x2x32xf32>,
    %c1_112 = arith.constant 1 : index
    %c0_113 = arith.constant 0 : index
    %c0_114 = arith.constant 0 : index
    %271 = vector.load %arg2[%c1_112, %c0_113, %c0_114] : memref<3x32x128xf32, #tpu.memory_space<vmem>>, vector<1x32x128xf32>
    %272 = vector.shape_cast %271 : vector<1x32x128xf32> to vector<32x128xf32>
    %cst_115 = arith.constant dense<0.000000e+00> : vector<2x128xf32>
    %273 = tpu.matmul %243, %272, %cst_115 {dimension_numbers = #tpu.dot_dimension_numbers<[1], [0], [0], [1], [0, 0, 1, 1], [], []>} : vector<2x32xf32>, vector<32x128xf32>, vector<2x128xf32> -> vector<2x128xf32>
    %274 = arith.addf %273, %11 : vector<2x128xf32>
    %c1_116 = arith.constant 1 : index
    %c0_117 = arith.constant 0 : index
    %c0_118 = arith.constant 0 : index
    %275 = vector.load %arg3[%c1_116, %c0_117, %c0_118] : memref<3x32x128xf32, #tpu.memory_space<vmem>>, vector<1x32x128xf32>
    %276 = vector.shape_cast %275 : vector<1x32x128xf32> to vector<32x128xf32>
    %cst_119 = arith.constant dense<0.000000e+00> : vector<2x128xf32>
    %277 = tpu.matmul %222, %276, %cst_119 {dimension_numbers = #tpu.dot_dimension_numbers<[1], [0], [0], [1], [0, 0, 1, 1], [], []>} : vector<2x32xf32>, vector<32x128xf32>, vector<2x128xf32> -> vector<2x128xf32>
    %278 = arith.addf %274, %277 : vector<2x128xf32>
    %279 = arith.negf %278 : vector<2x128xf32>
    %280 = math.exp %279 : vector<2x128xf32>
    %cst_120 = arith.constant 1.000000e+00 : f32
    %281 = vector.broadcast %cst_120 : f32 to vector<2x128xf32>
    %282 = arith.addf %281, %280 : vector<2x128xf32>
    %283 = arith.divf %281, %282 : vector<2x128xf32>
    %284 = vector.extract_strided_slice %283 {offsets = [0, 0], sizes = [2, 32], strides = [1, 1]} : vector<2x128xf32> to vector<2x32xf32>
    %285 = vector.extract_strided_slice %283 {offsets = [0, 32], sizes = [2, 32], strides = [1, 1]} : vector<2x128xf32> to vector<2x32xf32>
    %286 = vector.extract_strided_slice %274 {offsets = [0, 64], sizes = [2, 32], strides = [1, 1]} : vector<2x128xf32> to vector<2x32xf32>
    %287 = vector.extract_strided_slice %277 {offsets = [0, 64], sizes = [2, 32], strides = [1, 1]} : vector<2x128xf32> to vector<2x32xf32>
    %288 = arith.addf %287, %23 : vector<2x32xf32>
    %289 = arith.mulf %284, %288 : vector<2x32xf32>
    %290 = arith.addf %286, %289 : vector<2x32xf32>
    %291 = math.tanh %290 : vector<2x32xf32>
    %292 = arith.subf %222, %291 : vector<2x32xf32>
    %293 = arith.mulf %285, %292 : vector<2x32xf32>
    %294 = arith.addf %291, %293 : vector<2x32xf32>
    %295 = vector.extract_strided_slice %7 {offsets = [8, 0], sizes = [2, 128], strides = [1, 1]} : vector<16x128xf32> to vector<2x128xf32>
    %c0_121 = arith.constant 0 : index
    %c0_122 = arith.constant 0 : index
    %c0_123 = arith.constant 0 : index
    %296 = vector.load %arg3[%c0_121, %c0_122, %c0_123] : memref<3x32x128xf32, #tpu.memory_space<vmem>>, vector<1x32x128xf32>
    %297 = vector.shape_cast %296 : vector<1x32x128xf32> to vector<32x128xf32>
    %cst_124 = arith.constant dense<0.000000e+00> : vector<2x128xf32>
    %298 = tpu.matmul %243, %297, %cst_124 {dimension_numbers = #tpu.dot_dimension_numbers<[1], [0], [0], [1], [0, 0, 1, 1], [], []>} : vector<2x32xf32>, vector<32x128xf32>, vector<2x128xf32> -> vector<2x128xf32>
    %299 = arith.addf %295, %298 : vector<2x128xf32>
    %300 = arith.negf %299 : vector<2x128xf32>
    %301 = math.exp %300 : vector<2x128xf32>
    %cst_125 = arith.constant 1.000000e+00 : f32
    %302 = vector.broadcast %cst_125 : f32 to vector<2x128xf32>
    %303 = arith.addf %302, %301 : vector<2x128xf32>
    %304 = arith.divf %302, %303 : vector<2x128xf32>
    %305 = vector.extract_strided_slice %304 {offsets = [0, 0], sizes = [2, 32], strides = [1, 1]} : vector<2x128xf32> to vector<2x32xf32>
    %306 = vector.extract_strided_slice %304 {offsets = [0, 32], sizes = [2, 32], strides = [1, 1]} : vector<2x128xf32> to vector<2x32xf32>
    %307 = vector.extract_strided_slice %295 {offsets = [0, 64], sizes = [2, 32], strides = [1, 1]} : vector<2x128xf32> to vector<2x32xf32>
    %308 = vector.extract_strided_slice %298 {offsets = [0, 64], sizes = [2, 32], strides = [1, 1]} : vector<2x128xf32> to vector<2x32xf32>
    %309 = arith.addf %308, %19 : vector<2x32xf32>
    %310 = arith.mulf %305, %309 : vector<2x32xf32>
    %311 = arith.addf %307, %310 : vector<2x32xf32>
    %312 = math.tanh %311 : vector<2x32xf32>
    %313 = arith.subf %243, %312 : vector<2x32xf32>
    %314 = arith.mulf %306, %313 : vector<2x32xf32>
    %315 = arith.addf %312, %314 : vector<2x32xf32>
    %c2_126 = arith.constant 2 : index
    %c0_127 = arith.constant 0 : index
    %c0_128 = arith.constant 0 : index
    %316 = vector.load %arg2[%c2_126, %c0_127, %c0_128] : memref<3x32x128xf32, #tpu.memory_space<vmem>>, vector<1x32x128xf32>
    %317 = vector.shape_cast %316 : vector<1x32x128xf32> to vector<32x128xf32>
    %cst_129 = arith.constant dense<0.000000e+00> : vector<2x128xf32>
    %318 = tpu.matmul %294, %317, %cst_129 {dimension_numbers = #tpu.dot_dimension_numbers<[1], [0], [0], [1], [0, 0, 1, 1], [], []>} : vector<2x32xf32>, vector<32x128xf32>, vector<2x128xf32> -> vector<2x128xf32>
    %319 = arith.addf %318, %15 : vector<2x128xf32>
    %c2_130 = arith.constant 2 : index
    %c0_131 = arith.constant 0 : index
    %c0_132 = arith.constant 0 : index
    %320 = vector.load %arg3[%c2_130, %c0_131, %c0_132] : memref<3x32x128xf32, #tpu.memory_space<vmem>>, vector<1x32x128xf32>
    %321 = vector.shape_cast %320 : vector<1x32x128xf32> to vector<32x128xf32>
    %cst_133 = arith.constant dense<0.000000e+00> : vector<2x128xf32>
    %322 = tpu.matmul %267, %321, %cst_133 {dimension_numbers = #tpu.dot_dimension_numbers<[1], [0], [0], [1], [0, 0, 1, 1], [], []>} : vector<2x32xf32>, vector<32x128xf32>, vector<2x128xf32> -> vector<2x128xf32>
    %323 = arith.addf %319, %322 : vector<2x128xf32>
    %324 = arith.negf %323 : vector<2x128xf32>
    %325 = math.exp %324 : vector<2x128xf32>
    %cst_134 = arith.constant 1.000000e+00 : f32
    %326 = vector.broadcast %cst_134 : f32 to vector<2x128xf32>
    %327 = arith.addf %326, %325 : vector<2x128xf32>
    %328 = arith.divf %326, %327 : vector<2x128xf32>
    %329 = vector.extract_strided_slice %328 {offsets = [0, 0], sizes = [2, 32], strides = [1, 1]} : vector<2x128xf32> to vector<2x32xf32>
    %330 = vector.extract_strided_slice %328 {offsets = [0, 32], sizes = [2, 32], strides = [1, 1]} : vector<2x128xf32> to vector<2x32xf32>
    %331 = vector.extract_strided_slice %319 {offsets = [0, 64], sizes = [2, 32], strides = [1, 1]} : vector<2x128xf32> to vector<2x32xf32>
    %332 = vector.extract_strided_slice %322 {offsets = [0, 64], sizes = [2, 32], strides = [1, 1]} : vector<2x128xf32> to vector<2x32xf32>
    %333 = arith.addf %332, %27 : vector<2x32xf32>
    %334 = arith.mulf %329, %333 : vector<2x32xf32>
    %335 = arith.addf %331, %334 : vector<2x32xf32>
    %336 = math.tanh %335 : vector<2x32xf32>
    %337 = arith.subf %267, %336 : vector<2x32xf32>
    %338 = arith.mulf %330, %337 : vector<2x32xf32>
    %339 = arith.addf %336, %338 : vector<2x32xf32>
    %c3 = arith.constant 3 : index
    %c0_135 = arith.constant 0 : index
    %c0_136 = arith.constant 0 : index
    %340 = vector.load %arg7[%c3, %c0_135, %c0_136] : memref<8x2x32xf32, #tpu.memory_space<vmem>>, vector<1x2x32xf32>
    %341 = vector.shape_cast %340 : vector<1x2x32xf32> to vector<2x32xf32>
    %342 = vector.shape_cast %339 : vector<2x32xf32> to vector<1x2x32xf32>
    tpu.vector_store %arg7[%c3, %c0_135, %c0_136], %342 {strides = array<i32>} : memref<8x2x32xf32, #tpu.memory_space<vmem>>, vector<1x2x32xf32>,
    %c1_137 = arith.constant 1 : index
    %c0_138 = arith.constant 0 : index
    %c0_139 = arith.constant 0 : index
    %343 = vector.load %arg2[%c1_137, %c0_138, %c0_139] : memref<3x32x128xf32, #tpu.memory_space<vmem>>, vector<1x32x128xf32>
    %344 = vector.shape_cast %343 : vector<1x32x128xf32> to vector<32x128xf32>
    %cst_140 = arith.constant dense<0.000000e+00> : vector<2x128xf32>
    %345 = tpu.matmul %315, %344, %cst_140 {dimension_numbers = #tpu.dot_dimension_numbers<[1], [0], [0], [1], [0, 0, 1, 1], [], []>} : vector<2x32xf32>, vector<32x128xf32>, vector<2x128xf32> -> vector<2x128xf32>
    %346 = arith.addf %345, %11 : vector<2x128xf32>
    %c1_141 = arith.constant 1 : index
    %c0_142 = arith.constant 0 : index
    %c0_143 = arith.constant 0 : index
    %347 = vector.load %arg3[%c1_141, %c0_142, %c0_143] : memref<3x32x128xf32, #tpu.memory_space<vmem>>, vector<1x32x128xf32>
    %348 = vector.shape_cast %347 : vector<1x32x128xf32> to vector<32x128xf32>
    %cst_144 = arith.constant dense<0.000000e+00> : vector<2x128xf32>
    %349 = tpu.matmul %294, %348, %cst_144 {dimension_numbers = #tpu.dot_dimension_numbers<[1], [0], [0], [1], [0, 0, 1, 1], [], []>} : vector<2x32xf32>, vector<32x128xf32>, vector<2x128xf32> -> vector<2x128xf32>
    %350 = arith.addf %346, %349 : vector<2x128xf32>
    %351 = arith.negf %350 : vector<2x128xf32>
    %352 = math.exp %351 : vector<2x128xf32>
    %cst_145 = arith.constant 1.000000e+00 : f32
    %353 = vector.broadcast %cst_145 : f32 to vector<2x128xf32>
    %354 = arith.addf %353, %352 : vector<2x128xf32>
    %355 = arith.divf %353, %354 : vector<2x128xf32>
    %356 = vector.extract_strided_slice %355 {offsets = [0, 0], sizes = [2, 32], strides = [1, 1]} : vector<2x128xf32> to vector<2x32xf32>
    %357 = vector.extract_strided_slice %355 {offsets = [0, 32], sizes = [2, 32], strides = [1, 1]} : vector<2x128xf32> to vector<2x32xf32>
    %358 = vector.extract_strided_slice %346 {offsets = [0, 64], sizes = [2, 32], strides = [1, 1]} : vector<2x128xf32> to vector<2x32xf32>
    %359 = vector.extract_strided_slice %349 {offsets = [0, 64], sizes = [2, 32], strides = [1, 1]} : vector<2x128xf32> to vector<2x32xf32>
    %360 = arith.addf %359, %23 : vector<2x32xf32>
    %361 = arith.mulf %356, %360 : vector<2x32xf32>
    %362 = arith.addf %358, %361 : vector<2x32xf32>
    %363 = math.tanh %362 : vector<2x32xf32>
    %364 = arith.subf %294, %363 : vector<2x32xf32>
    %365 = arith.mulf %357, %364 : vector<2x32xf32>
    %366 = arith.addf %363, %365 : vector<2x32xf32>
    %367 = vector.extract_strided_slice %7 {offsets = [10, 0], sizes = [2, 128], strides = [1, 1]} : vector<16x128xf32> to vector<2x128xf32>
    %c0_146 = arith.constant 0 : index
    %c0_147 = arith.constant 0 : index
    %c0_148 = arith.constant 0 : index
    %368 = vector.load %arg3[%c0_146, %c0_147, %c0_148] : memref<3x32x128xf32, #tpu.memory_space<vmem>>, vector<1x32x128xf32>
    %369 = vector.shape_cast %368 : vector<1x32x128xf32> to vector<32x128xf32>
    %cst_149 = arith.constant dense<0.000000e+00> : vector<2x128xf32>
    %370 = tpu.matmul %315, %369, %cst_149 {dimension_numbers = #tpu.dot_dimension_numbers<[1], [0], [0], [1], [0, 0, 1, 1], [], []>} : vector<2x32xf32>, vector<32x128xf32>, vector<2x128xf32> -> vector<2x128xf32>
    %371 = arith.addf %367, %370 : vector<2x128xf32>
    %372 = arith.negf %371 : vector<2x128xf32>
    %373 = math.exp %372 : vector<2x128xf32>
    %cst_150 = arith.constant 1.000000e+00 : f32
    %374 = vector.broadcast %cst_150 : f32 to vector<2x128xf32>
    %375 = arith.addf %374, %373 : vector<2x128xf32>
    %376 = arith.divf %374, %375 : vector<2x128xf32>
    %377 = vector.extract_strided_slice %376 {offsets = [0, 0], sizes = [2, 32], strides = [1, 1]} : vector<2x128xf32> to vector<2x32xf32>
    %378 = vector.extract_strided_slice %376 {offsets = [0, 32], sizes = [2, 32], strides = [1, 1]} : vector<2x128xf32> to vector<2x32xf32>
    %379 = vector.extract_strided_slice %367 {offsets = [0, 64], sizes = [2, 32], strides = [1, 1]} : vector<2x128xf32> to vector<2x32xf32>
    %380 = vector.extract_strided_slice %370 {offsets = [0, 64], sizes = [2, 32], strides = [1, 1]} : vector<2x128xf32> to vector<2x32xf32>
    %381 = arith.addf %380, %19 : vector<2x32xf32>
    %382 = arith.mulf %377, %381 : vector<2x32xf32>
    %383 = arith.addf %379, %382 : vector<2x32xf32>
    %384 = math.tanh %383 : vector<2x32xf32>
    %385 = arith.subf %315, %384 : vector<2x32xf32>
    %386 = arith.mulf %378, %385 : vector<2x32xf32>
    %387 = arith.addf %384, %386 : vector<2x32xf32>
    %c2_151 = arith.constant 2 : index
    %c0_152 = arith.constant 0 : index
    %c0_153 = arith.constant 0 : index
    %388 = vector.load %arg2[%c2_151, %c0_152, %c0_153] : memref<3x32x128xf32, #tpu.memory_space<vmem>>, vector<1x32x128xf32>
    %389 = vector.shape_cast %388 : vector<1x32x128xf32> to vector<32x128xf32>
    %cst_154 = arith.constant dense<0.000000e+00> : vector<2x128xf32>
    %390 = tpu.matmul %366, %389, %cst_154 {dimension_numbers = #tpu.dot_dimension_numbers<[1], [0], [0], [1], [0, 0, 1, 1], [], []>} : vector<2x32xf32>, vector<32x128xf32>, vector<2x128xf32> -> vector<2x128xf32>
    %391 = arith.addf %390, %15 : vector<2x128xf32>
    %c2_155 = arith.constant 2 : index
    %c0_156 = arith.constant 0 : index
    %c0_157 = arith.constant 0 : index
    %392 = vector.load %arg3[%c2_155, %c0_156, %c0_157] : memref<3x32x128xf32, #tpu.memory_space<vmem>>, vector<1x32x128xf32>
    %393 = vector.shape_cast %392 : vector<1x32x128xf32> to vector<32x128xf32>
    %cst_158 = arith.constant dense<0.000000e+00> : vector<2x128xf32>
    %394 = tpu.matmul %339, %393, %cst_158 {dimension_numbers = #tpu.dot_dimension_numbers<[1], [0], [0], [1], [0, 0, 1, 1], [], []>} : vector<2x32xf32>, vector<32x128xf32>, vector<2x128xf32> -> vector<2x128xf32>
    %395 = arith.addf %391, %394 : vector<2x128xf32>
    %396 = arith.negf %395 : vector<2x128xf32>
    %397 = math.exp %396 : vector<2x128xf32>
    %cst_159 = arith.constant 1.000000e+00 : f32
    %398 = vector.broadcast %cst_159 : f32 to vector<2x128xf32>
    %399 = arith.addf %398, %397 : vector<2x128xf32>
    %400 = arith.divf %398, %399 : vector<2x128xf32>
    %401 = vector.extract_strided_slice %400 {offsets = [0, 0], sizes = [2, 32], strides = [1, 1]} : vector<2x128xf32> to vector<2x32xf32>
    %402 = vector.extract_strided_slice %400 {offsets = [0, 32], sizes = [2, 32], strides = [1, 1]} : vector<2x128xf32> to vector<2x32xf32>
    %403 = vector.extract_strided_slice %391 {offsets = [0, 64], sizes = [2, 32], strides = [1, 1]} : vector<2x128xf32> to vector<2x32xf32>
    %404 = vector.extract_strided_slice %394 {offsets = [0, 64], sizes = [2, 32], strides = [1, 1]} : vector<2x128xf32> to vector<2x32xf32>
    %405 = arith.addf %404, %27 : vector<2x32xf32>
    %406 = arith.mulf %401, %405 : vector<2x32xf32>
    %407 = arith.addf %403, %406 : vector<2x32xf32>
    %408 = math.tanh %407 : vector<2x32xf32>
    %409 = arith.subf %339, %408 : vector<2x32xf32>
    %410 = arith.mulf %402, %409 : vector<2x32xf32>
    %411 = arith.addf %408, %410 : vector<2x32xf32>
    %c4 = arith.constant 4 : index
    %c0_160 = arith.constant 0 : index
    %c0_161 = arith.constant 0 : index
    %412 = vector.load %arg7[%c4, %c0_160, %c0_161] : memref<8x2x32xf32, #tpu.memory_space<vmem>>, vector<1x2x32xf32>
    %413 = vector.shape_cast %412 : vector<1x2x32xf32> to vector<2x32xf32>
    %414 = vector.shape_cast %411 : vector<2x32xf32> to vector<1x2x32xf32>
    tpu.vector_store %arg7[%c4, %c0_160, %c0_161], %414 {strides = array<i32>} : memref<8x2x32xf32, #tpu.memory_space<vmem>>, vector<1x2x32xf32>,
    %c1_162 = arith.constant 1 : index
    %c0_163 = arith.constant 0 : index
    %c0_164 = arith.constant 0 : index
    %415 = vector.load %arg2[%c1_162, %c0_163, %c0_164] : memref<3x32x128xf32, #tpu.memory_space<vmem>>, vector<1x32x128xf32>
    %416 = vector.shape_cast %415 : vector<1x32x128xf32> to vector<32x128xf32>
    %cst_165 = arith.constant dense<0.000000e+00> : vector<2x128xf32>
    %417 = tpu.matmul %387, %416, %cst_165 {dimension_numbers = #tpu.dot_dimension_numbers<[1], [0], [0], [1], [0, 0, 1, 1], [], []>} : vector<2x32xf32>, vector<32x128xf32>, vector<2x128xf32> -> vector<2x128xf32>
    %418 = arith.addf %417, %11 : vector<2x128xf32>
    %c1_166 = arith.constant 1 : index
    %c0_167 = arith.constant 0 : index
    %c0_168 = arith.constant 0 : index
    %419 = vector.load %arg3[%c1_166, %c0_167, %c0_168] : memref<3x32x128xf32, #tpu.memory_space<vmem>>, vector<1x32x128xf32>
    %420 = vector.shape_cast %419 : vector<1x32x128xf32> to vector<32x128xf32>
    %cst_169 = arith.constant dense<0.000000e+00> : vector<2x128xf32>
    %421 = tpu.matmul %366, %420, %cst_169 {dimension_numbers = #tpu.dot_dimension_numbers<[1], [0], [0], [1], [0, 0, 1, 1], [], []>} : vector<2x32xf32>, vector<32x128xf32>, vector<2x128xf32> -> vector<2x128xf32>
    %422 = arith.addf %418, %421 : vector<2x128xf32>
    %423 = arith.negf %422 : vector<2x128xf32>
    %424 = math.exp %423 : vector<2x128xf32>
    %cst_170 = arith.constant 1.000000e+00 : f32
    %425 = vector.broadcast %cst_170 : f32 to vector<2x128xf32>
    %426 = arith.addf %425, %424 : vector<2x128xf32>
    %427 = arith.divf %425, %426 : vector<2x128xf32>
    %428 = vector.extract_strided_slice %427 {offsets = [0, 0], sizes = [2, 32], strides = [1, 1]} : vector<2x128xf32> to vector<2x32xf32>
    %429 = vector.extract_strided_slice %427 {offsets = [0, 32], sizes = [2, 32], strides = [1, 1]} : vector<2x128xf32> to vector<2x32xf32>
    %430 = vector.extract_strided_slice %418 {offsets = [0, 64], sizes = [2, 32], strides = [1, 1]} : vector<2x128xf32> to vector<2x32xf32>
    %431 = vector.extract_strided_slice %421 {offsets = [0, 64], sizes = [2, 32], strides = [1, 1]} : vector<2x128xf32> to vector<2x32xf32>
    %432 = arith.addf %431, %23 : vector<2x32xf32>
    %433 = arith.mulf %428, %432 : vector<2x32xf32>
    %434 = arith.addf %430, %433 : vector<2x32xf32>
    %435 = math.tanh %434 : vector<2x32xf32>
    %436 = arith.subf %366, %435 : vector<2x32xf32>
    %437 = arith.mulf %429, %436 : vector<2x32xf32>
    %438 = arith.addf %435, %437 : vector<2x32xf32>
    %439 = vector.extract_strided_slice %7 {offsets = [12, 0], sizes = [2, 128], strides = [1, 1]} : vector<16x128xf32> to vector<2x128xf32>
    %c0_171 = arith.constant 0 : index
    %c0_172 = arith.constant 0 : index
    %c0_173 = arith.constant 0 : index
    %440 = vector.load %arg3[%c0_171, %c0_172, %c0_173] : memref<3x32x128xf32, #tpu.memory_space<vmem>>, vector<1x32x128xf32>
    %441 = vector.shape_cast %440 : vector<1x32x128xf32> to vector<32x128xf32>
    %cst_174 = arith.constant dense<0.000000e+00> : vector<2x128xf32>
    %442 = tpu.matmul %387, %441, %cst_174 {dimension_numbers = #tpu.dot_dimension_numbers<[1], [0], [0], [1], [0, 0, 1, 1], [], []>} : vector<2x32xf32>, vector<32x128xf32>, vector<2x128xf32> -> vector<2x128xf32>
    %443 = arith.addf %439, %442 : vector<2x128xf32>
    %444 = arith.negf %443 : vector<2x128xf32>
    %445 = math.exp %444 : vector<2x128xf32>
    %cst_175 = arith.constant 1.000000e+00 : f32
    %446 = vector.broadcast %cst_175 : f32 to vector<2x128xf32>
    %447 = arith.addf %446, %445 : vector<2x128xf32>
    %448 = arith.divf %446, %447 : vector<2x128xf32>
    %449 = vector.extract_strided_slice %448 {offsets = [0, 0], sizes = [2, 32], strides = [1, 1]} : vector<2x128xf32> to vector<2x32xf32>
    %450 = vector.extract_strided_slice %448 {offsets = [0, 32], sizes = [2, 32], strides = [1, 1]} : vector<2x128xf32> to vector<2x32xf32>
    %451 = vector.extract_strided_slice %439 {offsets = [0, 64], sizes = [2, 32], strides = [1, 1]} : vector<2x128xf32> to vector<2x32xf32>
    %452 = vector.extract_strided_slice %442 {offsets = [0, 64], sizes = [2, 32], strides = [1, 1]} : vector<2x128xf32> to vector<2x32xf32>
    %453 = arith.addf %452, %19 : vector<2x32xf32>
    %454 = arith.mulf %449, %453 : vector<2x32xf32>
    %455 = arith.addf %451, %454 : vector<2x32xf32>
    %456 = math.tanh %455 : vector<2x32xf32>
    %457 = arith.subf %387, %456 : vector<2x32xf32>
    %458 = arith.mulf %450, %457 : vector<2x32xf32>
    %459 = arith.addf %456, %458 : vector<2x32xf32>
    %c2_176 = arith.constant 2 : index
    %c0_177 = arith.constant 0 : index
    %c0_178 = arith.constant 0 : index
    %460 = vector.load %arg2[%c2_176, %c0_177, %c0_178] : memref<3x32x128xf32, #tpu.memory_space<vmem>>, vector<1x32x128xf32>
    %461 = vector.shape_cast %460 : vector<1x32x128xf32> to vector<32x128xf32>
    %cst_179 = arith.constant dense<0.000000e+00> : vector<2x128xf32>
    %462 = tpu.matmul %438, %461, %cst_179 {dimension_numbers = #tpu.dot_dimension_numbers<[1], [0], [0], [1], [0, 0, 1, 1], [], []>} : vector<2x32xf32>, vector<32x128xf32>, vector<2x128xf32> -> vector<2x128xf32>
    %463 = arith.addf %462, %15 : vector<2x128xf32>
    %c2_180 = arith.constant 2 : index
    %c0_181 = arith.constant 0 : index
    %c0_182 = arith.constant 0 : index
    %464 = vector.load %arg3[%c2_180, %c0_181, %c0_182] : memref<3x32x128xf32, #tpu.memory_space<vmem>>, vector<1x32x128xf32>
    %465 = vector.shape_cast %464 : vector<1x32x128xf32> to vector<32x128xf32>
    %cst_183 = arith.constant dense<0.000000e+00> : vector<2x128xf32>
    %466 = tpu.matmul %411, %465, %cst_183 {dimension_numbers = #tpu.dot_dimension_numbers<[1], [0], [0], [1], [0, 0, 1, 1], [], []>} : vector<2x32xf32>, vector<32x128xf32>, vector<2x128xf32> -> vector<2x128xf32>
    %467 = arith.addf %463, %466 : vector<2x128xf32>
    %468 = arith.negf %467 : vector<2x128xf32>
    %469 = math.exp %468 : vector<2x128xf32>
    %cst_184 = arith.constant 1.000000e+00 : f32
    %470 = vector.broadcast %cst_184 : f32 to vector<2x128xf32>
    %471 = arith.addf %470, %469 : vector<2x128xf32>
    %472 = arith.divf %470, %471 : vector<2x128xf32>
    %473 = vector.extract_strided_slice %472 {offsets = [0, 0], sizes = [2, 32], strides = [1, 1]} : vector<2x128xf32> to vector<2x32xf32>
    %474 = vector.extract_strided_slice %472 {offsets = [0, 32], sizes = [2, 32], strides = [1, 1]} : vector<2x128xf32> to vector<2x32xf32>
    %475 = vector.extract_strided_slice %463 {offsets = [0, 64], sizes = [2, 32], strides = [1, 1]} : vector<2x128xf32> to vector<2x32xf32>
    %476 = vector.extract_strided_slice %466 {offsets = [0, 64], sizes = [2, 32], strides = [1, 1]} : vector<2x128xf32> to vector<2x32xf32>
    %477 = arith.addf %476, %27 : vector<2x32xf32>
    %478 = arith.mulf %473, %477 : vector<2x32xf32>
    %479 = arith.addf %475, %478 : vector<2x32xf32>
    %480 = math.tanh %479 : vector<2x32xf32>
    %481 = arith.subf %411, %480 : vector<2x32xf32>
    %482 = arith.mulf %474, %481 : vector<2x32xf32>
    %483 = arith.addf %480, %482 : vector<2x32xf32>
    %c5 = arith.constant 5 : index
    %c0_185 = arith.constant 0 : index
    %c0_186 = arith.constant 0 : index
    %484 = vector.load %arg7[%c5, %c0_185, %c0_186] : memref<8x2x32xf32, #tpu.memory_space<vmem>>, vector<1x2x32xf32>
    %485 = vector.shape_cast %484 : vector<1x2x32xf32> to vector<2x32xf32>
    %486 = vector.shape_cast %483 : vector<2x32xf32> to vector<1x2x32xf32>
    tpu.vector_store %arg7[%c5, %c0_185, %c0_186], %486 {strides = array<i32>} : memref<8x2x32xf32, #tpu.memory_space<vmem>>, vector<1x2x32xf32>,
    %c1_187 = arith.constant 1 : index
    %c0_188 = arith.constant 0 : index
    %c0_189 = arith.constant 0 : index
    %487 = vector.load %arg2[%c1_187, %c0_188, %c0_189] : memref<3x32x128xf32, #tpu.memory_space<vmem>>, vector<1x32x128xf32>
    %488 = vector.shape_cast %487 : vector<1x32x128xf32> to vector<32x128xf32>
    %cst_190 = arith.constant dense<0.000000e+00> : vector<2x128xf32>
    %489 = tpu.matmul %459, %488, %cst_190 {dimension_numbers = #tpu.dot_dimension_numbers<[1], [0], [0], [1], [0, 0, 1, 1], [], []>} : vector<2x32xf32>, vector<32x128xf32>, vector<2x128xf32> -> vector<2x128xf32>
    %490 = arith.addf %489, %11 : vector<2x128xf32>
    %c1_191 = arith.constant 1 : index
    %c0_192 = arith.constant 0 : index
    %c0_193 = arith.constant 0 : index
    %491 = vector.load %arg3[%c1_191, %c0_192, %c0_193] : memref<3x32x128xf32, #tpu.memory_space<vmem>>, vector<1x32x128xf32>
    %492 = vector.shape_cast %491 : vector<1x32x128xf32> to vector<32x128xf32>
    %cst_194 = arith.constant dense<0.000000e+00> : vector<2x128xf32>
    %493 = tpu.matmul %438, %492, %cst_194 {dimension_numbers = #tpu.dot_dimension_numbers<[1], [0], [0], [1], [0, 0, 1, 1], [], []>} : vector<2x32xf32>, vector<32x128xf32>, vector<2x128xf32> -> vector<2x128xf32>
    %494 = arith.addf %490, %493 : vector<2x128xf32>
    %495 = arith.negf %494 : vector<2x128xf32>
    %496 = math.exp %495 : vector<2x128xf32>
    %cst_195 = arith.constant 1.000000e+00 : f32
    %497 = vector.broadcast %cst_195 : f32 to vector<2x128xf32>
    %498 = arith.addf %497, %496 : vector<2x128xf32>
    %499 = arith.divf %497, %498 : vector<2x128xf32>
    %500 = vector.extract_strided_slice %499 {offsets = [0, 0], sizes = [2, 32], strides = [1, 1]} : vector<2x128xf32> to vector<2x32xf32>
    %501 = vector.extract_strided_slice %499 {offsets = [0, 32], sizes = [2, 32], strides = [1, 1]} : vector<2x128xf32> to vector<2x32xf32>
    %502 = vector.extract_strided_slice %490 {offsets = [0, 64], sizes = [2, 32], strides = [1, 1]} : vector<2x128xf32> to vector<2x32xf32>
    %503 = vector.extract_strided_slice %493 {offsets = [0, 64], sizes = [2, 32], strides = [1, 1]} : vector<2x128xf32> to vector<2x32xf32>
    %504 = arith.addf %503, %23 : vector<2x32xf32>
    %505 = arith.mulf %500, %504 : vector<2x32xf32>
    %506 = arith.addf %502, %505 : vector<2x32xf32>
    %507 = math.tanh %506 : vector<2x32xf32>
    %508 = arith.subf %438, %507 : vector<2x32xf32>
    %509 = arith.mulf %501, %508 : vector<2x32xf32>
    %510 = arith.addf %507, %509 : vector<2x32xf32>
    %511 = vector.extract_strided_slice %7 {offsets = [14, 0], sizes = [2, 128], strides = [1, 1]} : vector<16x128xf32> to vector<2x128xf32>
    %c0_196 = arith.constant 0 : index
    %c0_197 = arith.constant 0 : index
    %c0_198 = arith.constant 0 : index
    %512 = vector.load %arg3[%c0_196, %c0_197, %c0_198] : memref<3x32x128xf32, #tpu.memory_space<vmem>>, vector<1x32x128xf32>
    %513 = vector.shape_cast %512 : vector<1x32x128xf32> to vector<32x128xf32>
    %cst_199 = arith.constant dense<0.000000e+00> : vector<2x128xf32>
    %514 = tpu.matmul %459, %513, %cst_199 {dimension_numbers = #tpu.dot_dimension_numbers<[1], [0], [0], [1], [0, 0, 1, 1], [], []>} : vector<2x32xf32>, vector<32x128xf32>, vector<2x128xf32> -> vector<2x128xf32>
    %515 = arith.addf %511, %514 : vector<2x128xf32>
    %516 = arith.negf %515 : vector<2x128xf32>
    %517 = math.exp %516 : vector<2x128xf32>
    %cst_200 = arith.constant 1.000000e+00 : f32
    %518 = vector.broadcast %cst_200 : f32 to vector<2x128xf32>
    %519 = arith.addf %518, %517 : vector<2x128xf32>
    %520 = arith.divf %518, %519 : vector<2x128xf32>
    %521 = vector.extract_strided_slice %520 {offsets = [0, 0], sizes = [2, 32], strides = [1, 1]} : vector<2x128xf32> to vector<2x32xf32>
    %522 = vector.extract_strided_slice %520 {offsets = [0, 32], sizes = [2, 32], strides = [1, 1]} : vector<2x128xf32> to vector<2x32xf32>
    %523 = vector.extract_strided_slice %511 {offsets = [0, 64], sizes = [2, 32], strides = [1, 1]} : vector<2x128xf32> to vector<2x32xf32>
    %524 = vector.extract_strided_slice %514 {offsets = [0, 64], sizes = [2, 32], strides = [1, 1]} : vector<2x128xf32> to vector<2x32xf32>
    %525 = arith.addf %524, %19 : vector<2x32xf32>
    %526 = arith.mulf %521, %525 : vector<2x32xf32>
    %527 = arith.addf %523, %526 : vector<2x32xf32>
    %528 = math.tanh %527 : vector<2x32xf32>
    %529 = arith.subf %459, %528 : vector<2x32xf32>
    %530 = arith.mulf %522, %529 : vector<2x32xf32>
    %531 = arith.addf %528, %530 : vector<2x32xf32>
    %c2_201 = arith.constant 2 : index
    %c0_202 = arith.constant 0 : index
    %c0_203 = arith.constant 0 : index
    %532 = vector.load %arg2[%c2_201, %c0_202, %c0_203] : memref<3x32x128xf32, #tpu.memory_space<vmem>>, vector<1x32x128xf32>
    %533 = vector.shape_cast %532 : vector<1x32x128xf32> to vector<32x128xf32>
    %cst_204 = arith.constant dense<0.000000e+00> : vector<2x128xf32>
    %534 = tpu.matmul %510, %533, %cst_204 {dimension_numbers = #tpu.dot_dimension_numbers<[1], [0], [0], [1], [0, 0, 1, 1], [], []>} : vector<2x32xf32>, vector<32x128xf32>, vector<2x128xf32> -> vector<2x128xf32>
    %535 = arith.addf %534, %15 : vector<2x128xf32>
    %c2_205 = arith.constant 2 : index
    %c0_206 = arith.constant 0 : index
    %c0_207 = arith.constant 0 : index
    %536 = vector.load %arg3[%c2_205, %c0_206, %c0_207] : memref<3x32x128xf32, #tpu.memory_space<vmem>>, vector<1x32x128xf32>
    %537 = vector.shape_cast %536 : vector<1x32x128xf32> to vector<32x128xf32>
    %cst_208 = arith.constant dense<0.000000e+00> : vector<2x128xf32>
    %538 = tpu.matmul %483, %537, %cst_208 {dimension_numbers = #tpu.dot_dimension_numbers<[1], [0], [0], [1], [0, 0, 1, 1], [], []>} : vector<2x32xf32>, vector<32x128xf32>, vector<2x128xf32> -> vector<2x128xf32>
    %539 = arith.addf %535, %538 : vector<2x128xf32>
    %540 = arith.negf %539 : vector<2x128xf32>
    %541 = math.exp %540 : vector<2x128xf32>
    %cst_209 = arith.constant 1.000000e+00 : f32
    %542 = vector.broadcast %cst_209 : f32 to vector<2x128xf32>
    %543 = arith.addf %542, %541 : vector<2x128xf32>
    %544 = arith.divf %542, %543 : vector<2x128xf32>
    %545 = vector.extract_strided_slice %544 {offsets = [0, 0], sizes = [2, 32], strides = [1, 1]} : vector<2x128xf32> to vector<2x32xf32>
    %546 = vector.extract_strided_slice %544 {offsets = [0, 32], sizes = [2, 32], strides = [1, 1]} : vector<2x128xf32> to vector<2x32xf32>
    %547 = vector.extract_strided_slice %535 {offsets = [0, 64], sizes = [2, 32], strides = [1, 1]} : vector<2x128xf32> to vector<2x32xf32>
    %548 = vector.extract_strided_slice %538 {offsets = [0, 64], sizes = [2, 32], strides = [1, 1]} : vector<2x128xf32> to vector<2x32xf32>
    %549 = arith.addf %548, %27 : vector<2x32xf32>
    %550 = arith.mulf %545, %549 : vector<2x32xf32>
    %551 = arith.addf %547, %550 : vector<2x32xf32>
    %552 = math.tanh %551 : vector<2x32xf32>
    %553 = arith.subf %483, %552 : vector<2x32xf32>
    %554 = arith.mulf %546, %553 : vector<2x32xf32>
    %555 = arith.addf %552, %554 : vector<2x32xf32>
    %c6 = arith.constant 6 : index
    %c0_210 = arith.constant 0 : index
    %c0_211 = arith.constant 0 : index
    %556 = vector.load %arg7[%c6, %c0_210, %c0_211] : memref<8x2x32xf32, #tpu.memory_space<vmem>>, vector<1x2x32xf32>
    %557 = vector.shape_cast %556 : vector<1x2x32xf32> to vector<2x32xf32>
    %558 = vector.shape_cast %555 : vector<2x32xf32> to vector<1x2x32xf32>
    tpu.vector_store %arg7[%c6, %c0_210, %c0_211], %558 {strides = array<i32>} : memref<8x2x32xf32, #tpu.memory_space<vmem>>, vector<1x2x32xf32>,
    %c1_212 = arith.constant 1 : index
    %c0_213 = arith.constant 0 : index
    %c0_214 = arith.constant 0 : index
    %559 = vector.load %arg2[%c1_212, %c0_213, %c0_214] : memref<3x32x128xf32, #tpu.memory_space<vmem>>, vector<1x32x128xf32>
    %560 = vector.shape_cast %559 : vector<1x32x128xf32> to vector<32x128xf32>
    %cst_215 = arith.constant dense<0.000000e+00> : vector<2x128xf32>
    %561 = tpu.matmul %531, %560, %cst_215 {dimension_numbers = #tpu.dot_dimension_numbers<[1], [0], [0], [1], [0, 0, 1, 1], [], []>} : vector<2x32xf32>, vector<32x128xf32>, vector<2x128xf32> -> vector<2x128xf32>
    %562 = arith.addf %561, %11 : vector<2x128xf32>
    %c1_216 = arith.constant 1 : index
    %c0_217 = arith.constant 0 : index
    %c0_218 = arith.constant 0 : index
    %563 = vector.load %arg3[%c1_216, %c0_217, %c0_218] : memref<3x32x128xf32, #tpu.memory_space<vmem>>, vector<1x32x128xf32>
    %564 = vector.shape_cast %563 : vector<1x32x128xf32> to vector<32x128xf32>
    %cst_219 = arith.constant dense<0.000000e+00> : vector<2x128xf32>
    %565 = tpu.matmul %510, %564, %cst_219 {dimension_numbers = #tpu.dot_dimension_numbers<[1], [0], [0], [1], [0, 0, 1, 1], [], []>} : vector<2x32xf32>, vector<32x128xf32>, vector<2x128xf32> -> vector<2x128xf32>
    %566 = arith.addf %562, %565 : vector<2x128xf32>
    %567 = arith.negf %566 : vector<2x128xf32>
    %568 = math.exp %567 : vector<2x128xf32>
    %cst_220 = arith.constant 1.000000e+00 : f32
    %569 = vector.broadcast %cst_220 : f32 to vector<2x128xf32>
    %570 = arith.addf %569, %568 : vector<2x128xf32>
    %571 = arith.divf %569, %570 : vector<2x128xf32>
    %572 = vector.extract_strided_slice %571 {offsets = [0, 0], sizes = [2, 32], strides = [1, 1]} : vector<2x128xf32> to vector<2x32xf32>
    %573 = vector.extract_strided_slice %571 {offsets = [0, 32], sizes = [2, 32], strides = [1, 1]} : vector<2x128xf32> to vector<2x32xf32>
    %574 = vector.extract_strided_slice %562 {offsets = [0, 64], sizes = [2, 32], strides = [1, 1]} : vector<2x128xf32> to vector<2x32xf32>
    %575 = vector.extract_strided_slice %565 {offsets = [0, 64], sizes = [2, 32], strides = [1, 1]} : vector<2x128xf32> to vector<2x32xf32>
    %576 = arith.addf %575, %23 : vector<2x32xf32>
    %577 = arith.mulf %572, %576 : vector<2x32xf32>
    %578 = arith.addf %574, %577 : vector<2x32xf32>
    %579 = math.tanh %578 : vector<2x32xf32>
    %580 = arith.subf %510, %579 : vector<2x32xf32>
    %581 = arith.mulf %573, %580 : vector<2x32xf32>
    %582 = arith.addf %579, %581 : vector<2x32xf32>
    %c2_221 = arith.constant 2 : index
    %c0_222 = arith.constant 0 : index
    %c0_223 = arith.constant 0 : index
    %583 = vector.load %arg2[%c2_221, %c0_222, %c0_223] : memref<3x32x128xf32, #tpu.memory_space<vmem>>, vector<1x32x128xf32>
    %584 = vector.shape_cast %583 : vector<1x32x128xf32> to vector<32x128xf32>
    %cst_224 = arith.constant dense<0.000000e+00> : vector<2x128xf32>
    %585 = tpu.matmul %582, %584, %cst_224 {dimension_numbers = #tpu.dot_dimension_numbers<[1], [0], [0], [1], [0, 0, 1, 1], [], []>} : vector<2x32xf32>, vector<32x128xf32>, vector<2x128xf32> -> vector<2x128xf32>
    %586 = arith.addf %585, %15 : vector<2x128xf32>
    %c2_225 = arith.constant 2 : index
    %c0_226 = arith.constant 0 : index
    %c0_227 = arith.constant 0 : index
    %587 = vector.load %arg3[%c2_225, %c0_226, %c0_227] : memref<3x32x128xf32, #tpu.memory_space<vmem>>, vector<1x32x128xf32>
    %588 = vector.shape_cast %587 : vector<1x32x128xf32> to vector<32x128xf32>
    %cst_228 = arith.constant dense<0.000000e+00> : vector<2x128xf32>
    %589 = tpu.matmul %555, %588, %cst_228 {dimension_numbers = #tpu.dot_dimension_numbers<[1], [0], [0], [1], [0, 0, 1, 1], [], []>} : vector<2x32xf32>, vector<32x128xf32>, vector<2x128xf32> -> vector<2x128xf32>
    %590 = arith.addf %586, %589 : vector<2x128xf32>
    %591 = arith.negf %590 : vector<2x128xf32>
    %592 = math.exp %591 : vector<2x128xf32>
    %cst_229 = arith.constant 1.000000e+00 : f32
    %593 = vector.broadcast %cst_229 : f32 to vector<2x128xf32>
    %594 = arith.addf %593, %592 : vector<2x128xf32>
    %595 = arith.divf %593, %594 : vector<2x128xf32>
    %596 = vector.extract_strided_slice %595 {offsets = [0, 0], sizes = [2, 32], strides = [1, 1]} : vector<2x128xf32> to vector<2x32xf32>
    %597 = vector.extract_strided_slice %595 {offsets = [0, 32], sizes = [2, 32], strides = [1, 1]} : vector<2x128xf32> to vector<2x32xf32>
    %598 = vector.extract_strided_slice %586 {offsets = [0, 64], sizes = [2, 32], strides = [1, 1]} : vector<2x128xf32> to vector<2x32xf32>
    %599 = vector.extract_strided_slice %589 {offsets = [0, 64], sizes = [2, 32], strides = [1, 1]} : vector<2x128xf32> to vector<2x32xf32>
    %600 = arith.addf %599, %27 : vector<2x32xf32>
    %601 = arith.mulf %596, %600 : vector<2x32xf32>
    %602 = arith.addf %598, %601 : vector<2x32xf32>
    %603 = math.tanh %602 : vector<2x32xf32>
    %604 = arith.subf %555, %603 : vector<2x32xf32>
    %605 = arith.mulf %597, %604 : vector<2x32xf32>
    %606 = arith.addf %603, %605 : vector<2x32xf32>
    %c7 = arith.constant 7 : index
    %c0_230 = arith.constant 0 : index
    %c0_231 = arith.constant 0 : index
    %607 = vector.load %arg7[%c7, %c0_230, %c0_231] : memref<8x2x32xf32, #tpu.memory_space<vmem>>, vector<1x2x32xf32>
    %608 = vector.shape_cast %607 : vector<1x2x32xf32> to vector<2x32xf32>
    %609 = vector.shape_cast %606 : vector<2x32xf32> to vector<1x2x32xf32>
    tpu.vector_store %arg7[%c7, %c0_230, %c0_231], %609 {strides = array<i32>} : memref<8x2x32xf32, #tpu.memory_space<vmem>>, vector<1x2x32xf32>,
    return
  }
  func.func @transform_0(%arg0: i32) -> (i32, i32) {
    %c0_i32 = arith.constant 0 : i32
    %c0_i32_0 = arith.constant 0 : i32
    %c0_i32_1 = arith.constant 0 : i32
    return %c0_i32, %c0_i32_0 : i32, i32
  }
  func.func @transform_1(%arg0: i32) -> (i32, i32, i32) {
    %c0_i32 = arith.constant 0 : i32
    %c0_i32_0 = arith.constant 0 : i32
    %c0_i32_1 = arith.constant 0 : i32
    %c0_i32_2 = arith.constant 0 : i32
    return %c0_i32, %c0_i32_0, %c0_i32_1 : i32, i32, i32
  }
  func.func @transform_2(%arg0: i32) -> (i32, i32, i32) {
    %c0_i32 = arith.constant 0 : i32
    %c0_i32_0 = arith.constant 0 : i32
    %c0_i32_1 = arith.constant 0 : i32
    %c0_i32_2 = arith.constant 0 : i32
    return %c0_i32, %c0_i32_0, %c0_i32_1 : i32, i32, i32
  }
  func.func @transform_3(%arg0: i32) -> (i32, i32, i32) {
    %c0_i32 = arith.constant 0 : i32
    %c0_i32_0 = arith.constant 0 : i32
    %c0_i32_1 = arith.constant 0 : i32
    %c0_i32_2 = arith.constant 0 : i32
    return %c0_i32, %c0_i32_0, %c0_i32_1 : i32, i32, i32
  }
  func.func @transform_4(%arg0: i32) -> (i32, i32, i32) {
    %c0_i32 = arith.constant 0 : i32
    %c0_i32_0 = arith.constant 0 : i32
    %c0_i32_1 = arith.constant 0 : i32
    %c0_i32_2 = arith.constant 0 : i32
    return %c0_i32, %c0_i32_0, %c0_i32_1 : i32, i32, i32
  }
  func.func @transform_5(%arg0: i32) -> (i32, i32, i32) {
    %c0_i32 = arith.constant 0 : i32
    %c0_i32_0 = arith.constant 0 : i32
    %c0_i32_1 = arith.constant 0 : i32
    %c0_i32_2 = arith.constant 0 : i32
    return %c0_i32, %c0_i32_0, %c0_i32_1 : i32, i32, i32
  }
  func.func @transform_6(%arg0: i32) -> (i32, i32, i32) {
    %c0_i32 = arith.constant 0 : i32
    %c0_i32_0 = arith.constant 0 : i32
    %c0_i32_1 = arith.constant 0 : i32
    %c0_i32_2 = arith.constant 0 : i32
    return %c0_i32, %c0_i32_0, %c0_i32_1 : i32, i32, i32
  }
}

</mosaic_0001>

<bundles_post_ra>
// kernel: tpu_custom_call.1
= control target key start
LH: loop header
LB: loop body
LE: loop exit
PB: predicated region body
PF: predicated region fallthrough
CT: control target
= control target key end

     0   :  { %11 = vsyncpa [#allocation3], 0  ;;  %s6126_s0 = inlined_call_operand.hbm [shape: f32[16,32], index: 0, kind: input, shape index: {}]   ;;  %s6127_s1 = inlined_call_operand.hbm [shape: f32[3,32,128], index: 1, kind: input, shape index: {}]   ;;  %s6128_s2 = inlined_call_operand.hbm [shape: f32[3,32,128], index: 2, kind: input, shape index: {}]   ;;  %s6129_s3 = inlined_call_operand.vmem [shape: f32[3,1,128], index: 3, kind: input, shape index: {}]   ;;  %s6130_s4 = inlined_call_operand.vmem [shape: f32[3,1,32], index: 4, kind: input, shape index: {}]   ;;  %s6131_s5 = inlined_call_operand.vmem [shape: f32[3,2,32], index: 5, kind: input, shape index: {}]   ;;  %s6132_s6 = inlined_call_operand.hbm [shape: f32[8,2,32], index: 6, kind: output, shape index: {}]  }
   0x1   :  { %12 = vsyncpa [#allocation6], 0 }
   0x2   :  { %13 = vsyncpa [#allocation4], 0  ;;  %s5365_s21 = smov [#allocation5]   ;;  %s5366_s23 = smov [#allocation2]  }
   0x3   :  { %s31_s22 = sshll.u32 %s5365_s21, 4  ;;  %s19_s24 = sshll.u32 %s5366_s23, 4  ;;  %s32_s22 = int_to_ptr.vmem [resolvable:$true] %s31_s22  ;;  %s5413_s24 = int_to_ptr.vmem [resolvable:$true] %s19_s24 }
   0x4   :  { %s5271_s27 = scalar_lea.hbm %s6127_s1, 1536 }
   0x5   :  { %p5272_p0 = scmp.ne.s32.totalorder %s6127_s1, %s5271_s27  ;;  %p5275_p1 = scmp.lt.u32.totalorder %s5271_s27, %s6127_s1 }
   0x7   :  { %p5277_p2 = pnand %p5275_p1, %p5272_p0 }
   0x9   :  { %5280 = shalt.err (!%p5277_p2)
}
   0xa   :  { %s5281_s8 = scalar_lea.vmem %s32_s22, 1536  ;;  %p5286_p4 = scmp.lt.s32.totalorder %s32_s22, %s32_s22 }
   0xb   :  { %p5282_p3 = scmp.ne.s32.totalorder %s32_s22, %s5281_s8  ;;  %p5287_p5 = scmp.lt.s32.totalorder %s5281_s8, %s5281_s8 }
   0xd   :  { %p5288_p6 = por %p5287_p5, %p5286_p4 }
   0xf   :  { %p5289_p7 = pnand %p5288_p6, %p5282_p3 }
  0x11   :  { %5292 = shalt.err (!%p5289_p7)
}
  0x12   :  { %s5367_s9 = smov 128   ;;  %s5368_s10 = smov 8  }
  0x13   :  { %37 = dma.hbm_to_vmem [thread:$0]  %s6127_s1, 1536, %s32_s22, [#allocation6], %s5367_s9, %s5367_s9, %s5368_s10  }
  0x14   :  { %s5293_s15 = scalar_lea.hbm %s6126_s0, 256 }
  0x15   :  { %p5294_p8 = scmp.ne.s32.totalorder %s6126_s0, %s5293_s15  ;;  %p5297_p9 = scmp.lt.u32.totalorder %s5293_s15, %s6126_s0 }
  0x17   :  { %p5299_p10 = pnand %p5297_p9, %p5294_p8 }
  0x19   :  { %5302 = shalt.err (!%p5299_p10)
}
  0x1a   :  { %s5303_s20 = scalar_lea.vmem %s5413_s24, 256  ;;  %p5308_p12 = scmp.lt.s32.totalorder %s5413_s24, %s5413_s24 }
  0x1b   :  { %p5304_p11 = scmp.ne.s32.totalorder %s5413_s24, %s5303_s20  ;;  %p5309_p13 = scmp.lt.s32.totalorder %s5303_s20, %s5303_s20 }
  0x1d   :  { %p5310_p0 = por %p5309_p13, %p5308_p12 }
  0x1f   :  { %p5311_p1 = pnand %p5310_p0, %p5304_p11 }
  0x21   :  { %5314 = shalt.err (!%p5311_p1)
}
  0x22   :  { %25 = dma.hbm_to_vmem [thread:$0]  %s6126_s0, 256, %s5413_s24, [#allocation3], %s5367_s9, %s5367_s9, %s5368_s10  }
  0x23   :  { %s5369_s22 = smov [#allocation7]   ;;  %s5315_s27 = scalar_lea.hbm %s6128_s2, 1536 }
  0x24   :  { %s43_s23 = sshll.u32 %s5369_s22, 4  ;;  %p5316_p2 = scmp.ne.s32.totalorder %s6128_s2, %s5315_s27  ;;  %s44_s23 = int_to_ptr.vmem [resolvable:$true] %s43_s23 }
  0x25   :  { %p5319_p3 = scmp.lt.u32.totalorder %s5315_s27, %s6128_s2 }
  0x27   :  { %p5321_p4 = pnand %p5319_p3, %p5316_p2 }
  0x29   :  { %5324 = shalt.err (!%p5321_p4)
}
  0x2a   :  { %s5325_s8 = scalar_lea.vmem %s44_s23, 1536  ;;  %p5330_p6 = scmp.lt.s32.totalorder %s44_s23, %s44_s23 }
  0x2b   :  { %p5326_p5 = scmp.ne.s32.totalorder %s44_s23, %s5325_s8  ;;  %p5331_p7 = scmp.lt.s32.totalorder %s5325_s8, %s5325_s8 }
  0x2d   :  { %p5332_p8 = por %p5331_p7, %p5330_p6 }
  0x2f   :  { %p5333_p9 = pnand %p5332_p8, %p5326_p5 }
  0x31   :  { %5336 = shalt.err (!%p5333_p9)
}
  0x32   :  { %49 = dma.hbm_to_vmem [thread:$0]  %s6128_s2, 1536, %s44_s23, [#allocation6], %s5367_s9, %s5367_s9, %s5368_s10  }
  0x33   :  { %5359 = dma.done.wait [#allocation3], 256  }
  0x34   :  { %5360 = vsyncadd [#allocation3], 4294967040 }
  0x35   :  { %5361 = dma.done.wait [#allocation6], 3072  }
  0x36   :  { %5362 = vsyncadd [#allocation6], 4294964224  ;;  %v5370_v0 = vmov 0.0|0.0   ;;  %vm5371_vm0 = vmmov 0   ;;  %v5372_v1 = vmov 0.0   ;;  %v67_v2 = vld [vmem:[#allocation5] sm:$0xff] }
  0x37   :  { %4872 = vmatprep.subr.bf16.mxu1 %v5370_v0  ;;  %4432 = vmatprep.mubr.msk.f32.mxu1 %vm5371_vm0, %v5372_v1  ;;  %v68_v3 = vld [vmem:[#allocation5 + $0x8] sm:$0xff]  ;;  %v201_v4 = vld [vmem:[#allocation7] sm:$0xff]  ;;  %vm78_vm1 = vcmask 261120   ;;  %v69_v7 = vld [vmem:[#allocation5 + $0x10] sm:$0xff]  ;;  %s5373_s10 = smov 64   ;;  %s5374_s15 = smov 32  }
  0x38   :  { %v4864_v5 = vpack.c.bf16 %v68_v3, %v67_v2  ;;  %v202_v6 = vld [vmem:[#allocation7 + $0x8] sm:$0xff]  ;;  %v70_v8 = vld [vmem:[#allocation5 + $0x18] sm:$0xff]  ;;  %v203_v11 = vld [vmem:[#allocation7 + $0x10] sm:$0xff]  ;;  %s5375_s21 = smov 96   ;;  %vm817_vm2 = vcmask 254976  }
  0x39   :  { %v5468_v9 = vpack.c.bf16 %v202_v6, %v201_v4  ;;  %v4868_v10 = vpack.c.bf16 %v70_v8, %v69_v7  ;;  %v204_v12 = vld [vmem:[#allocation7 + $0x18] sm:$0xff]  ;;  %v65_v13 = vld [vmem:[#allocation2] sm:$0xff]  ;;  %v396_v39 = vld [vmem:[#allocation7 + $0x20] sm:$0xff] }
  0x3a   :  { %4865 = vmatprep.subr.bf16.mxu0 %v4864_v5  ;;  %4421 = vmatprep.mubr.msk.f32.mxu0 %vm78_vm1, %v65_v13  ;;  %v4136_v14 = vld [vmem:[%s6130_s4] ss:$0 sm:$0xff]  ;;  %v5475_v15 = vpack.c.bf16 %v204_v12, %v203_v11  ;;  %v66_v17 = vld [vmem:[#allocation2 + $0x8] sm:$0xff]  ;;  %v397_v40 = vld [vmem:[#allocation7 + $0x28] sm:$0xff] }
  0x3b   :  { %4874 = vmatpush3.bf16.msra.mxu1 %v5468_v9  ;;  %4867 = vmatpush3.bf16.msra.mxu0 %v4864_v5  ;;  %v196_v16 = vld [vmem:[%s6131_s5] sm:$0x3]  ;;  %v5507_v42 = vpack.c.bf16 %v397_v40, %v396_v39  ;;  %v399_v43 = vld [vmem:[#allocation7 + $0x38] sm:$0xff]  ;;  %v316_v44 = vld [vmem:[#allocation5 + $0x20] sm:$0xff] }
  0x3c   :  { %4875 = vmatprep.subr.bf16.mxu1 %v5370_v0  ;;  %4869 = vmatprep.subr.bf16.mxu0 %v4868_v10  ;;  %v4129_v21 = vld [vmem:[%s6129_s3] ss:$0 sm:$0xff]  ;;  %v317_v45 = vld [vmem:[#allocation5 + $0x28] sm:$0xff]  ;;  %v319_v47 = vld [vmem:[#allocation5 + $0x38] sm:$0xff] }
  0x3d   :  { %285 = vrot.lane.b32.xlu0 %v4136_v14, %s5373_s10  ;;  %v398_v41 = vld [vmem:[#allocation7 + $0x30] sm:$0xff]  ;;  %v5512_v49 = vpack.c.bf16 %v317_v45, %v316_v44 }
  0x3e   :  { %v318_v46 = vld [vmem:[#allocation5 + $0x30] sm:$0xff]  ;;  %v5510_v48 = vpack.c.bf16 %v399_v43, %v398_v41  ;;  %v699_v41 = vld [vmem:[#allocation7 + $0x40] sm:$0xff]  ;;  %v700_v43 = vld [vmem:[#allocation7 + $0x48] sm:$0xff] }
  0x3f   :  { %4877 = vmatpush3.bf16.msra.mxu1 %v5475_v15  ;;  %4871 = vmatpush3.bf16.msra.mxu0 %v4868_v10  ;;  %v5516_v50 = vpack.c.bf16 %v319_v47, %v318_v46  ;;  %v5523_v51 = vld [vmem:[%s6131_s5 + $0x2] sm:$0x3]  ;;  %v4138_v54 = vld [vmem:[%s6130_s4 + $0x1] ss:$0 sm:$0xff]  ;;  %v5569_v45 = vpack.c.bf16 %v700_v43, %v699_v41  ;;  %v702_v46 = vld [vmem:[#allocation7 + $0x58] sm:$0xff] }
  0x40   :  { %4884 = vmatprep.subr.bf16.mxu1 %v5370_v0  ;;  %4878 = vmatprep.subr.bf16.mxu0 %v5370_v0  ;;  %v5555_v62 = vld [vmem:[%s6129_s3 + $0x1] ss:$0 sm:$0xff] }
  0x41   :  { %v701_v44 = vld [vmem:[#allocation7 + $0x50] sm:$0xff] }
  0x42   :  { %4433 = vmatmul.mubr.msk.f32.vlgmr.msra.gmra.mrb[0].mxu1 %vm78_vm1, %v196_v16  ;;  %4422 = vmatmul.mubr.msk.f32.vlgmr.msra.gmra.mrb[0].mxu0 %vm78_vm1, %v66_v17  ;;  %v5572_v47 = vpack.c.bf16 %v702_v46, %v701_v44 }
  0x43   :  { %4454 = vmatprep.mubr.msk.f32.mxu1 %vm5371_vm0, %v5372_v1  ;;  %4443 = vmatprep.mubr.msk.f32.mxu0 %vm5371_vm0, %v5372_v1 }
  0x44   :  { %4886 = vmatpush3.bf16.msra.mxu1 %v5507_v42  ;;  %4880 = vmatpush3.bf16.msra.mxu0 %v5512_v49 }
  0x45   :  { %4887 = vmatprep.subr.bf16.mxu1 %v5370_v0  ;;  %4881 = vmatprep.subr.bf16.mxu0 %v5370_v0 }
  0x48   :  { %4889 = vmatpush3.bf16.msra.mxu1 %v5510_v48  ;;  %4883 = vmatpush3.bf16.msra.mxu0 %v5516_v50 }
  0x49   :  { %4896 = vmatprep.subr.bf16.mxu1 %v5370_v0  ;;  %4890 = vmatprep.subr.bf16.mxu0 %v5370_v0 }
  0x4b   :  { %4455 = vmatmul.mubr.msk.f32.vlgmr.msra.gmra.mrb[2].mxu1 %vm78_vm1, %v5523_v51 }
  0x4c   :  { %4476 = vmatprep.mubr.msk.f32.mxu1 %vm5371_vm0, %v5372_v1 }
  0xaf   :  { %v5491_v18 = vpop.permute.xlu0 %285 }
 0x115   :  { %v274_v19 = vpop.f32.mrb[0].mxu1  ;;  %v4423_v20 = vpop.f32.mrb[0].mxu0 }
 0x116   :  { %v5496_v22 = vadd.f32 %v4423_v20, %v4129_v21  ;;  %v4434_v23 = vpop.f32.mrb[1].mxu1  ;;  %v151_v24 = vpop.f32.mrb[1].mxu0  ;;  %v288_v25 = vadd.f32 %v5491_v18, %v274_v19 }
 0x117   :  { %v5500_v26 = vadd.f32 %v4129_v21, %v151_v24 }
 0x118   :  { %290 = vrot.lane.b32.xlu0 %v288_v25, %s5373_s10 }
 0x119   :  { %v278_v27 = vadd.f32 %v274_v19, %v5500_v26 }
 0x11b   :  { %v4144_v28 = vmul.f32 -1.442695, %v278_v27 }
 0x11d   :  { %5125 = vpow2.f32 %v4144_v28 }
 0x11e   :  { %v469_v57 = vpop.f32.mrb[2].mxu1 }
 0x11f   :  { %v4456_v58 = vpop.f32.mrb[3].mxu1 }
 0x120   :  { %v622_v58 = vld [vmem:[#allocation5 + $0x58] sm:$0xff] }
 0x127   :  { %v5126_v29 = vpop.eup %5125 }
 0x128   :  { %v282_v30 = vadd.f32 1.0, %v5126_v29 }
 0x12a   :  { %5127 = vrcp.f32 %v282_v30 }
 0x134   :  { %v5128_v31 = vpop.eup %5127 }
 0x18a   :  { %v291_v32 = vpop.permute.xlu0 %290 }
 0x18b   :  { %v293_v33 = vmul.f32 %v5128_v31, %v291_v32 }
 0x18d   :  { %295 = vrot.lane.b32.xlu1 %v293_v33, %s5373_s10 }
 0x1ff   :  { %v296_v34 = vpop.permute.xlu1 %295 }
 0x200   :  { %v298_v35 = vadd.f32 %v296_v34, %v5500_v26 }
 0x202   :  { %5129 = vtanh.f32 %v298_v35 }
 0x20c   :  { %v5130_v36 = vpop.eup %5129 }
 0x20d   :  { %301 = vrot.lane.b32.xlu1 %v5130_v36, %s5373_s10 }
 0x27f   :  { %v302_v37 = vpop.permute.xlu1 %301 }
 0x280   :  { %v304_v38 = vsub.f32 %v196_v16, %v302_v37 }
 0x282   :  { %306 = vrot.lane.b32.xlu0 %v304_v38, %s5374_s15 }
 0x2f4   :  { %v307_v52 = vpop.permute.xlu0 %306 }
 0x2f5   :  { %v309_v53 = vmul.f32 %v5128_v31, %v307_v52 }
 0x2f7   :  { %311 = vrot.lane.b32.xlu1 %v309_v53, %s5374_s15 }
 0x2fb   :  { %480 = vrot.lane.b32.xlu1 %v4138_v54, %s5373_s10  ;;  %v619_v54 = vld [vmem:[#allocation5 + $0x40] sm:$0xff] }
 0x369   :  { %v312_v55 = vpop.permute.xlu1 %311 }
 0x36a   :  { %v314_v56 = vadd.f32 %v5130_v36, %v312_v55  ;;  %v620_v55 = vld [vmem:[#allocation5 + $0x48] sm:$0xff] }
 0x36c   :  { %321 = vrot.lane.b32.xlu0 %v314_v56, %s5373_s10 }
 0x36d   :  { %v5538_v59 = vpop.permute.xlu1 %480 }
 0x36e   :  { %v483_v60 = vadd.f32 %v5538_v59, %v469_v57 }
 0x370   :  { %485 = vrot.lane.b32.xlu0 %v483_v60, %s5373_s10 }
 0x3de   :  { %v322_v61 = vpop.permute.xlu0 %321 }
 0x3df   :  { %4444 = vmatmul.mubr.msk.f32.vlgmr.msra.gmra.mrb[2].mxu0 %vm78_vm1, %v322_v61 }
 0x3e0   :  { %4892 = vmatpush3.bf16.msra.mxu0 %v5468_v9  ;;  %4465 = vmatprep.mubr.msk.f32.mxu0 %vm5371_vm0, %v5372_v1 }
 0x3e1   :  { %4893 = vmatprep.subr.bf16.mxu0 %v5370_v0 }
 0x3e2   :  { %v486_v13 = vpop.permute.xlu0 %485 }
 0x3e4   :  { %4895 = vmatpush3.bf16.msra.mxu0 %v5475_v15 }
 0x3e5   :  { %4902 = vmatprep.subr.bf16.mxu0 %v5370_v0 }
 0x3e7   :  { %4466 = vmatmul.mubr.msk.f32.vlgmr.msra.gmra.mrb[4].mxu0 %vm78_vm1, %v322_v61 }
 0x3e8   :  { %4487 = vmatprep.mubr.msk.f32.mxu0 %vm5371_vm0, %v5372_v1  ;;  %4904 = vmatpush3.bf16.msra.mxu0 %v5569_v45 }
 0x3e9   :  { %4905 = vmatprep.subr.bf16.mxu0 %v5370_v0 }
 0x3ec   :  { %4907 = vmatpush3.bf16.msra.mxu0 %v5572_v47 }
 0x3ed   :  { %4914 = vmatprep.subr.bf16.mxu0 %v5370_v0 }
 0x4b2   :  { %v391_v63 = vpop.f32.mrb[2].mxu0 }
 0x4b3   :  { %v392_v2 = vadd.f32 %v5555_v62, %v391_v63  ;;  %v4445_v3 = vpop.f32.mrb[3].mxu0 }
 0x4b5   :  { %v473_v4 = vadd.f32 %v469_v57, %v392_v2  ;;  %v5591_v57 = vpack.c.bf16 %v620_v55, %v619_v54 }
 0x4b7   :  { %v4147_v5 = vmul.f32 -1.442695, %v473_v4  ;;  %4898 = vmatpush3.bf16.msra.mxu1 %v5591_v57 }
 0x4b8   :  { %4899 = vmatprep.subr.bf16.mxu1 %v5370_v0 }
 0x4b9   :  { %5131 = vpow2.f32 %v4147_v5  ;;  %v4140_v5 = vld [vmem:[%s6130_s4 + $0x2] ss:$0 sm:$0xff] }
 0x4ba   :  { %v576_v6 = vpop.f32.mrb[4].mxu0 }
 0x4bb   :  { %v590_v7 = vadd.f32 %v576_v6, %v5491_v18  ;;  %v4467_v8 = vpop.f32.mrb[5].mxu0  ;;  %v581_v17 = vrot.slane %v576_v6, 6 }
 0x4bd   :  { %v592_v10 = vrot.slane %v590_v7, 6  ;;  %v583_v19 = vadd.f32 %v581_v17, %v5500_v26 }
 0x4bf   :  { %593 = vrot.lane.b32.xlu0 %v592_v10, %s5373_s10  ;;  %v4149_v20 = vmul.f32 -1.442695, %v583_v19 }
 0x4c3   :  { %v5132_v11 = vpop.eup %5131 }
 0x4c4   :  { %v477_v12 = vadd.f32 1.0, %v5132_v11 }
 0x4c6   :  { %5133 = vrcp.f32 %v477_v12 }
 0x4c7   :  { %5135 = vpow2.f32 %v4149_v20 }
 0x4d0   :  { %v5134_v14 = vpop.eup %5133 }
 0x4d1   :  { %v488_v16 = vmul.f32 %v5134_v14, %v486_v13  ;;  %v5136_v21 = vpop.eup %5135  ;;  %v5646_v13 = vld [vmem:[%s6129_s3 + $0x2] ss:$0 sm:$0xff] }
 0x4d2   :  { %v587_v23 = vadd.f32 1.0, %v5136_v21 }
 0x4d3   :  { %490 = vrot.lane.b32.xlu1 %v488_v16, %s5373_s10 }
 0x4d4   :  { %5137 = vrcp.f32 %v587_v23 }
 0x4de   :  { %v5138_v24 = vpop.eup %5137 }
 0x531   :  { %v594_v25 = vpop.permute.xlu0 %593 }
 0x532   :  { %v596_v27 = vmul.f32 %v5138_v24, %v594_v25 }
 0x534   :  { %598 = vrot.lane.b32.xlu1 %v596_v27, %s5373_s10 }
 0x545   :  { %v491_v28 = vpop.permute.xlu1 %490 }
 0x546   :  { %v493_v29 = vadd.f32 %v491_v28, %v392_v2 }
 0x548   :  { %5139 = vtanh.f32 %v493_v29 }
 0x552   :  { %v5140_v30 = vpop.eup %5139 }
 0x553   :  { %496 = vrot.lane.b32.xlu0 %v5140_v30, %s5373_s10 }
 0x5a6   :  { %v599_v31 = vpop.permute.xlu1 %598 }
 0x5a7   :  { %v601_v32 = vadd.f32 %v599_v31, %v5500_v26 }
 0x5a9   :  { %5141 = vtanh.f32 %v601_v32 }
 0x5b3   :  { %v5142_v33 = vpop.eup %5141 }
 0x5b4   :  { %v604_v34 = vrot.slane %v5142_v33, 2 }
 0x5b6   :  { %v606_v35 = vsub.f32 %v314_v56, %v604_v34  ;;  %v621_v56 = vld [vmem:[#allocation5 + $0x50] sm:$0xff] }
 0x5b7   :  { %v5594_v60 = vpack.c.bf16 %v622_v58, %v621_v56 }
 0x5b8   :  { %v608_v36 = vrot.slane %v606_v35, 6 }
 0x5b9   :  { %4901 = vmatpush3.bf16.msra.mxu1 %v5594_v60 }
 0x5ba   :  { %609 = vrot.lane.b32.xlu0 %v608_v36, %s5375_s21  ;;  %4908 = vmatprep.subr.bf16.mxu1 %v5370_v0 }
 0x5c5   :  { %v497_v37 = vpop.permute.xlu0 %496 }
 0x5c6   :  { %v499_v38 = vsub.f32 %v5523_v51, %v497_v37  ;;  %v5579_v51 = vld [vmem:[%s6131_s5 + $0x4] sm:$0x3] }
 0x5c7   :  { %4488 = vmatmul.mubr.msk.f32.vlgmr.msra.gmra.mrb[6].mxu0 %vm78_vm1, %v5579_v51 }
 0x5c8   :  { %501 = vrot.lane.b32.xlu1 %v499_v38, %s5374_s15  ;;  %4916 = vmatpush3.bf16.msra.mxu0 %v5507_v42 }
 0x5c9   :  { %4917 = vmatprep.subr.bf16.mxu0 %v5370_v0  ;;  %4509 = vmatprep.mubr.msk.f32.mxu0 %vm5371_vm0, %v5372_v1 }
 0x5cc   :  { %4919 = vmatpush3.bf16.msra.mxu0 %v5510_v48 }
 0x5cd   :  { %4926 = vmatprep.subr.bf16.mxu0 %v5370_v0 }
 0x62c   :  { %v610_v39 = vpop.permute.xlu0 %609 }
 0x62d   :  { %v612_v40 = vmul.f32 %v5138_v24, %v610_v39 }
 0x62f   :  { %614 = vrot.lane.b32.xlu0 %v612_v40, %s5374_s15 }
 0x63a   :  { %v502_v52 = vpop.permute.xlu1 %501 }
 0x63b   :  { %v504_v53 = vmul.f32 %v5134_v14, %v502_v52 }
 0x63d   :  { %506 = vrot.lane.b32.xlu1 %v504_v53, %s5374_s15 }
 0x69a   :  { %v772_v6 = vpop.f32.mrb[6].mxu0 }
 0x69b   :  { %v4489_v7 = vpop.f32.mrb[7].mxu0 }
 0x6a1   :  { %v615_v61 = vpop.permute.xlu0 %614 }
 0x6a2   :  { %v5599_v63 = vadd.f32 %v5142_v33, %v615_v61 }
 0x6a4   :  { %v824_v2 = vrot.slane %v5599_v63, 2 }
 0x6a6   :  { %825 = vrot.lane.b32.xlu0 %v824_v2, %s5373_s10 }
 0x6af   :  { %v507_v3 = vpop.permute.xlu1 %506 }
 0x6b0   :  { %v5603_v4 = vadd.f32 %v5140_v30, %v507_v3 }
 0x6b2   :  { %624 = vrot.lane.b32.xlu1 %v5603_v4, %s5373_s10 }
 0x6b6   :  { %783 = vrot.lane.b32.xlu1 %v4140_v5, %s5373_s10 }
 0x718   :  { %v826_v12 = vpop.permute.xlu0 %825 }
 0x724   :  { %v625_v8 = vpop.permute.xlu1 %624 }
 0x725   :  { %4477 = vmatmul.mubr.msk.f32.vlgmr.msra.gmra.mrb[4].mxu1 %vm78_vm1, %v625_v8  ;;  %4510 = vmatmul.mubr.msk.f32.vlgmr.msra.gmra.mrb[8].mxu0 %vm78_vm1, %v625_v8 }
 0x726   :  { %4910 = vmatpush3.bf16.msra.mxu1 %v5512_v49  ;;  %4498 = vmatprep.mubr.msk.f32.mxu1 %vm5371_vm0, %v5372_v1 }
 0x727   :  { %4911 = vmatprep.subr.bf16.mxu1 %v5370_v0  ;;  %4928 = vmatpush3.bf16.msra.mxu0 %v5591_v57 }
 0x728   :  { %v5618_v10 = vpop.permute.xlu1 %783  ;;  %4929 = vmatprep.subr.bf16.mxu0 %v5370_v0  ;;  %4531 = vmatprep.mubr.msk.f32.mxu0 %vm5371_vm0, %v5372_v1 }
 0x729   :  { %v786_v11 = vadd.f32 %v5618_v10, %v772_v6 }
 0x72a   :  { %4913 = vmatpush3.bf16.msra.mxu1 %v5516_v50 }
 0x72b   :  { %4920 = vmatprep.subr.bf16.mxu1 %v5370_v0  ;;  %788 = vrot.lane.b32.xlu0 %v786_v11, %s5373_s10 }
 0x72c   :  { %4931 = vmatpush3.bf16.msra.mxu0 %v5594_v60 }
 0x72d   :  { %4499 = vmatmul.mubr.msk.f32.vlgmr.msra.gmra.mrb[6].mxu1 %vm78_vm1, %v826_v12  ;;  %4938 = vmatprep.subr.bf16.mxu0 %v5370_v0 }
 0x72e   :  { %4922 = vmatpush3.bf16.msra.mxu1 %v5468_v9  ;;  %4520 = vmatprep.mubr.msk.f32.mxu1 %vm5371_vm0, %v5372_v1 }
 0x72f   :  { %4923 = vmatprep.subr.bf16.mxu1 %v5370_v0 }
 0x732   :  { %4925 = vmatpush3.bf16.msra.mxu1 %v5475_v15 }
 0x733   :  { %4932 = vmatprep.subr.bf16.mxu1 %v5370_v0 }
 0x735   :  { %4521 = vmatmul.mubr.msk.f32.vlgmr.msra.gmra.mrb[8].mxu1 %vm78_vm1, %v826_v12 }
 0x736   :  { %4934 = vmatpush3.bf16.msra.mxu1 %v5569_v45  ;;  %4542 = vmatprep.mubr.msk.f32.mxu1 %vm5371_vm0, %v5372_v1 }
 0x737   :  { %4935 = vmatprep.subr.bf16.mxu1 %v5370_v0 }
 0x73a   :  { %4937 = vmatpush3.bf16.msra.mxu1 %v5572_v47 }
 0x73b   :  { %4944 = vmatprep.subr.bf16.mxu1 %v5370_v0 }
 0x79d   :  { %v789_v34 = vpop.permute.xlu0 %788 }
 0x7f8   :  { %v694_v14 = vpop.f32.mrb[4].mxu1  ;;  %v969_v16 = vpop.f32.mrb[8].mxu0 }
 0x7f9   :  { %v695_v17 = vadd.f32 %v5646_v13, %v694_v14  ;;  %v980_v19 = vadd.f32 %v969_v16, %v5538_v59  ;;  %v4478_v20 = vpop.f32.mrb[5].mxu1  ;;  %v4511_v21 = vpop.f32.mrb[9].mxu0 }
 0x7fb   :  { %v776_v23 = vadd.f32 %v772_v6, %v695_v17  ;;  %982 = vrot.lane.b32.xlu1 %v980_v19, %s5373_s10 }
 0x7fd   :  { %v4152_v24 = vmul.f32 -1.442695, %v776_v23 }
 0x7ff   :  { %5143 = vpow2.f32 %v4152_v24 }
 0x800   :  { %v895_v25 = vpop.f32.mrb[6].mxu1 }
 0x801   :  { %v4500_v27 = vpop.f32.mrb[7].mxu1  ;;  %v896_v37 = vadd.f32 %v5555_v62, %v895_v25 }
 0x803   :  { %v973_v38 = vadd.f32 %v969_v16, %v896_v37 }
 0x805   :  { %v4155_v39 = vmul.f32 -1.442695, %v973_v38 }
 0x808   :  { %v1073_v28 = vpop.f32.mrb[8].mxu1 }
 0x809   :  { %v5144_v29 = vpop.eup %5143  ;;  %v1087_v30 = vadd.f32 %v1073_v28, %v5491_v18  ;;  %v4522_v31 = vpop.f32.mrb[9].mxu1  ;;  %v1078_v40 = vrot.slane %v1073_v28, 4 }
 0x80a   :  { %v780_v32 = vadd.f32 1.0, %v5144_v29 }
 0x80b   :  { %v1089_v33 = vrot.slane %v1087_v30, 4  ;;  %v1080_v43 = vadd.f32 %v1078_v40, %v5500_v26 }
 0x80c   :  { %5145 = vrcp.f32 %v780_v32 }
 0x80d   :  { %1090 = vrot.lane.b32.xlu0 %v1089_v33, %s5373_s10  ;;  %5147 = vpow2.f32 %v4155_v39  ;;  %v4157_v46 = vmul.f32 -1.442695, %v1080_v43 }
 0x816   :  { %v5146_v35 = vpop.eup %5145 }
 0x817   :  { %v791_v36 = vmul.f32 %v5146_v35, %v789_v34  ;;  %v5148_v41 = vpop.eup %5147 }
 0x818   :  { %v977_v44 = vadd.f32 1.0, %v5148_v41 }
 0x819   :  { %793 = vrot.lane.b32.xlu1 %v791_v36, %s5373_s10 }
 0x81a   :  { %5149 = vrcp.f32 %v977_v44 }
 0x81b   :  { %5151 = vpow2.f32 %v4157_v46 }
 0x824   :  { %v5150_v52 = vpop.eup %5149 }
 0x825   :  { %v5152_v54 = vpop.eup %5151 }
 0x826   :  { %v1084_v56 = vadd.f32 1.0, %v5152_v54 }
 0x828   :  { %5153 = vrcp.f32 %v1084_v56 }
 0x832   :  { %v5154_v58 = vpop.eup %5153 }
 0x86d   :  { %v983_v53 = vpop.permute.xlu1 %982 }
 0x86e   :  { %v985_v55 = vmul.f32 %v5150_v52, %v983_v53 }
 0x870   :  { %987 = vrot.lane.b32.xlu0 %v985_v55, %s5373_s10 }
 0x87f   :  { %v1091_v61 = vpop.permute.xlu0 %1090 }
 0x880   :  { %v1093_v2 = vmul.f32 %v5154_v58, %v1091_v61 }
 0x882   :  { %1095 = vrot.lane.b32.xlu1 %v1093_v2, %s5373_s10 }
 0x88b   :  { %v794_v3 = vpop.permute.xlu1 %793 }
 0x88c   :  { %v796_v5 = vadd.f32 %v794_v3, %v695_v17 }
 0x88e   :  { %5155 = vtanh.f32 %v796_v5 }
 0x898   :  { %v5156_v6 = vpop.eup %5155 }
 0x899   :  { %799 = vrot.lane.b32.xlu0 %v5156_v6, %s5373_s10 }
 0x8e2   :  { %v988_v7 = vpop.permute.xlu0 %987 }
 0x8e3   :  { %v990_v8 = vadd.f32 %v988_v7, %v896_v37 }
 0x8e5   :  { %5157 = vtanh.f32 %v990_v8 }
 0x8ef   :  { %v5158_v11 = vpop.eup %5157 }
 0x8f0   :  { %v992_v12 = vsub.f32 %v5603_v4, %v5158_v11 }
 0x8f2   :  { %994 = vrot.lane.b32.xlu1 %v992_v12, %s5375_s21 }
 0x8f4   :  { %v1096_v14 = vpop.permute.xlu1 %1095 }
 0x8f5   :  { %v1098_v16 = vadd.f32 %v1096_v14, %v5500_v26 }
 0x8f7   :  { %5159 = vtanh.f32 %v1098_v16 }
 0x901   :  { %v5160_v19 = vpop.eup %5159 }
 0x902   :  { %v1101_v20 = vrot.slane %v5160_v19, 2 }
 0x904   :  { %v1103_v17 = vsub.f32 %v5599_v63, %v1101_v20 }
 0x906   :  { %v1105_v21 = vrot.slane %v1103_v17, 6 }
 0x908   :  { %1106 = vrot.lane.b32.xlu0 %v1105_v21, %s5375_s21 }
 0x90b   :  { %v800_v23 = vpop.permute.xlu0 %799 }
 0x90c   :  { %v802_v24 = vsub.f32 %v5579_v51, %v800_v23 }
 0x90e   :  { %804 = vrot.lane.b32.xlu1 %v802_v24, %s5374_s15 }
 0x964   :  { %v995_v25 = vpop.permute.xlu1 %994 }
 0x965   :  { %v997_v4 = vmul.f32 %v5150_v52, %v995_v25 }
 0x967   :  { %999 = vrot.lane.b32.xlu0 %v997_v4, %s5374_s15 }
 0x97a   :  { %v1107_v27 = vpop.permute.xlu0 %1106 }
 0x97b   :  { %v1109_v28 = vmul.f32 %v5154_v58, %v1107_v27 }
 0x97d   :  { %1111 = vrot.lane.b32.xlu1 %v1109_v28, %s5374_s15 }
 0x980   :  { %v805_v29 = vpop.permute.xlu1 %804 }
 0x981   :  { %v807_v30 = vmul.f32 %v5146_v35, %v805_v29 }
 0x983   :  { %809 = vrot.lane.b32.xlu0 %v807_v30, %s5374_s15 }
 0x9d9   :  { %v1000_v63 = vpop.permute.xlu0 %999 }
 0x9da   :  { %v5669_v31 = vadd.f32 %v5158_v11, %v1000_v63 }
 0x9dc   :  { %1120 = vrot.lane.b32.xlu1 %v5669_v31, %s5373_s10 }
 0x9ef   :  { %v1112_v51 = vpop.permute.xlu1 %1111 }
 0x9f0   :  { %v5673_v32 = vadd.f32 %v5160_v19, %v1112_v51 }
 0x9f2   :  { %v1311_v33 = vrot.slane %v5673_v32, 4 }
 0x9f4   :  { %1312 = vrot.lane.b32.xlu1 %v1311_v33, %s5373_s10 }
 0x9f5   :  { %v810_v34 = vpop.permute.xlu0 %809 }
 0x9f6   :  { %v5677_v36 = vadd.f32 %v5156_v6, %v810_v34 }
 0x9f8   :  { %814 = vrot.lane.b32.xlu0 %v5677_v36, %s5373_s10 }
 0xa4e   :  { %v1121_v35 = vpop.permute.xlu1 %1120 }
 0xa4f   :  { %4532 = vmatmul.mubr.msk.f32.vlgmr.msra.gmra.mrb[10].mxu0 %vm78_vm1, %v1121_v35 }
 0xa50   :  { %4940 = vmatpush3.bf16.msra.mxu0 %v5512_v49  ;;  %4553 = vmatprep.mubr.msk.f32.mxu0 %vm5371_vm0, %v5372_v1 }
 0xa51   :  { %4941 = vmatprep.subr.bf16.mxu0 %v5370_v0 }
 0xa54   :  { %4943 = vmatpush3.bf16.msra.mxu0 %v5516_v50 }
 0xa55   :  { %4950 = vmatprep.subr.bf16.mxu0 %v5370_v0 }
 0xa66   :  { %v1313_v37 = vpop.permute.xlu1 %1312 }
 0xa67   :  { %4554 = vmatmul.mubr.msk.f32.vlgmr.msra.gmra.mrb[12].mxu0 %vm78_vm1, %v1313_v37 }
 0xa68   :  { %4952 = vmatpush3.bf16.msra.mxu0 %v5468_v9  ;;  %4575 = vmatprep.mubr.msk.f32.mxu0 %vm5371_vm0, %v5372_v1 }
 0xa69   :  { %4953 = vmatprep.subr.bf16.mxu0 %v5370_v0 }
 0xa6a   :  { %v815_v38 = vpop.permute.xlu0 %814 }
 0xa6b   :  { %818 = vst.msk [vmem:[#allocation8] sm:$0x3] %vm817_vm2, %v815_v38  ;;  %4543 = vmatmul.mubr.msk.f32.vlgmr.msra.gmra.mrb[10].mxu1 %vm78_vm1, %v815_v38 }
 0xa6c   :  { %4955 = vmatpush3.bf16.msra.mxu0 %v5475_v15  ;;  %4946 = vmatpush3.bf16.msra.mxu1 %v5507_v42 }
 0xa6d   :  { %4947 = vmatprep.subr.bf16.mxu1 %v5370_v0  ;;  %4564 = vmatprep.mubr.msk.f32.mxu1 %vm5371_vm0, %v5372_v1 }
 0xa6e   :  { %4962 = vmatprep.subr.bf16.mxu0 %v5370_v0 }
 0xa6f   :  { %4576 = vmatmul.mubr.msk.f32.vlgmr.msra.gmra.mrb[14].mxu0 %vm78_vm1, %v1313_v37 }
 0xa70   :  { %4949 = vmatpush3.bf16.msra.mxu1 %v5510_v48  ;;  %4964 = vmatpush3.bf16.msra.mxu0 %v5569_v45 }
 0xa71   :  { %4956 = vmatprep.subr.bf16.mxu1 %v5370_v0  ;;  %4965 = vmatprep.subr.bf16.mxu0 %v5370_v0 }
 0xa72   :  { %4597 = vmatprep.mubr.msk.f32.mxu0 %vm5371_vm0, %v5372_v1 }
 0xa73   :  { %4565 = vmatmul.mubr.msk.f32.vlgmr.msra.gmra.mrb[12].mxu1 %vm78_vm1, %v1121_v35 }
 0xa74   :  { %4958 = vmatpush3.bf16.msra.mxu1 %v5591_v57  ;;  %4586 = vmatprep.mubr.msk.f32.mxu1 %vm5371_vm0, %v5372_v1 }
 0xa75   :  { %4959 = vmatprep.subr.bf16.mxu1 %v5370_v0  ;;  %4967 = vmatpush3.bf16.msra.mxu0 %v5572_v47 }
 0xa76   :  { %4974 = vmatprep.subr.bf16.mxu0 %v5370_v0 }
 0xa78   :  { %4961 = vmatpush3.bf16.msra.mxu1 %v5594_v60 }
 0xa79   :  { %4968 = vmatprep.subr.bf16.mxu1 %v5370_v0 }
 0xb22   :  { %v1190_v39 = vpop.f32.mrb[10].mxu0 }
 0xb23   :  { %v4533_v40 = vpop.f32.mrb[11].mxu0  ;;  %v1191_v8 = vadd.f32 %v5646_v13, %v1190_v39 }
 0xb3a   :  { %v1382_v41 = vpop.f32.mrb[12].mxu0 }
 0xb3b   :  { %v4555_v43 = vpop.f32.mrb[13].mxu0  ;;  %v1383_v5 = vadd.f32 %v5555_v62, %v1382_v41 }
 0xb3e   :  { %v1266_v44 = vpop.f32.mrb[10].mxu1 }
 0xb3f   :  { %v4544_v46 = vpop.f32.mrb[11].mxu1  ;;  %v1277_v2 = vadd.f32 %v1266_v44, %v5618_v10  ;;  %v1270_v12 = vadd.f32 %v1266_v44, %v1191_v8 }
 0xb41   :  { %v4160_v16 = vmul.f32 -1.442695, %v1270_v12 }
 0xb42   :  { %v1560_v52 = vpop.f32.mrb[14].mxu0 }
 0xb43   :  { %v1574_v53 = vadd.f32 %v1560_v52, %v5491_v18  ;;  %v4577_v54 = vpop.f32.mrb[15].mxu0  ;;  %v1565_v3 = vrot.slane %v1560_v52, 2 }
 0xb45   :  { %v1576_v55 = vrot.slane %v1574_v53, 2  ;;  %v1567_v6 = vadd.f32 %v1565_v3, %v5500_v26 }
 0xb46   :  { %v1456_v56 = vpop.f32.mrb[12].mxu1 }
 0xb47   :  { %1577 = vrot.lane.b32.xlu1 %v1576_v55, %s5373_s10  ;;  %v1467_v58 = vadd.f32 %v1456_v56, %v5538_v59  ;;  %v4566_v61 = vpop.f32.mrb[13].mxu1  ;;  %v1460_v7 = vadd.f32 %v1456_v56, %v1383_v5  ;;  %v4165_v11 = vmul.f32 -1.442695, %v1567_v6 }
 0xb49   :  { %1469 = vrot.lane.b32.xlu0 %v1467_v58, %s5373_s10  ;;  %v4163_v14 = vmul.f32 -1.442695, %v1460_v7  ;;  %5161 = vpow2.f32 %v4165_v11 }
 0xb4b   :  { %5163 = vpow2.f32 %v4163_v14 }
 0xb4c   :  { %5165 = vpow2.f32 %v4160_v16 }
 0xb4d   :  { %1279 = vrot.lane.b32.xlu0 %v1277_v2, %s5373_s10 }
 0xb53   :  { %v5162_v19 = vpop.eup %5161 }
 0xb54   :  { %v1571_v17 = vadd.f32 1.0, %v5162_v19 }
 0xb55   :  { %v5164_v20 = vpop.eup %5163 }
 0xb56   :  { %v1464_v21 = vadd.f32 1.0, %v5164_v20  ;;  %v5166_v23 = vpop.eup %5165  ;;  %5167 = vrcp.f32 %v1571_v17 }
 0xb57   :  { %v1274_v24 = vadd.f32 1.0, %v5166_v23 }
 0xb58   :  { %5169 = vrcp.f32 %v1464_v21 }
 0xb59   :  { %5171 = vrcp.f32 %v1274_v24 }
 0xb60   :  { %v5168_v25 = vpop.eup %5167 }
 0xb62   :  { %v5170_v28 = vpop.eup %5169 }
 0xb63   :  { %v5172_v63 = vpop.eup %5171 }
 0xbb9   :  { %v1578_v4 = vpop.permute.xlu1 %1577 }
 0xbba   :  { %v1580_v27 = vmul.f32 %v5168_v25, %v1578_v4 }
 0xbbb   :  { %v1470_v29 = vpop.permute.xlu0 %1469 }
 0xbbc   :  { %1582 = vrot.lane.b32.xlu0 %v1580_v27, %s5373_s10  ;;  %v1472_v30 = vmul.f32 %v5170_v28, %v1470_v29 }
 0xbbe   :  { %1474 = vrot.lane.b32.xlu1 %v1472_v30, %s5373_s10 }
 0xbbf   :  { %v1280_v51 = vpop.permute.xlu0 %1279 }
 0xbc0   :  { %v1282_v33 = vmul.f32 %v5172_v63, %v1280_v51 }
 0xbc2   :  { %1284 = vrot.lane.b32.xlu1 %v1282_v33, %s5373_s10 }
 0xc2e   :  { %v1583_v34 = vpop.permute.xlu0 %1582 }
 0xc2f   :  { %v1585_v35 = vadd.f32 %v1583_v34, %v5500_v26 }
 0xc30   :  { %v1475_v37 = vpop.permute.xlu1 %1474 }
 0xc31   :  { %5173 = vtanh.f32 %v1585_v35  ;;  %v1477_v38 = vadd.f32 %v1475_v37, %v1383_v5 }
 0xc33   :  { %5175 = vtanh.f32 %v1477_v38 }
 0xc34   :  { %v1285_v39 = vpop.permute.xlu1 %1284 }
 0xc35   :  { %v1287_v40 = vadd.f32 %v1285_v39, %v1191_v8 }
 0xc37   :  { %5177 = vtanh.f32 %v1287_v40 }
 0xc3b   :  { %v5174_v41 = vpop.eup %5173 }
 0xc3c   :  { %v1588_v43 = vrot.slane %v5174_v41, 2 }
 0xc3d   :  { %v5176_v44 = vpop.eup %5175 }
 0xc3e   :  { %v1479_v46 = vsub.f32 %v5669_v31, %v5176_v44  ;;  %v1590_v52 = vsub.f32 %v5673_v32, %v1588_v43 }
 0xc40   :  { %1481 = vrot.lane.b32.xlu0 %v1479_v46, %s5375_s21  ;;  %v1592_v54 = vrot.slane %v1590_v52, 6 }
 0xc41   :  { %v5178_v53 = vpop.eup %5177 }
 0xc42   :  { %v1289_v26 = vsub.f32 %v5677_v36, %v5178_v53 }
 0xc44   :  { %1593 = vrot.lane.b32.xlu0 %v1592_v54, %s5375_s21  ;;  %1291 = vrot.lane.b32.xlu1 %v1289_v26, %s5375_s21 }
 0xcb2   :  { %v1482_v55 = vpop.permute.xlu0 %1481 }
 0xcb3   :  { %v1484_v56 = vmul.f32 %v5170_v28, %v1482_v55 }
 0xcb5   :  { %1486 = vrot.lane.b32.xlu1 %v1484_v56, %s5374_s15 }
 0xcb6   :  { %v1594_v58 = vpop.permute.xlu0 %1593  ;;  %v1292_v61 = vpop.permute.xlu1 %1291 }
 0xcb7   :  { %v1596_v2 = vmul.f32 %v5168_v25, %v1594_v58  ;;  %v1294_v31 = vmul.f32 %v5172_v63, %v1292_v61 }
 0xcb9   :  { %1598 = vrot.lane.b32.xlu1 %v1596_v2, %s5374_s15  ;;  %1296 = vrot.lane.b32.xlu0 %v1294_v31, %s5374_s15 }
 0xd27   :  { %v1487_v32 = vpop.permute.xlu1 %1486 }
 0xd28   :  { %v5739_v3 = vadd.f32 %v5176_v44, %v1487_v32 }
 0xd2a   :  { %1607 = vrot.lane.b32.xlu0 %v5739_v3, %s5373_s10 }
 0xd2b   :  { %v1297_v36 = vpop.permute.xlu0 %1296  ;;  %v1599_v5 = vpop.permute.xlu1 %1598 }
 0xd2c   :  { %v5743_v6 = vadd.f32 %v5178_v53, %v1297_v36  ;;  %v5745_v7 = vadd.f32 %v5174_v41, %v1599_v5 }
 0xd2e   :  { %v1798_v8 = vrot.slane %v5745_v7, 6  ;;  %1301 = vrot.lane.b32.xlu1 %v5743_v6, %s5373_s10 }
 0xd30   :  { %1799 = vrot.lane.b32.xlu0 %v1798_v8, %s5373_s10 }
 0xd9c   :  { %v1608_v11 = vpop.permute.xlu0 %1607 }
 0xd9d   :  { %4587 = vmatmul.mubr.msk.f32.vlgmr.msra.gmra.mrb[14].mxu1 %vm78_vm1, %v1608_v11 }
 0xd9e   :  { %4970 = vmatpush3.bf16.msra.mxu1 %v5512_v49  ;;  %4608 = vmatprep.mubr.msk.f32.mxu1 %vm5371_vm0, %v5372_v1 }
 0xd9f   :  { %4971 = vmatprep.subr.bf16.mxu1 %v5370_v0 }
 0xda0   :  { %v1302_v12 = vpop.permute.xlu1 %1301 }
 0xda1   :  { %1305 = vst.msk [vmem:[#allocation8 + $0x2] sm:$0x3] %vm817_vm2, %v1302_v12  ;;  %4598 = vmatmul.mubr.msk.f32.vlgmr.msra.gmra.mrb[16].mxu0 %vm78_vm1, %v1302_v12 }
 0xda2   :  { %4973 = vmatpush3.bf16.msra.mxu1 %v5516_v50  ;;  %4976 = vmatpush3.bf16.msra.mxu0 %v5507_v42  ;;  %v1800_v14 = vpop.permute.xlu0 %1799 }
 0xda3   :  { %4977 = vmatprep.subr.bf16.mxu0 %v5370_v0  ;;  %4980 = vmatprep.subr.bf16.mxu1 %v5370_v0 }
 0xda4   :  { %4619 = vmatprep.mubr.msk.f32.mxu0 %vm5371_vm0, %v5372_v1 }
 0xda5   :  { %4609 = vmatmul.mubr.msk.f32.vlgmr.msra.gmra.mrb[16].mxu1 %vm78_vm1, %v1800_v14 }
 0xda6   :  { %4979 = vmatpush3.bf16.msra.mxu0 %v5510_v48  ;;  %4982 = vmatpush3.bf16.msra.mxu1 %v5468_v9 }
 0xda7   :  { %4983 = vmatprep.subr.bf16.mxu1 %v5370_v0  ;;  %4630 = vmatprep.mubr.msk.f32.mxu1 %vm5371_vm0, %v5372_v1 }
 0xda8   :  { %4986 = vmatprep.subr.bf16.mxu0 %v5370_v0 }
 0xda9   :  { %4620 = vmatmul.mubr.msk.f32.vlgmr.msra.gmra.mrb[18].mxu0 %vm78_vm1, %v1608_v11 }
 0xdaa   :  { %4985 = vmatpush3.bf16.msra.mxu1 %v5475_v15  ;;  %4988 = vmatpush3.bf16.msra.mxu0 %v5591_v57 }
 0xdab   :  { %4992 = vmatprep.subr.bf16.mxu1 %v5370_v0  ;;  %4989 = vmatprep.subr.bf16.mxu0 %v5370_v0 }
 0xdac   :  { %4641 = vmatprep.mubr.msk.f32.mxu0 %vm5371_vm0, %v5372_v1 }
 0xdad   :  { %4631 = vmatmul.mubr.msk.f32.vlgmr.msra.gmra.mrb[18].mxu1 %vm78_vm1, %v1800_v14 }
 0xdae   :  { %4994 = vmatpush3.bf16.msra.mxu1 %v5569_v45  ;;  %4652 = vmatprep.mubr.msk.f32.mxu1 %vm5371_vm0, %v5372_v1 }
 0xdaf   :  { %4995 = vmatprep.subr.bf16.mxu1 %v5370_v0  ;;  %4991 = vmatpush3.bf16.msra.mxu0 %v5594_v60 }
 0xdb0   :  { %4998 = vmatprep.subr.bf16.mxu0 %v5370_v0 }
 0xdb2   :  { %4997 = vmatpush3.bf16.msra.mxu1 %v5572_v47 }
 0xdb3   :  { %5004 = vmatprep.subr.bf16.mxu1 %v5370_v0 }
 0xe70   :  { %v1677_v9 = vpop.f32.mrb[14].mxu1 }
 0xe71   :  { %v4588_v15 = vpop.f32.mrb[15].mxu1  ;;  %v1678_v17 = vadd.f32 %v5646_v13, %v1677_v9 }
 0xe74   :  { %v1753_v42 = vpop.f32.mrb[16].mxu0 }
 0xe75   :  { %v1764_v48 = vadd.f32 %v1753_v42, %v5618_v10  ;;  %v4599_v49 = vpop.f32.mrb[17].mxu0  ;;  %v1757_v21 = vadd.f32 %v1753_v42, %v1678_v17 }
 0xe77   :  { %1766 = vrot.lane.b32.xlu1 %v1764_v48, %s5373_s10  ;;  %v4168_v23 = vmul.f32 -1.442695, %v1757_v21 }
 0xe78   :  { %v1869_v50 = vpop.f32.mrb[16].mxu1 }
 0xe79   :  { %v4610_v45 = vpop.f32.mrb[17].mxu1  ;;  %v1870_v24 = vadd.f32 %v5555_v62, %v1869_v50  ;;  %5179 = vpow2.f32 %v4168_v23  ;;  %v2355_v50 = vld [vmem:[#allocation7 + $0x20] sm:$0xff]  ;;  %v2278_v23 = vld [vmem:[#allocation5 + $0x30] sm:$0xff] }
 0xe7a   :  { %v2356_v45 = vld [vmem:[#allocation7 + $0x28] sm:$0xff] }
 0xe7c   :  { %v1943_v57 = vpop.f32.mrb[18].mxu0 }
 0xe7d   :  { %v1954_v16 = vadd.f32 %v1943_v57, %v5538_v59  ;;  %v4621_v60 = vpop.f32.mrb[19].mxu0  ;;  %v1947_v25 = vadd.f32 %v1943_v57, %v1870_v24  ;;  %v5821_v57 = vpack.c.bf16 %v2356_v45, %v2355_v50 }
 0xe7e   :  { %v2358_v60 = vld [vmem:[#allocation7 + $0x38] sm:$0xff] }
 0xe7f   :  { %1956 = vrot.lane.b32.xlu0 %v1954_v16, %s5373_s10  ;;  %v4171_v4 = vmul.f32 -1.442695, %v1947_v25  ;;  %v2357_v16 = vld [vmem:[#allocation7 + $0x30] sm:$0xff] }
 0xe80   :  { %v2047_v19 = vpop.f32.mrb[18].mxu1 }
 0xe81   :  { %v2058_v47 = vadd.f32 %v2047_v19, %v5491_v18  ;;  %v4632_v20 = vpop.f32.mrb[19].mxu1  ;;  %v2051_v27 = vadd.f32 %v2047_v19, %v5496_v22  ;;  %5181 = vpow2.f32 %v4171_v4 }
 0xe82   :  { %v2276_v20 = vld [vmem:[#allocation5 + $0x20] sm:$0xff] }
 0xe83   :  { %2060 = vrot.lane.b32.xlu1 %v2058_v47, %s5373_s10  ;;  %v4173_v28 = vmul.f32 -1.442695, %v2051_v27  ;;  %v5180_v29 = vpop.eup %5179  ;;  %v5826_v47 = vpack.c.bf16 %v2358_v60, %v2357_v16  ;;  %v2459_v27 = vld [vmem:[#allocation7] sm:$0xff] }
 0xe84   :  { %v1761_v30 = vadd.f32 1.0, %v5180_v29 }
 0xe85   :  { %5183 = vpow2.f32 %v4173_v28  ;;  %v2460_v28 = vld [vmem:[#allocation7 + $0x8] sm:$0xff] }
 0xe86   :  { %5185 = vrcp.f32 %v1761_v30  ;;  %v5846_v29 = vpack.c.bf16 %v2460_v28, %v2459_v27  ;;  %v2461_v30 = vld [vmem:[#allocation7 + $0x10] sm:$0xff] }
 0xe8b   :  { %v5182_v63 = vpop.eup %5181 }
 0xe8c   :  { %v1951_v51 = vadd.f32 1.0, %v5182_v63  ;;  %v2462_v63 = vld [vmem:[#allocation7 + $0x18] sm:$0xff] }
 0xe8e   :  { %5187 = vrcp.f32 %v1951_v51 }
 0xe8f   :  { %v5184_v33 = vpop.eup %5183 }
 0xe90   :  { %v2055_v34 = vadd.f32 1.0, %v5184_v33  ;;  %v5186_v35 = vpop.eup %5185  ;;  %v5851_v33 = vpack.c.bf16 %v2462_v63, %v2461_v30 }
 0xe92   :  { %5189 = vrcp.f32 %v2055_v34 }
 0xe98   :  { %v5188_v62 = vpop.eup %5187 }
 0xe9c   :  { %v5190_v41 = vpop.eup %5189 }
 0xee9   :  { %v1767_v37 = vpop.permute.xlu1 %1766 }
 0xeea   :  { %v1769_v38 = vmul.f32 %v5186_v35, %v1767_v37 }
 0xeec   :  { %1771 = vrot.lane.b32.xlu0 %v1769_v38, %s5373_s10 }
 0xef1   :  { %v1957_v39 = vpop.permute.xlu0 %1956 }
 0xef2   :  { %v1959_v40 = vmul.f32 %v5188_v62, %v1957_v39 }
 0xef4   :  { %1961 = vrot.lane.b32.xlu1 %v1959_v40, %s5373_s10 }
 0xef5   :  { %v2061_v43 = vpop.permute.xlu1 %2060 }
 0xef6   :  { %v2063_v44 = vmul.f32 %v5190_v41, %v2061_v43 }
 0xef8   :  { %2065 = vrot.lane.b32.xlu0 %v2063_v44, %s5373_s10 }
 0xf5e   :  { %v1772_v46 = vpop.permute.xlu0 %1771 }
 0xf5f   :  { %v1774_v52 = vadd.f32 %v1772_v46, %v1678_v17  ;;  %v2277_v17 = vld [vmem:[#allocation5 + $0x28] sm:$0xff] }
 0xf60   :  { %v5832_v21 = vpack.c.bf16 %v2277_v17, %v2276_v20 }
 0xf61   :  { %5191 = vtanh.f32 %v1774_v52 }
 0xf66   :  { %v1962_v53 = vpop.permute.xlu1 %1961 }
 0xf67   :  { %v1964_v54 = vadd.f32 %v1962_v53, %v1870_v24  ;;  %v2279_v24 = vld [vmem:[#allocation5 + $0x38] sm:$0xff] }
 0xf68   :  { %v5838_v4 = vpack.c.bf16 %v2279_v24, %v2278_v23 }
 0xf69   :  { %5193 = vtanh.f32 %v1964_v54 }
 0xf6a   :  { %v2066_v26 = vpop.permute.xlu0 %2065 }
 0xf6b   :  { %v5192_v55 = vpop.eup %5191  ;;  %v2068_v56 = vadd.f32 %v2066_v26, %v5496_v22 }
 0xf6c   :  { %v1776_v58 = vsub.f32 %v5743_v6, %v5192_v55 }
 0xf6d   :  { %5195 = vtanh.f32 %v2068_v56 }
 0xf6e   :  { %1778 = vrot.lane.b32.xlu1 %v1776_v58, %s5375_s21  ;;  %v5871_v58 = vld [vmem:[%s6129_s3 + $0x1] ss:$0 sm:$0xff] }
 0xf73   :  { %v5194_v61 = vpop.eup %5193 }
 0xf74   :  { %v1966_v2 = vsub.f32 %v5739_v3, %v5194_v61 }
 0xf76   :  { %1968 = vrot.lane.b32.xlu0 %v1966_v2, %s5375_s21 }
 0xf77   :  { %v5196_v31 = vpop.eup %5195 }
 0xf78   :  { %v2071_v32 = vrot.slane %v5196_v31, 2 }
 0xf7a   :  { %v2073_v36 = vsub.f32 %v5745_v7, %v2071_v32 }
 0xf7c   :  { %v2075_v5 = vrot.slane %v2073_v36, 6 }
 0xf7e   :  { %2076 = vrot.lane.b32.xlu1 %v2075_v5, %s5375_s21 }
 0xfe0   :  { %v1779_v8 = vpop.permute.xlu1 %1778 }
 0xfe1   :  { %v1781_v11 = vmul.f32 %v5186_v35, %v1779_v8 }
 0xfe3   :  { %1783 = vrot.lane.b32.xlu0 %v1781_v11, %s5374_s15 }
 0xfe8   :  { %v1969_v6 = vpop.permute.xlu0 %1968 }
 0xfe9   :  { %v1971_v12 = vmul.f32 %v5188_v62, %v1969_v6 }
 0xfeb   :  { %1973 = vrot.lane.b32.xlu1 %v1971_v12, %s5374_s15 }
 0xff0   :  { %v2077_v14 = vpop.permute.xlu1 %2076 }
 0xff1   :  { %v2079_v9 = vmul.f32 %v5190_v41, %v2077_v14 }
 0xff3   :  { %2081 = vrot.lane.b32.xlu0 %v2079_v9, %s5374_s15 }
0x1055   :  { %v1784_v3 = vpop.permute.xlu0 %1783 }
0x1056   :  { %v5809_v15 = vadd.f32 %v5192_v55, %v1784_v3 }
0x1058   :  { %1788 = vrot.lane.b32.xlu1 %v5809_v15, %s5373_s10 }
0x105d   :  { %v1974_v7 = vpop.permute.xlu1 %1973 }
0x105e   :  { %v5813_v42 = vadd.f32 %v5194_v61, %v1974_v7 }
0x1060   :  { %2090 = vrot.lane.b32.xlu0 %v5813_v42, %s5373_s10 }
0x1065   :  { %v2082_v48 = vpop.permute.xlu0 %2081 }
0x1066   :  { %v5817_v49 = vadd.f32 %v5196_v31, %v2082_v48 }
0x1068   :  { %2281 = vrot.lane.b32.xlu1 %v5817_v49, %s5373_s10 }
0x10ca   :  { %v1789_v19 = vpop.permute.xlu1 %1788 }
0x10cb   :  { %1792 = vst.msk [vmem:[#allocation8 + $0x4] sm:$0x3] %vm817_vm2, %v1789_v19  ;;  %4653 = vmatmul.mubr.msk.f32.vlgmr.msra.gmra.mrb[20].mxu1 %vm78_vm1, %v1789_v19 }
0x10cc   :  { %5006 = vmatpush3.bf16.msra.mxu1 %v5821_v57  ;;  %4674 = vmatprep.mubr.msk.f32.mxu1 %vm5371_vm0, %v5372_v1 }
0x10cd   :  { %5007 = vmatprep.subr.bf16.mxu1 %v5370_v0 }
0x10d0   :  { %5009 = vmatpush3.bf16.msra.mxu1 %v5826_v47 }
0x10d1   :  { %5016 = vmatprep.subr.bf16.mxu1 %v5370_v0 }
0x10d2   :  { %v2091_v25 = vpop.permute.xlu0 %2090 }
0x10d3   :  { %4642 = vmatmul.mubr.msk.f32.vlgmr.msra.gmra.mrb[20].mxu0 %vm78_vm1, %v2091_v25  ;;  %4675 = vmatmul.mubr.msk.f32.vlgmr.msra.gmra.mrb[22].mxu1 %vm78_vm1, %v2091_v25 }
0x10d4   :  { %5000 = vmatpush3.bf16.msra.mxu0 %v5832_v21  ;;  %4663 = vmatprep.mubr.msk.f32.mxu0 %vm5371_vm0, %v5372_v1 }
0x10d5   :  { %5001 = vmatprep.subr.bf16.mxu0 %v5370_v0  ;;  %4696 = vmatprep.mubr.msk.f32.mxu1 %vm5371_vm0, %v5372_v1 }
0x10d8   :  { %5003 = vmatpush3.bf16.msra.mxu0 %v5838_v4 }
0x10d9   :  { %5010 = vmatprep.subr.bf16.mxu0 %v5370_v0 }
0x10da   :  { %v2282_v51 = vpop.permute.xlu1 %2281 }
0x10db   :  { %4664 = vmatmul.mubr.msk.f32.vlgmr.msra.gmra.mrb[22].mxu0 %vm78_vm1, %v2282_v51 }
0x10dc   :  { %5012 = vmatpush3.bf16.msra.mxu0 %v5846_v29  ;;  %4685 = vmatprep.mubr.msk.f32.mxu0 %vm5371_vm0, %v5372_v1 }
0x10dd   :  { %5013 = vmatprep.subr.bf16.mxu0 %v5370_v0 }
0x10e0   :  { %5015 = vmatpush3.bf16.msra.mxu0 %v5851_v33 }
0x10e1   :  { %5022 = vmatprep.subr.bf16.mxu0 %v5370_v0 }
0x10e3   :  { %4686 = vmatmul.mubr.msk.f32.vlgmr.msra.gmra.mrb[24].mxu0 %vm78_vm1, %v2282_v51 }
0x10e4   :  { %4707 = vmatprep.mubr.msk.f32.mxu0 %vm5371_vm0, %v5372_v1 }
0x119e   :  { %v2236_v34 = vpop.f32.mrb[20].mxu1 }
0x119f   :  { %v2247_v35 = vadd.f32 %v2236_v34, %v5618_v10  ;;  %v4654_v37 = vpop.f32.mrb[21].mxu1 }
0x11a1   :  { %2249 = vrot.lane.b32.xlu0 %v2247_v35, %s5373_s10 }
0x11a6   :  { %v2160_v38 = vpop.f32.mrb[20].mxu0  ;;  %v2425_v62 = vpop.f32.mrb[22].mxu1 }
0x11a7   :  { %v2436_v39 = vadd.f32 %v2425_v62, %v5538_v59  ;;  %v4643_v40 = vpop.f32.mrb[21].mxu0  ;;  %v4676_v41 = vpop.f32.mrb[23].mxu1  ;;  %v2161_v26 = vadd.f32 %v5646_v13, %v2160_v38 }
0x11a8   :  { %v2651_v41 = vld [vmem:[#allocation7 + $0x48] sm:$0xff] }
0x11a9   :  { %2438 = vrot.lane.b32.xlu1 %v2436_v39, %s5373_s10  ;;  %v2240_v55 = vadd.f32 %v2236_v34, %v2161_v26 }
0x11ab   :  { %v4176_v56 = vmul.f32 -1.442695, %v2240_v55 }
0x11ad   :  { %5197 = vpow2.f32 %v4176_v56  ;;  %v2573_v56 = vld [vmem:[#allocation5 + $0x50] sm:$0xff] }
0x11ae   :  { %v2351_v43 = vpop.f32.mrb[22].mxu0 }
0x11af   :  { %v4665_v44 = vpop.f32.mrb[23].mxu0  ;;  %v2352_v61 = vadd.f32 %v5871_v58, %v2351_v43  ;;  %v2652_v43 = vld [vmem:[#allocation7 + $0x50] sm:$0xff] }
0x11b1   :  { %v2429_v2 = vadd.f32 %v2425_v62, %v2352_v61 }
0x11b3   :  { %v4179_v31 = vmul.f32 -1.442695, %v2429_v2 }
0x11b5   :  { %5199 = vpow2.f32 %v4179_v31 }
0x11b6   :  { %v2529_v46 = vpop.f32.mrb[24].mxu0 }
0x11b7   :  { %v2543_v52 = vadd.f32 %v2529_v46, %v5491_v18  ;;  %v4687_v53 = vpop.f32.mrb[25].mxu0  ;;  %v5198_v32 = vpop.eup %5197  ;;  %v2534_v5 = vrot.slane %v2529_v46, 6  ;;  %v2653_v46 = vld [vmem:[#allocation7 + $0x58] sm:$0xff] }
0x11b8   :  { %v2244_v36 = vadd.f32 1.0, %v5198_v32 }
0x11b9   :  { %v2545_v54 = vrot.slane %v2543_v52, 6  ;;  %v2536_v13 = vadd.f32 %v2534_v5, %v5496_v22 }
0x11ba   :  { %5201 = vrcp.f32 %v2244_v36 }
0x11bb   :  { %2546 = vrot.lane.b32.xlu0 %v2545_v54, %s5373_s10  ;;  %v4181_v6 = vmul.f32 -1.442695, %v2536_v13  ;;  %v2571_v54 = vld [vmem:[#allocation5 + $0x40] sm:$0xff] }
0x11bf   :  { %v5200_v8 = vpop.eup %5199 }
0x11c0   :  { %v2433_v11 = vadd.f32 1.0, %v5200_v8 }
0x11c2   :  { %5203 = vrcp.f32 %v2433_v11 }
0x11c3   :  { %5205 = vpow2.f32 %v4181_v6 }
0x11c4   :  { %v5202_v12 = vpop.eup %5201 }
0x11cc   :  { %v5204_v3 = vpop.eup %5203 }
0x11cd   :  { %v5206_v48 = vpop.eup %5205 }
0x11ce   :  { %v2540_v45 = vadd.f32 1.0, %v5206_v48 }
0x11d0   :  { %5207 = vrcp.f32 %v2540_v45 }
0x11da   :  { %v5208_v16 = vpop.eup %5207 }
0x1213   :  { %v2250_v14 = vpop.permute.xlu0 %2249 }
0x1214   :  { %v2252_v9 = vmul.f32 %v5202_v12, %v2250_v14 }
0x1216   :  { %2254 = vrot.lane.b32.xlu1 %v2252_v9, %s5373_s10 }
0x121b   :  { %v2439_v7 = vpop.permute.xlu1 %2438 }
0x121c   :  { %v2441_v50 = vmul.f32 %v5204_v3, %v2439_v7 }
0x121e   :  { %2443 = vrot.lane.b32.xlu0 %v2441_v50, %s5373_s10 }
0x122d   :  { %v2547_v60 = vpop.permute.xlu0 %2546 }
0x122e   :  { %v2549_v19 = vmul.f32 %v5208_v16, %v2547_v60 }
0x1230   :  { %2551 = vrot.lane.b32.xlu1 %v2549_v19, %s5373_s10 }
0x1288   :  { %v2255_v20 = vpop.permute.xlu1 %2254 }
0x1289   :  { %v2257_v17 = vadd.f32 %v2255_v20, %v2161_v26  ;;  %v2572_v26 = vld [vmem:[#allocation5 + $0x48] sm:$0xff] }
0x128a   :  { %v5896_v55 = vpack.c.bf16 %v2572_v26, %v2571_v54 }
0x128b   :  { %5209 = vtanh.f32 %v2257_v17 }
0x128c   :  { %5018 = vmatpush3.bf16.msra.mxu1 %v5896_v55 }
0x128d   :  { %5019 = vmatprep.subr.bf16.mxu1 %v5370_v0 }
0x1290   :  { %v2444_v23 = vpop.permute.xlu0 %2443 }
0x1291   :  { %v2446_v24 = vadd.f32 %v2444_v23, %v2352_v61  ;;  %v2574_v61 = vld [vmem:[#allocation5 + $0x58] sm:$0xff] }
0x1292   :  { %v5900_v2 = vpack.c.bf16 %v2574_v61, %v2573_v56 }
0x1293   :  { %5211 = vtanh.f32 %v2446_v24 }
0x1294   :  { %5021 = vmatpush3.bf16.msra.mxu1 %v5900_v2 }
0x1295   :  { %v5210_v25 = vpop.eup %5209  ;;  %5028 = vmatprep.subr.bf16.mxu1 %v5370_v0 }
0x1296   :  { %v2259_v27 = vsub.f32 %v5809_v15, %v5210_v25 }
0x1298   :  { %2261 = vrot.lane.b32.xlu0 %v2259_v27, %s5375_s21  ;;  %v5961_v27 = vld [vmem:[%s6129_s3 + $0x2] ss:$0 sm:$0xff]  ;;  %s5376_s3 = smov [#allocation8]  }
0x1299   :  { %s4116_s7 = sshll.u32 %s5376_s3, 4  ;;  %s4117_s7 = int_to_ptr.vmem [resolvable:$true] %s4116_s7 }
0x129a   :  { %s5337_s8 = scalar_lea.vmem %s4117_s7, 256  ;;  %p5342_p11 = scmp.lt.s32.totalorder %s4117_s7, %s4117_s7 }
0x129b   :  { %p5338_p10 = scmp.ne.s32.totalorder %s4117_s7, %s5337_s8  ;;  %p5343_p12 = scmp.lt.s32.totalorder %s5337_s8, %s5337_s8 }
0x129d   :  { %v5212_v28 = vpop.eup %5211  ;;  %p5344_p13 = por %p5343_p12, %p5342_p11 }
0x129e   :  { %v2448_v30 = vsub.f32 %v5813_v42, %v5212_v28  ;;  %v2650_v42 = vld [vmem:[#allocation7 + $0x40] sm:$0xff] }
0x129f   :  { %v5887_v44 = vpack.c.bf16 %v2651_v41, %v2650_v42  ;;  %p5345_p0 = pnand %p5344_p13, %p5338_p10 }
0x12a0   :  { %2450 = vrot.lane.b32.xlu1 %v2448_v30, %s5375_s21 }
0x12a1   :  { %5024 = vmatpush3.bf16.msra.mxu0 %v5887_v44 }
0x12a2   :  { %v2552_v63 = vpop.permute.xlu1 %2551  ;;  %5025 = vmatprep.subr.bf16.mxu0 %v5370_v0 }
0x12a3   :  { %v2554_v51 = vadd.f32 %v2552_v63, %v5496_v22 }
0x12a5   :  { %5213 = vtanh.f32 %v2554_v51 }
0x12af   :  { %v5214_v34 = vpop.eup %5213 }
0x12b0   :  { %v2557_v35 = vrot.slane %v5214_v34, 2 }
0x12b2   :  { %v2559_v37 = vsub.f32 %v5817_v49, %v2557_v35  ;;  %v5890_v49 = vpack.c.bf16 %v2653_v46, %v2652_v43 }
0x12b4   :  { %v2561_v38 = vrot.slane %v2559_v37, 6  ;;  %5027 = vmatpush3.bf16.msra.mxu0 %v5890_v49 }
0x12b5   :  { %5034 = vmatprep.subr.bf16.mxu0 %v5370_v0 }
0x12b6   :  { %2562 = vrot.lane.b32.xlu0 %v2561_v38, %s5375_s21 }
0x130a   :  { %v2262_v62 = vpop.permute.xlu0 %2261 }
0x130b   :  { %v2264_v15 = vmul.f32 %v5202_v12, %v2262_v62 }
0x130d   :  { %2266 = vrot.lane.b32.xlu1 %v2264_v15, %s5374_s15 }
0x1312   :  { %v2451_v39 = vpop.permute.xlu1 %2450 }
0x1313   :  { %v2453_v40 = vmul.f32 %v5204_v3, %v2451_v39 }
0x1315   :  { %2455 = vrot.lane.b32.xlu0 %v2453_v40, %s5374_s15 }
0x1328   :  { %v2563_v52 = vpop.permute.xlu0 %2562 }
0x1329   :  { %v2565_v53 = vmul.f32 %v5208_v16, %v2563_v52 }
0x132b   :  { %2567 = vrot.lane.b32.xlu1 %v2565_v53, %s5374_s15 }
0x137f   :  { %v2267_v31 = vpop.permute.xlu1 %2266 }
0x1380   :  { %v5904_v32 = vadd.f32 %v5210_v25, %v2267_v31 }
0x1382   :  { %2271 = vrot.lane.b32.xlu0 %v5904_v32, %s5373_s10 }
0x1387   :  { %v2456_v36 = vpop.permute.xlu0 %2455 }
0x1388   :  { %v5908_v5 = vadd.f32 %v5212_v28, %v2456_v36 }
0x138a   :  { %2576 = vrot.lane.b32.xlu1 %v5908_v5, %s5373_s10 }
0x139d   :  { %v2568_v8 = vpop.permute.xlu1 %2567 }
0x139e   :  { %v5912_v13 = vadd.f32 %v5214_v34, %v2568_v8 }
0x13a0   :  { %v2767_v11 = vrot.slane %v5912_v13, 2 }
0x13a2   :  { %2768 = vrot.lane.b32.xlu0 %v2767_v11, %s5373_s10 }
0x13f4   :  { %v2272_v6 = vpop.permute.xlu0 %2271 }
0x13f5   :  { %2275 = vst.msk [vmem:[#allocation8 + $0x6] sm:$0x3] %vm817_vm2, %v2272_v6  ;;  %4708 = vmatmul.mubr.msk.f32.vlgmr.msra.gmra.mrb[26].mxu0 %vm78_vm1, %v2272_v6 }
0x13f6   :  { %5036 = vmatpush3.bf16.msra.mxu0 %v5821_v57  ;;  %4729 = vmatprep.mubr.msk.f32.mxu0 %vm5371_vm0, %v5372_v1 }
0x13f7   :  { %5037 = vmatprep.subr.bf16.mxu0 %v5370_v0 }
0x13fa   :  { %5039 = vmatpush3.bf16.msra.mxu0 %v5826_v47 }
0x13fb   :  { %5046 = vmatprep.subr.bf16.mxu0 %v5370_v0 }
0x13fc   :  { %v2577_v12 = vpop.permute.xlu1 %2576 }
0x13fd   :  { %4697 = vmatmul.mubr.msk.f32.vlgmr.msra.gmra.mrb[24].mxu1 %vm78_vm1, %v2577_v12  ;;  %4730 = vmatmul.mubr.msk.f32.vlgmr.msra.gmra.mrb[28].mxu0 %vm78_vm1, %v2577_v12 }
0x13fe   :  { %5030 = vmatpush3.bf16.msra.mxu1 %v5832_v21  ;;  %4718 = vmatprep.mubr.msk.f32.mxu1 %vm5371_vm0, %v5372_v1 }
0x13ff   :  { %5031 = vmatprep.subr.bf16.mxu1 %v5370_v0  ;;  %5048 = vmatpush3.bf16.msra.mxu0 %v5896_v55 }
0x1400   :  { %5049 = vmatprep.subr.bf16.mxu0 %v5370_v0  ;;  %4751 = vmatprep.mubr.msk.f32.mxu0 %vm5371_vm0, %v5372_v1 }
0x1402   :  { %5033 = vmatpush3.bf16.msra.mxu1 %v5838_v4 }
0x1403   :  { %5040 = vmatprep.subr.bf16.mxu1 %v5370_v0  ;;  %5051 = vmatpush3.bf16.msra.mxu0 %v5900_v2 }
0x1404   :  { %5058 = vmatprep.subr.bf16.mxu0 %v5370_v0 }
0x1414   :  { %v2769_v14 = vpop.permute.xlu0 %2768 }
0x1415   :  { %4719 = vmatmul.mubr.msk.f32.vlgmr.msra.gmra.mrb[26].mxu1 %vm78_vm1, %v2769_v14 }
0x1416   :  { %5042 = vmatpush3.bf16.msra.mxu1 %v5846_v29  ;;  %4740 = vmatprep.mubr.msk.f32.mxu1 %vm5371_vm0, %v5372_v1 }
0x1417   :  { %5043 = vmatprep.subr.bf16.mxu1 %v5370_v0 }
0x141a   :  { %5045 = vmatpush3.bf16.msra.mxu1 %v5851_v33 }
0x141b   :  { %5052 = vmatprep.subr.bf16.mxu1 %v5370_v0 }
0x141d   :  { %4741 = vmatmul.mubr.msk.f32.vlgmr.msra.gmra.mrb[28].mxu1 %vm78_vm1, %v2769_v14 }
0x141e   :  { %5054 = vmatpush3.bf16.msra.mxu1 %v5887_v44  ;;  %4762 = vmatprep.mubr.msk.f32.mxu1 %vm5371_vm0, %v5372_v1 }
0x141f   :  { %5055 = vmatprep.subr.bf16.mxu1 %v5370_v0 }
0x1422   :  { %5057 = vmatpush3.bf16.msra.mxu1 %v5890_v49 }
0x1423   :  { %5064 = vmatprep.subr.bf16.mxu1 %v5370_v0 }
0x14c8   :  { %v2722_v9 = vpop.f32.mrb[26].mxu0 }
0x14c9   :  { %v2733_v3 = vadd.f32 %v2722_v9, %v5618_v10  ;;  %v4709_v7 = vpop.f32.mrb[27].mxu0 }
0x14cb   :  { %2735 = vrot.lane.b32.xlu1 %v2733_v3, %s5373_s10 }
0x14d0   :  { %v2646_v48 = vpop.f32.mrb[24].mxu1  ;;  %v2912_v50 = vpop.f32.mrb[28].mxu0 }
0x14d1   :  { %v2923_v45 = vadd.f32 %v2912_v50, %v5538_v59  ;;  %v4698_v16 = vpop.f32.mrb[25].mxu1  ;;  %v4731_v60 = vpop.f32.mrb[29].mxu0  ;;  %v2647_v28 = vadd.f32 %v5961_v27, %v2646_v48 }
0x14d3   :  { %2925 = vrot.lane.b32.xlu0 %v2923_v45, %s5373_s10  ;;  %v2726_v30 = vadd.f32 %v2722_v9, %v2647_v28 }
0x14d5   :  { %v4184_v63 = vmul.f32 -1.442695, %v2726_v30 }
0x14d7   :  { %5215 = vpow2.f32 %v4184_v63 }
0x14e1   :  { %v5216_v37 = vpop.eup %5215 }
0x14e2   :  { %v2730_v38 = vadd.f32 1.0, %v5216_v37 }
0x14e8   :  { %v2838_v19 = vpop.f32.mrb[26].mxu1 }
0x14e9   :  { %v4720_v20 = vpop.f32.mrb[27].mxu1  ;;  %v2839_v51 = vadd.f32 %v5871_v58, %v2838_v19 }
0x14eb   :  { %v2916_v34 = vadd.f32 %v2912_v50, %v2839_v51 }
0x14ed   :  { %v4187_v35 = vmul.f32 -1.442695, %v2916_v34 }
0x14ef   :  { %5217 = vpow2.f32 %v4187_v35 }
0x14f0   :  { %v3016_v17 = vpop.f32.mrb[28].mxu1  ;;  %5219 = vrcp.f32 %v2730_v38 }
0x14f1   :  { %v3030_v23 = vadd.f32 %v3016_v17, %v5491_v18  ;;  %v4742_v24 = vpop.f32.mrb[29].mxu1  ;;  %v3021_v41 = vrot.slane %v3016_v17, 4 }
0x14f3   :  { %v3032_v25 = vrot.slane %v3030_v23, 4  ;;  %v3023_v43 = vadd.f32 %v3021_v41, %v5496_v22 }
0x14f5   :  { %3033 = vrot.lane.b32.xlu1 %v3032_v25, %s5373_s10  ;;  %v4189_v54 = vmul.f32 -1.442695, %v3023_v43 }
0x14f9   :  { %v5218_v62 = vpop.eup %5217 }
0x14fa   :  { %v2920_v15 = vadd.f32 1.0, %v5218_v62  ;;  %v5220_v39 = vpop.eup %5219 }
0x14fc   :  { %5221 = vrcp.f32 %v2920_v15 }
0x14fd   :  { %5223 = vpow2.f32 %v4189_v54 }
0x1506   :  { %v5222_v46 = vpop.eup %5221 }
0x1507   :  { %v5224_v26 = vpop.eup %5223 }
0x1508   :  { %v3027_v56 = vadd.f32 1.0, %v5224_v26 }
0x150a   :  { %5225 = vrcp.f32 %v3027_v56 }
0x1514   :  { %v5226_v61 = vpop.eup %5225 }
0x153d   :  { %v2736_v40 = vpop.permute.xlu1 %2735 }
0x153e   :  { %v2738_v42 = vmul.f32 %v5220_v39, %v2736_v40 }
0x1540   :  { %2740 = vrot.lane.b32.xlu0 %v2738_v42, %s5373_s10 }
0x1545   :  { %v2926_v52 = vpop.permute.xlu0 %2925 }
0x1546   :  { %v2928_v53 = vmul.f32 %v5222_v46, %v2926_v52 }
0x1548   :  { %2930 = vrot.lane.b32.xlu1 %v2928_v53, %s5373_s10 }
0x1567   :  { %v3034_v31 = vpop.permute.xlu1 %3033 }
0x1568   :  { %v3036_v36 = vmul.f32 %v5226_v61, %v3034_v31 }
0x156a   :  { %3038 = vrot.lane.b32.xlu0 %v3036_v36, %s5373_s10 }
0x15b2   :  { %v2741_v8 = vpop.permute.xlu0 %2740 }
0x15b3   :  { %v2743_v11 = vadd.f32 %v2741_v8, %v2647_v28 }
0x15b5   :  { %5227 = vtanh.f32 %v2743_v11 }
0x15ba   :  { %v2931_v6 = vpop.permute.xlu1 %2930 }
0x15bb   :  { %v2933_v12 = vadd.f32 %v2931_v6, %v2839_v51 }
0x15bd   :  { %5229 = vtanh.f32 %v2933_v12 }
0x15bf   :  { %v5228_v14 = vpop.eup %5227 }
0x15c0   :  { %v2745_v9 = vsub.f32 %v5904_v32, %v5228_v14 }
0x15c2   :  { %2747 = vrot.lane.b32.xlu1 %v2745_v9, %s5375_s21 }
0x15c7   :  { %v5230_v3 = vpop.eup %5229 }
0x15c8   :  { %v2935_v7 = vsub.f32 %v5908_v5, %v5230_v3 }
0x15ca   :  { %2937 = vrot.lane.b32.xlu0 %v2935_v7, %s5375_s21 }
0x15dc   :  { %v3039_v48 = vpop.permute.xlu0 %3038 }
0x15dd   :  { %v3041_v50 = vadd.f32 %v3039_v48, %v5496_v22 }
0x15df   :  { %5231 = vtanh.f32 %v3041_v50 }
0x15e9   :  { %v5232_v45 = vpop.eup %5231 }
0x15ea   :  { %v3044_v16 = vrot.slane %v5232_v45, 2 }
0x15ec   :  { %v3046_v60 = vsub.f32 %v5912_v13, %v3044_v16 }
0x15ee   :  { %v3048_v19 = vrot.slane %v3046_v60, 6 }
0x15f0   :  { %3049 = vrot.lane.b32.xlu1 %v3048_v19, %s5375_s21 }
0x1634   :  { %v2748_v20 = vpop.permute.xlu1 %2747 }
0x1635   :  { %v2750_v32 = vmul.f32 %v5220_v39, %v2748_v20 }
0x1637   :  { %2752 = vrot.lane.b32.xlu0 %v2750_v32, %s5374_s15 }
0x163c   :  { %v2938_v17 = vpop.permute.xlu0 %2937 }
0x163d   :  { %v2940_v23 = vmul.f32 %v5222_v46, %v2938_v17 }
0x163f   :  { %2942 = vrot.lane.b32.xlu1 %v2940_v23, %s5374_s15 }
0x1662   :  { %v3050_v5 = vpop.permute.xlu1 %3049 }
0x1663   :  { %v3052_v24 = vmul.f32 %v5226_v61, %v3050_v5 }
0x1665   :  { %3054 = vrot.lane.b32.xlu0 %v3052_v24, %s5374_s15 }
0x16a9   :  { %v2753_v25 = vpop.permute.xlu0 %2752 }
0x16aa   :  { %v5979_v28 = vadd.f32 %v5228_v14, %v2753_v25 }
0x16ac   :  { %2757 = vrot.lane.b32.xlu1 %v5979_v28, %s5373_s10 }
0x16b1   :  { %v2943_v13 = vpop.permute.xlu1 %2942 }
0x16b2   :  { %v5983_v30 = vadd.f32 %v5230_v3, %v2943_v13 }
0x16b4   :  { %3063 = vrot.lane.b32.xlu0 %v5983_v30, %s5373_s10 }
0x16d7   :  { %v3055_v63 = vpop.permute.xlu0 %3054 }
0x16d8   :  { %v5987_v51 = vadd.f32 %v5232_v45, %v3055_v63 }
0x16da   :  { %v3254_v34 = vrot.slane %v5987_v51, 4 }
0x16dc   :  { %3255 = vrot.lane.b32.xlu1 %v3254_v34, %s5373_s10 }
0x171e   :  { %v2758_v35 = vpop.permute.xlu1 %2757 }
0x171f   :  { %2761 = vst.msk [vmem:[#allocation8 + $0x8] sm:$0x3] %vm817_vm2, %v2758_v35  ;;  %4763 = vmatmul.mubr.msk.f32.vlgmr.msra.gmra.mrb[30].mxu1 %vm78_vm1, %v2758_v35 }
0x1720   :  { %5066 = vmatpush3.bf16.msra.mxu1 %v5821_v57  ;;  %4784 = vmatprep.mubr.msk.f32.mxu1 %vm5371_vm0, %v5372_v1 }
0x1721   :  { %5067 = vmatprep.subr.bf16.mxu1 %v5370_v0 }
0x1724   :  { %5069 = vmatpush3.bf16.msra.mxu1 %v5826_v47 }
0x1725   :  { %5076 = vmatprep.subr.bf16.mxu1 %v5370_v0 }
0x1726   :  { %v3064_v37 = vpop.permute.xlu0 %3063 }
0x1727   :  { %4752 = vmatmul.mubr.msk.f32.vlgmr.msra.gmra.mrb[30].mxu0 %vm78_vm1, %v3064_v37  ;;  %4785 = vmatmul.mubr.msk.f32.vlgmr.msra.gmra.mrb[32].mxu1 %vm78_vm1, %v3064_v37 }
0x1728   :  { %5060 = vmatpush3.bf16.msra.mxu0 %v5832_v21  ;;  %4773 = vmatprep.mubr.msk.f32.mxu0 %vm5371_vm0, %v5372_v1 }
0x1729   :  { %5061 = vmatprep.subr.bf16.mxu0 %v5370_v0  ;;  %5078 = vmatpush3.bf16.msra.mxu1 %v5896_v55 }
0x172a   :  { %5079 = vmatprep.subr.bf16.mxu1 %v5370_v0  ;;  %4806 = vmatprep.mubr.msk.f32.mxu1 %vm5371_vm0, %v5372_v1 }
0x172c   :  { %5063 = vmatpush3.bf16.msra.mxu0 %v5838_v4 }
0x172d   :  { %5070 = vmatprep.subr.bf16.mxu0 %v5370_v0  ;;  %5081 = vmatpush3.bf16.msra.mxu1 %v5900_v2 }
0x172e   :  { %5088 = vmatprep.subr.bf16.mxu1 %v5370_v0 }
0x174e   :  { %v3256_v38 = vpop.permute.xlu1 %3255 }
0x174f   :  { %4774 = vmatmul.mubr.msk.f32.vlgmr.msra.gmra.mrb[32].mxu0 %vm78_vm1, %v3256_v38 }
0x1750   :  { %5072 = vmatpush3.bf16.msra.mxu0 %v5846_v29  ;;  %4795 = vmatprep.mubr.msk.f32.mxu0 %vm5371_vm0, %v5372_v1 }
0x1751   :  { %5073 = vmatprep.subr.bf16.mxu0 %v5370_v0 }
0x1754   :  { %5075 = vmatpush3.bf16.msra.mxu0 %v5851_v33 }
0x1755   :  { %5082 = vmatprep.subr.bf16.mxu0 %v5370_v0 }
0x1757   :  { %4796 = vmatmul.mubr.msk.f32.vlgmr.msra.gmra.mrb[34].mxu0 %vm78_vm1, %v3256_v38 }
0x1758   :  { %5084 = vmatpush3.bf16.msra.mxu0 %v5887_v44  ;;  %4817 = vmatprep.mubr.msk.f32.mxu0 %vm5371_vm0, %v5372_v1 }
0x1759   :  { %5085 = vmatprep.subr.bf16.mxu0 %v5370_v0 }
0x175c   :  { %5087 = vmatpush3.bf16.msra.mxu0 %v5890_v49 }
0x175d   :  { %5094 = vmatprep.subr.bf16.mxu0 %v5370_v0 }
0x17f2   :  { %v3209_v29 = vpop.f32.mrb[30].mxu1 }
0x17f3   :  { %v3220_v62 = vadd.f32 %v3209_v29, %v5618_v10  ;;  %v4764_v15 = vpop.f32.mrb[31].mxu1 }
0x17f5   :  { %3222 = vrot.lane.b32.xlu0 %v3220_v62, %s5373_s10 }
0x17fa   :  { %v3133_v33 = vpop.f32.mrb[30].mxu0  ;;  %v3399_v39 = vpop.f32.mrb[32].mxu1 }
0x17fb   :  { %v3410_v40 = vadd.f32 %v3399_v39, %v5538_v59  ;;  %v4753_v42 = vpop.f32.mrb[31].mxu0  ;;  %v4786_v41 = vpop.f32.mrb[33].mxu1  ;;  %v3134_v56 = vadd.f32 %v5961_v27, %v3133_v33 }
0x17fd   :  { %3412 = vrot.lane.b32.xlu1 %v3410_v40, %s5373_s10  ;;  %v3213_v61 = vadd.f32 %v3209_v29, %v3134_v56 }
0x17ff   :  { %v4192_v31 = vmul.f32 -1.442695, %v3213_v61 }
0x1801   :  { %5233 = vpow2.f32 %v4192_v31 }
0x180b   :  { %v5234_v6 = vpop.eup %5233 }
0x180c   :  { %v3217_v12 = vadd.f32 1.0, %v5234_v6 }
0x1822   :  { %v3325_v43 = vpop.f32.mrb[32].mxu0 }
0x1823   :  { %v4775_v46 = vpop.f32.mrb[33].mxu0  ;;  %v3326_v36 = vadd.f32 %v5871_v58, %v3325_v43 }
0x1825   :  { %v3403_v8 = vadd.f32 %v3399_v39, %v3326_v36 }
0x1827   :  { %v4195_v11 = vmul.f32 -1.442695, %v3403_v8 }
0x1829   :  { %5235 = vpow2.f32 %v4195_v11 }
0x182a   :  { %v3503_v52 = vpop.f32.mrb[34].mxu0  ;;  %5237 = vrcp.f32 %v3217_v12 }
0x182b   :  { %v3517_v53 = vadd.f32 %v3503_v52, %v5491_v18  ;;  %v4797_v54 = vpop.f32.mrb[35].mxu0  ;;  %v3508_v16 = vrot.slane %v3503_v52, 2 }
0x182d   :  { %v3519_v26 = vrot.slane %v3517_v53, 2  ;;  %v3510_v60 = vadd.f32 %v3508_v16, %v5496_v22 }
0x182f   :  { %3520 = vrot.lane.b32.xlu0 %v3519_v26, %s5373_s10  ;;  %v4197_v19 = vmul.f32 -1.442695, %v3510_v60 }
0x1833   :  { %v5236_v14 = vpop.eup %5235 }
0x1834   :  { %v3407_v9 = vadd.f32 1.0, %v5236_v14  ;;  %v5238_v18 = vpop.eup %5237 }
0x1836   :  { %5239 = vrcp.f32 %v3407_v9 }
0x1837   :  { %5241 = vpow2.f32 %v4197_v19 }
0x1840   :  { %v5240_v48 = vpop.eup %5239 }
0x1841   :  { %v5242_v20 = vpop.eup %5241 }
0x1842   :  { %v3514_v32 = vadd.f32 1.0, %v5242_v20 }
0x1844   :  { %5243 = vrcp.f32 %v3514_v32 }
0x184e   :  { %v5244_v17 = vpop.eup %5243 }
0x1867   :  { %v3223_v3 = vpop.permute.xlu0 %3222 }
0x1868   :  { %v3225_v7 = vmul.f32 %v5238_v18, %v3223_v3 }
0x186a   :  { %3227 = vrot.lane.b32.xlu1 %v3225_v7, %s5373_s10 }
0x186f   :  { %v3413_v50 = vpop.permute.xlu1 %3412 }
0x1870   :  { %v3415_v45 = vmul.f32 %v5240_v48, %v3413_v50 }
0x1872   :  { %3417 = vrot.lane.b32.xlu0 %v3415_v45, %s5373_s10 }
0x18a1   :  { %v3521_v23 = vpop.permute.xlu0 %3520 }
0x18a2   :  { %v3523_v5 = vmul.f32 %v5244_v17, %v3521_v23 }
0x18a4   :  { %3525 = vrot.lane.b32.xlu1 %v3523_v5, %s5373_s10 }
0x18dc   :  { %v3228_v24 = vpop.permute.xlu1 %3227 }
0x18dd   :  { %v3230_v25 = vadd.f32 %v3228_v24, %v3134_v56 }
0x18df   :  { %5245 = vtanh.f32 %v3230_v25 }
0x18e4   :  { %v3418_v13 = vpop.permute.xlu0 %3417 }
0x18e5   :  { %v3420_v63 = vadd.f32 %v3418_v13, %v3326_v36 }
0x18e7   :  { %5247 = vtanh.f32 %v3420_v63 }
0x18e9   :  { %v5246_v34 = vpop.eup %5245 }
0x18ea   :  { %v3232_v35 = vsub.f32 %v5979_v28, %v5246_v34 }
0x18ec   :  { %3234 = vrot.lane.b32.xlu0 %v3232_v35, %s5375_s21 }
0x18f1   :  { %v5248_v37 = vpop.eup %5247 }
0x18f2   :  { %v3422_v38 = vsub.f32 %v5983_v30, %v5248_v37 }
0x18f4   :  { %3424 = vrot.lane.b32.xlu1 %v3422_v38, %s5375_s21 }
0x1916   :  { %v3526_v29 = vpop.permute.xlu1 %3525 }
0x1917   :  { %v3528_v62 = vadd.f32 %v3526_v29, %v5496_v22 }
0x1919   :  { %5249 = vtanh.f32 %v3528_v62 }
0x1923   :  { %v5250_v15 = vpop.eup %5249 }
0x1924   :  { %v3531_v33 = vrot.slane %v5250_v15, 2 }
0x1926   :  { %v3533_v39 = vsub.f32 %v5987_v51, %v3531_v33 }
0x1928   :  { %v3535_v40 = vrot.slane %v3533_v39, 6 }
0x192a   :  { %3536 = vrot.lane.b32.xlu0 %v3535_v40, %s5375_s21 }
0x195e   :  { %v3235_v42 = vpop.permute.xlu0 %3234 }
0x195f   :  { %v3237_v28 = vmul.f32 %v5238_v18, %v3235_v42 }
0x1961   :  { %3239 = vrot.lane.b32.xlu1 %v3237_v28, %s5374_s15 }
0x1966   :  { %v3425_v41 = vpop.permute.xlu1 %3424 }
0x1967   :  { %v3427_v43 = vmul.f32 %v5240_v48, %v3425_v41 }
0x1969   :  { %3429 = vrot.lane.b32.xlu0 %v3427_v43, %s5374_s15 }
0x199c   :  { %v3537_v30 = vpop.permute.xlu0 %3536 }
0x199d   :  { %v3539_v46 = vmul.f32 %v5244_v17, %v3537_v30 }
0x199f   :  { %3541 = vrot.lane.b32.xlu1 %v3539_v46, %s5374_s15 }
0x19d3   :  { %v3240_v22 = vpop.permute.xlu1 %3239 }
0x19d4   :  { %v6049_v52 = vadd.f32 %v5246_v34, %v3240_v22 }
0x19d6   :  { %3244 = vrot.lane.b32.xlu0 %v6049_v52, %s5373_s10 }
0x19db   :  { %v3430_v51 = vpop.permute.xlu0 %3429 }
0x19dc   :  { %v6053_v53 = vadd.f32 %v5248_v37, %v3430_v51 }
0x19de   :  { %3550 = vrot.lane.b32.xlu1 %v6053_v53, %s5373_s10 }
0x1a11   :  { %v3542_v54 = vpop.permute.xlu1 %3541 }
0x1a12   :  { %v3544_v26 = vadd.f32 %v5250_v15, %v3542_v54 }
0x1a14   :  { %v3741_v56 = vrot.slane %v3544_v26, 6 }
0x1a16   :  { %3742 = vrot.lane.b32.xlu0 %v3741_v56, %s5373_s10 }
0x1a48   :  { %v3245_v61 = vpop.permute.xlu0 %3244 }
0x1a49   :  { %3248 = vst.msk [vmem:[#allocation8 + $0xa] sm:$0x3] %vm817_vm2, %v3245_v61  ;;  %4818 = vmatmul.mubr.msk.f32.vlgmr.msra.gmra.mrb[36].mxu0 %vm78_vm1, %v3245_v61 }
0x1a4a   :  { %5096 = vmatpush3.bf16.msra.mxu0 %v5821_v57  ;;  %4839 = vmatprep.mubr.msk.f32.mxu0 %vm5371_vm0, %v5372_v1 }
0x1a4b   :  { %5097 = vmatprep.subr.bf16.mxu0 %v5370_v0 }
0x1a4e   :  { %5099 = vmatpush3.bf16.msra.mxu0 %v5826_v47 }
0x1a4f   :  { %5106 = vmatprep.subr.bf16.mxu0 %v5370_v0 }
0x1a50   :  { %v3551_v31 = vpop.permute.xlu1 %3550 }
0x1a51   :  { %4807 = vmatmul.mubr.msk.f32.vlgmr.msra.gmra.mrb[34].mxu1 %vm78_vm1, %v3551_v31  ;;  %4840 = vmatmul.mubr.msk.f32.vlgmr.msra.gmra.mrb[38].mxu0 %vm78_vm1, %v3551_v31 }
0x1a52   :  { %5090 = vmatpush3.bf16.msra.mxu1 %v5832_v21  ;;  %4828 = vmatprep.mubr.msk.f32.mxu1 %vm5371_vm0, %v5372_v1 }
0x1a53   :  { %5091 = vmatprep.subr.bf16.mxu1 %v5370_v0  ;;  %5108 = vmatpush3.bf16.msra.mxu0 %v5887_v44 }
0x1a54   :  { %5109 = vmatprep.subr.bf16.mxu0 %v5370_v0  ;;  %4861 = vmatprep.mubr.msk.f32.mxu0 %vm5371_vm0, %v5372_v1 }
0x1a56   :  { %5093 = vmatpush3.bf16.msra.mxu1 %v5838_v4 }
0x1a57   :  { %5111 = vmatpush3.bf16.msra.mxu0 %v5890_v49  ;;  %5100 = vmatprep.subr.bf16.mxu1 %v5370_v0 }
0x1a88   :  { %v3743_v57 = vpop.permute.xlu0 %3742 }
0x1a89   :  { %4829 = vmatmul.mubr.msk.f32.vlgmr.msra.gmra.mrb[36].mxu1 %vm78_vm1, %v3743_v57 }
0x1a8a   :  { %5102 = vmatpush3.bf16.msra.mxu1 %v5896_v55  ;;  %4850 = vmatprep.mubr.msk.f32.mxu1 %vm5371_vm0, %v5372_v1 }
0x1a8b   :  { %5103 = vmatprep.subr.bf16.mxu1 %v5370_v0 }
0x1a8e   :  { %5105 = vmatpush3.bf16.msra.mxu1 %v5900_v2 }
0x1b1c   :  { %v3696_v47 = vpop.f32.mrb[36].mxu0 }
0x1b1d   :  { %v3707_v21 = vadd.f32 %v3696_v47, %v5618_v10  ;;  %v4819_v4 = vpop.f32.mrb[37].mxu0 }
0x1b1f   :  { %3709 = vrot.lane.b32.xlu1 %v3707_v21, %s5373_s10 }
0x1b24   :  { %v3620_v44 = vpop.f32.mrb[34].mxu1  ;;  %v3886_v49 = vpop.f32.mrb[38].mxu0 }
0x1b25   :  { %v3897_v36 = vadd.f32 %v3886_v49, %v5538_v59  ;;  %v4808_v8 = vpop.f32.mrb[35].mxu1  ;;  %v4841_v11 = vpop.f32.mrb[39].mxu0  ;;  %v3621_v0 = vadd.f32 %v5961_v27, %v3620_v44 }
0x1b27   :  { %3899 = vrot.lane.b32.xlu0 %v3897_v36, %s5373_s10  ;;  %v3700_v6 = vadd.f32 %v3696_v47, %v3621_v0 }
0x1b29   :  { %v4200_v2 = vmul.f32 -1.442695, %v3700_v6 }
0x1b2b   :  { %5251 = vpow2.f32 %v4200_v2 }
0x1b35   :  { %v5252_v18 = vpop.eup %5251 }
0x1b36   :  { %v3704_v3 = vadd.f32 1.0, %v5252_v18 }
0x1b5c   :  { %v3812_v55 = vpop.f32.mrb[36].mxu1 }
0x1b5d   :  { %v4830_v1 = vpop.f32.mrb[37].mxu1  ;;  %v3813_v12 = vadd.f32 %v5871_v58, %v3812_v55 }
0x1b5f   :  { %v3890_v14 = vadd.f32 %v3886_v49, %v3813_v12 }
0x1b61   :  { %v4203_v9 = vmul.f32 -1.442695, %v3890_v14 }
0x1b63   :  { %5253 = vpow2.f32 %v4203_v9 }
0x1b64   :  { %5255 = vrcp.f32 %v3704_v3 }
0x1b6d   :  { %v5254_v59 = vpop.eup %5253 }
0x1b6e   :  { %v3894_v7 = vadd.f32 1.0, %v5254_v59  ;;  %v5256_v48 = vpop.eup %5255 }
0x1b70   :  { %5257 = vrcp.f32 %v3894_v7 }
0x1b7a   :  { %v5258_v16 = vpop.eup %5257 }
0x1b91   :  { %v3710_v50 = vpop.permute.xlu1 %3709 }
0x1b92   :  { %v3712_v45 = vmul.f32 %v5256_v48, %v3710_v50 }
0x1b94   :  { %3714 = vrot.lane.b32.xlu1 %v3712_v45, %s5373_s10 }
0x1b99   :  { %v3900_v60 = vpop.permute.xlu0 %3899 }
0x1b9a   :  { %v3902_v19 = vmul.f32 %v5258_v16, %v3900_v60 }
0x1b9c   :  { %3904 = vrot.lane.b32.xlu0 %v3902_v19, %s5373_s10 }
0x1c06   :  { %v3715_v58 = vpop.permute.xlu1 %3714 }
0x1c07   :  { %v3717_v20 = vadd.f32 %v3715_v58, %v3621_v0 }
0x1c09   :  { %5259 = vtanh.f32 %v3717_v20 }
0x1c0e   :  { %v3905_v32 = vpop.permute.xlu0 %3904 }
0x1c0f   :  { %v3907_v17 = vadd.f32 %v3905_v32, %v3813_v12 }
0x1c11   :  { %5261 = vtanh.f32 %v3907_v17 }
0x1c13   :  { %v5260_v23 = vpop.eup %5259 }
0x1c14   :  { %v3719_v5 = vsub.f32 %v6049_v52, %v5260_v23 }
0x1c16   :  { %3721 = vrot.lane.b32.xlu1 %v3719_v5, %s5375_s21 }
0x1c1b   :  { %v5262_v24 = vpop.eup %5261 }
0x1c1c   :  { %v3909_v25 = vsub.f32 %v6053_v53, %v5262_v24 }
0x1c1e   :  { %3911 = vrot.lane.b32.xlu0 %v3909_v25, %s5375_s21 }
0x1c88   :  { %v3722_v13 = vpop.permute.xlu1 %3721 }
0x1c89   :  { %v3724_v63 = vmul.f32 %v5256_v48, %v3722_v13 }
0x1c8b   :  { %3726 = vrot.lane.b32.xlu1 %v3724_v63, %s5374_s15 }
0x1c90   :  { %v3912_v34 = vpop.permute.xlu0 %3911 }
0x1c91   :  { %v3914_v35 = vmul.f32 %v5258_v16, %v3912_v34 }
0x1c93   :  { %3916 = vrot.lane.b32.xlu0 %v3914_v35, %s5374_s15 }
0x1cfd   :  { %v3727_v37 = vpop.permute.xlu1 %3726 }
0x1cfe   :  { %v3729_v38 = vadd.f32 %v5260_v23, %v3727_v37 }
0x1d00   :  { %3731 = vrot.lane.b32.xlu1 %v3729_v38, %s5373_s10 }
0x1d05   :  { %v3917_v29 = vpop.permute.xlu0 %3916 }
0x1d06   :  { %v3919_v62 = vadd.f32 %v5262_v24, %v3917_v29 }
0x1d08   :  { %3925 = vrot.lane.b32.xlu0 %v3919_v62, %s5373_s10 }
0x1d72   :  { %v3732_v15 = vpop.permute.xlu1 %3731 }
0x1d73   :  { %3735 = vst.msk [vmem:[#allocation8 + $0xc] sm:$0x3] %vm817_vm2, %v3732_v15  ;;  %4862 = vmatmul.mubr.msk.f32.vlgmr.msra.gmra.mrb[40].mxu0 %vm78_vm1, %v3732_v15 }
0x1d7a   :  { %v3926_v33 = vpop.permute.xlu0 %3925 }
0x1d7b   :  { %4851 = vmatmul.mubr.msk.f32.vlgmr.msra.gmra.mrb[38].mxu1 %vm78_vm1, %v3926_v33 }
0x1e46   :  { %v4071_v39 = vpop.f32.mrb[40].mxu0 }
0x1e47   :  { %v4082_v40 = vadd.f32 %v4071_v39, %v5618_v10  ;;  %v4863_v42 = vpop.f32.mrb[41].mxu0 }
0x1e49   :  { %4084 = vrot.lane.b32.xlu1 %v4082_v40, %s5373_s10 }
0x1e4e   :  { %v3995_v28 = vpop.f32.mrb[38].mxu1 }
0x1e4f   :  { %v4852_v41 = vpop.f32.mrb[39].mxu1  ;;  %v3996_v43 = vadd.f32 %v5961_v27, %v3995_v28 }
0x1e51   :  { %v4075_v30 = vadd.f32 %v4071_v39, %v3996_v43 }
0x1e53   :  { %v4206_v46 = vmul.f32 -1.442695, %v4075_v30 }
0x1e55   :  { %5263 = vpow2.f32 %v4206_v46 }
0x1e5f   :  { %v5264_v22 = vpop.eup %5263 }
0x1e60   :  { %v4079_v52 = vadd.f32 1.0, %v5264_v22 }
0x1e62   :  { %5265 = vrcp.f32 %v4079_v52 }
0x1e6c   :  { %v5266_v51 = vpop.eup %5265 }
0x1ebb   :  { %v4085_v53 = vpop.permute.xlu1 %4084 }
0x1ebc   :  { %v4087_v54 = vmul.f32 %v5266_v51, %v4085_v53 }
0x1ebe   :  { %4089 = vrot.lane.b32.xlu0 %v4087_v54, %s5373_s10 }
0x1f30   :  { %v4090_v26 = vpop.permute.xlu0 %4089 }
0x1f31   :  { %v4092_v10 = vadd.f32 %v4090_v26, %v3996_v43 }
0x1f33   :  { %5267 = vtanh.f32 %v4092_v10 }
0x1f3d   :  { %v5268_v56 = vpop.eup %5267 }
0x1f3e   :  { %v4094_v61 = vsub.f32 %v3729_v38, %v5268_v56 }
0x1f40   :  { %4096 = vrot.lane.b32.xlu1 %v4094_v61, %s5375_s21 }
0x1fb2   :  { %v4097_v31 = vpop.permute.xlu1 %4096 }
0x1fb3   :  { %v4099_v27 = vmul.f32 %v5266_v51, %v4097_v31 }
0x1fb5   :  { %4101 = vrot.lane.b32.xlu0 %v4099_v27, %s5374_s15 }
0x2027   :  { %v4102_v57 = vpop.permute.xlu0 %4101 }
0x2028   :  { %v4104_v47 = vadd.f32 %v5268_v56, %v4102_v57 }
0x202a   :  { %4106 = vrot.lane.b32.xlu1 %v4104_v47, %s5373_s10 }
0x209c   :  { %v4107_v21 = vpop.permute.xlu1 %4106 }
0x209d   :  { %4110 = vst.msk [vmem:[#allocation8 + $0xe] sm:$0x3] %vm817_vm2, %v4107_v21 }
0x209e   :  { %5348 = shalt.err (!%p5345_p0)
}
0x209f   :  { %s5349_s2 = scalar_lea.hbm %s6132_s6, 256 }
0x20a0   :  { %p5350_p1 = scmp.ne.s32.totalorder %s6132_s6, %s5349_s2  ;;  %p5353_p2 = scmp.lt.u32.totalorder %s5349_s2, %s6132_s6 }
0x20a2   :  { %p5355_p3 = pnand %p5353_p2, %p5350_p1 }
0x20a4   :  { %5358 = shalt.err (!%p5355_p3)
}
0x20a5   :  { %s5377_s13 = smov 2  }
0x20a6   :  { %4122 = dma.vmem_to_hbm [thread:$0]  %s4117_s7, 256, %s6132_s6, [#allocation4], %s5374_s15, %s5374_s15, %s5377_s13  }
0x20a7   :  { %5363 = dma.done.wait [#allocation4], 256  }
0x20a8   :  { %5364 = vsyncadd [#allocation4], 4294967040 }
0x20a9   :  { %4126 = vsyncpa [#allocation3], 1 }
0x20aa   :  { %4127 = vsyncpa [#allocation6], 1 }
0x20ab   :  { %4128 = vsyncpa [#allocation4], 1 }

</bundles_post_ra>
